<compile_context>
chip_gen: v7x
topology: tpu7x:2x2x1
jax: 0.10.0
libtpu: 0.0.40
codegen_flags: <defaults>
</compile_context>

<pallas_src>
import functools

import jax
import jax.numpy as jnp
from jax import lax
from jax.experimental import pallas as pl
from jax.experimental.pallas import tpu as pltpu

KH = KW = 4  # conv kernel size


# ------------------------------ fused kernel --------------------------------

def _lrelu(v):
    return jnp.where(v > 0, v, 0.2 * v)


def _conv_s2(x_bf, sel_ref, wmat_ref, bias_ref):
    """Stride-2 4x4 conv on a (H, W*Cin) slab -> (Ho, Wo*Cout) f32.

    sel_ref : (4, Ho, H)           bf16  0/1 row-selection per kh tap (H-stride + pad)
    wmat_ref: (4, W*Cin, Wo*Cout)  bf16  kw-unfold + channel contraction (W-stride + pad)
    bias_ref: (1, Wo*Cout)         f32
    """
    acc = None
    for kh in range(KH):
        # Row selection is an exact 0/1 matmul -> bf16 re-cast is lossless.
        rows = jnp.dot(sel_ref[kh], x_bf,
                       preferred_element_type=jnp.float32).astype(jnp.bfloat16)
        part = jnp.dot(rows, wmat_ref[kh], preferred_element_type=jnp.float32)
        acc = part if acc is None else acc + part
    return acc + bias_ref[...]


def _layernorm(v, gam_ref, bet_ref):
    """PyTorch nn.LayerNorm((C,H,W)) over the whole per-sample slab (f32, eps=1e-5)."""
    m = jnp.mean(v, keepdims=True)
    c = v - m
    var = jnp.mean(c * c, keepdims=True)
    return c * lax.rsqrt(var + 1e-5) * gam_ref[...] + bet_ref[...]


def _disc_kernel(x_ref,
                 s1, w1, c1,
                 s2, w2, c2, g2, be2,
                 s3, w3, c3, g3, be3,
                 s4, w4, c4, g4, be4,
                 w5, b5,
                 o_ref):
    x = x_ref[...]                                                # (64, 64*Cin) bf16
    h = _lrelu(_conv_s2(x, s1, w1, c1))                           # (32, 32*dim)  f32
    h = _lrelu(_layernorm(_conv_s2(h.astype(jnp.bfloat16), s2, w2, c2), g2, be2))
    h = _lrelu(_layernorm(_conv_s2(h.astype(jnp.bfloat16), s3, w3, c3), g3, be3))
    h = _lrelu(_layernorm(_conv_s2(h.astype(jnp.bfloat16), s4, w4, c4), g4, be4))
    # Layer 5: 4x4 valid conv with Cout=1 -> plain VPU multiply-reduce epilogue.
    o_ref[...] = jnp.sum(h * w5[...], keepdims=True) + b5[...]    # (1, 1)


# --------------------------- one-time weight prep ----------------------------

def _row_select(H, Ho):
    """S[kh, oh, h] = 1 iff h == 2*oh + kh - 1 (zero-padding handled by omission)."""
    kh = jnp.arange(KH)[:, None, None]
    oh = jnp.arange(Ho)[None, :, None]
    h = jnp.arange(H)[None, None, :]
    return (h == 2 * oh + kh - 1).astype(jnp.float32)             # (4, Ho, H)


def _unfold_weight(w_oihw, W, Wo):
    """(Cout,Cin,4,4) -> B of shape (4, W*Cin, Wo*Cout) so that
    conv_s2(x)[oh, ow*Cout+co] == sum_kh (S_kh @ x2 @ B_kh)[oh, ow*Cout+co]."""
    cout, cin, _, _ = w_oihw.shape
    kw = jnp.arange(KW)[:, None, None]
    wi = jnp.arange(W)[None, :, None]
    ow = jnp.arange(Wo)[None, None, :]
    sel = (wi == 2 * ow + kw - 1).astype(jnp.float32)             # (4, W, Wo)
    b = jnp.einsum("qwo,cihq->hwioc", sel, w_oihw.astype(jnp.float32))
    return b.reshape(KH, W * cin, Wo * cout)


def prepare_params(params, in_dim, dim):
    """Hoisted matmul-layout weight prep (done once, outside the jitted forward)."""
    chans = [in_dim, dim, 2 * dim, 4 * dim, 8 * dim]
    spat = [64, 32, 16, 8, 4]
    prep = {}
    for i in range(1, 5):                                  # stride-2 conv layers
        H, Ho = spat[i - 1], spat[i]
        cout = chans[i]
        prep[f"S{i}"] = _row_select(H, Ho).astype(jnp.bfloat16)
        prep[f"W{i}"] = _unfold_weight(params[f"w{i}"], H, Ho).astype(jnp.bfloat16)
        prep[f"c{i}"] = jnp.tile(params[f"b{i}"], Ho).reshape(1, Ho * cout).astype(jnp.float32)
    for i in (2, 3, 4):                                    # LayerNorm affine, (C,H,W)->(H,W*C)
        Ho, cout = spat[i], chans[i]
        prep[f"g{i}"] = jnp.transpose(params[f"g{i}"], (1, 2, 0)).reshape(Ho, Ho * cout).astype(jnp.float32)
        prep[f"be{i}"] = jnp.transpose(params[f"be{i}"], (1, 2, 0)).reshape(Ho, Ho * cout).astype(jnp.float32)
    c4 = chans[4]
    prep["W5"] = jnp.transpose(params["w5"][0], (1, 2, 0)).reshape(KH, KW * c4).astype(jnp.float32)
    prep["b5"] = params["b5"].reshape(1, 1).astype(jnp.float32)
    return prep


# --------------------------------- wrapper -----------------------------------

def discriminator_forward(x_nchw, prep):
    N, cin, H, W = x_nchw.shape
    assert (H, W) == (64, 64), "module's hard-coded LayerNorm shapes require 64x64 input"
    # NCHW -> NHWC -> lane-dense (N, H, W*C), bf16 MXU operands.
    x = jnp.transpose(x_nchw, (0, 2, 3, 1)).reshape(N, H, W * cin).astype(jnp.bfloat16)

    weights = [prep["S1"], prep["W1"], prep["c1"],
               prep["S2"], prep["W2"], prep["c2"], prep["g2"], prep["be2"],
               prep["S3"], prep["W3"], prep["c3"], prep["g3"], prep["be3"],
               prep["S4"], prep["W4"], prep["c4"], prep["g4"], prep["be4"],
               prep["W5"], prep["b5"]]

    def whole(a):  # full-array VMEM block, constant across the batch grid
        nd = a.ndim
        return pl.BlockSpec(a.shape, lambda n, nd=nd: (0,) * nd)

    out = pl.pallas_call(
        _disc_kernel,
        out_shape=jax.ShapeDtypeStruct((N, 1, 1), jnp.float32),
        grid=(N,),
        in_specs=[pl.BlockSpec((None, H, W * cin), lambda n: (n, 0, 0))]
                 + [whole(a) for a in weights],
        out_specs=pl.BlockSpec((None, 1, 1), lambda n: (n, 0, 0)),
        compiler_params=pltpu.CompilerParams(
            dimension_semantics=("parallel",)),
    )(x, *weights)
    return out.reshape(-1)                                # == y.view(-1)


# -------------------------- pure-JAX reference check -------------------------

def reference_forward(x_nchw, params):
    """XLA-conv reference with matching bf16-operand / f32-accum dtype policy."""
    def conv(h, w, b, stride, pad):
        y = lax.conv_general_dilated(
            h.astype(jnp.bfloat16),
            jnp.transpose(w, (2, 3, 1, 0)).astype(jnp.bfloat16),
            (stride, stride), [(pad, pad), (pad, pad)],
            dimension_numbers=("NHWC", "HWIO", "NHWC"),
            preferred_element_type=jnp.float32)
        return y + b.astype(jnp.float32)

    def lrelu(v):
        return jnp.where(v > 0, v, 0.2 * v)

    def ln(v, g, b):
        m = jnp.mean(v, axis=(1, 2, 3), keepdims=True)
        c = v - m
        var = jnp.mean(c * c, axis=(1, 2, 3), keepdims=True)
        return (c * lax.rsqrt(var + 1e-5) * jnp.transpose(g, (1, 2, 0))[None]
                + jnp.transpose(b, (1, 2, 0))[None])

    h = jnp.transpose(x_nchw, (0, 2, 3, 1))
    h = lrelu(conv(h, params["w1"], params["b1"], 2, 1))
    for i in (2, 3, 4):
        h = lrelu(ln(conv(h, params[f"w{i}"], params[f"b{i}"], 2, 1),
                     params[f"g{i}"], params[f"be{i}"]))
    y = conv(h, params["w5"], params["b5"], 1, 0)
    return y.reshape(-1)


# ----------------------------- synthetic params -------------------------------

def init_params(key, in_dim, dim):
    """Deterministic synthetic parameters with PyTorch-module shapes."""
    ks = jax.random.split(key, 20)
    p = {}
    chans = [in_dim, dim, dim * 2, dim * 4, dim * 8, 1]
    ln_spatial = {2: 16, 3: 8, 4: 4}
    for i in range(1, 6):
        cin, cout = chans[i - 1], chans[i]
        p[f"w{i}"] = 0.05 * jax.random.normal(ks[2 * i - 2], (cout, cin, 4, 4), jnp.float32)
        p[f"b{i}"] = 0.05 * jax.random.normal(ks[2 * i - 1], (cout,), jnp.float32)
    for i, s in ln_spatial.items():
        c = chans[i]
        p[f"g{i}"] = 1.0 + 0.1 * jax.random.normal(ks[10 + i], (c, s, s), jnp.float32)
        p[f"be{i}"] = 0.1 * jax.random.normal(ks[14 + i], (c, s, s), jnp.float32)
    return p


if __name__ == "__main__":
    key = jax.random.PRNGKey(0)
    k_params, k_x = jax.random.split(key)

    in_dim, dim, batch = 3, 8, 2          # small channels; spatial must be 64 (see header)
    x = jax.random.normal(k_x, (batch, in_dim, 64, 64), jnp.float32)   # NCHW like torch

    params = init_params(k_params, in_dim, dim)
    prep = prepare_params(params, in_dim, dim)     # one-time matmul-layout weight prep

    fwd = jax.jit(functools.partial(discriminator_forward, prep=prep))
    out = fwd(x)
    jax.block_until_ready(out)

    assert out.shape == (batch,), out.shape
    assert bool(jnp.all(jnp.isfinite(out)))

    ref = jax.jit(functools.partial(reference_forward, params=params))(x)
    err = float(jnp.max(jnp.abs(out - ref)))
    assert err < 5e-2, f"kernel/reference mismatch: max abs err = {err}"

    print("KERNEL_OK")
</pallas_src>

<mosaic_0001>
module attributes {stable_mosaic.version = 11 : i64} {
  func.func @_disc_kernel(%arg0: i32, %arg1: memref<1x64x192xbf16, #tpu.memory_space<vmem>>, %arg2: memref<4x32x64xbf16, #tpu.memory_space<vmem>>, %arg3: memref<4x192x256xbf16, #tpu.memory_space<vmem>>, %arg4: memref<1x256xf32, #tpu.memory_space<vmem>>, %arg5: memref<4x16x32xbf16, #tpu.memory_space<vmem>>, %arg6: memref<4x256x256xbf16, #tpu.memory_space<vmem>>, %arg7: memref<1x256xf32, #tpu.memory_space<vmem>>, %arg8: memref<16x256xf32, #tpu.memory_space<vmem>>, %arg9: memref<16x256xf32, #tpu.memory_space<vmem>>, %arg10: memref<4x8x16xbf16, #tpu.memory_space<vmem>>, %arg11: memref<4x256x256xbf16, #tpu.memory_space<vmem>>, %arg12: memref<1x256xf32, #tpu.memory_space<vmem>>, %arg13: memref<8x256xf32, #tpu.memory_space<vmem>>, %arg14: memref<8x256xf32, #tpu.memory_space<vmem>>, %arg15: memref<4x4x8xbf16, #tpu.memory_space<vmem>>, %arg16: memref<4x256x256xbf16, #tpu.memory_space<vmem>>, %arg17: memref<1x256xf32, #tpu.memory_space<vmem>>, %arg18: memref<4x256xf32, #tpu.memory_space<vmem>>, %arg19: memref<4x256xf32, #tpu.memory_space<vmem>>, %arg20: memref<4x256xf32, #tpu.memory_space<vmem>>, %arg21: memref<1x1xf32, #tpu.memory_space<vmem>>, %arg22: memref<1x1x1xf32, #tpu.memory_space<vmem>>) attributes {dimension_semantics = [#tpu.dimension_semantics<parallel>], iteration_bounds = array<i64: 2>, scalar_prefetch = 0 : i64, scratch_operands = 0 : i64, tpu.core_type = #tpu.core_type<tc>, window_params = [{transform_indices = @transform_0, window_bounds = array<i64: 1, 64, 192>}, {pipeline_mode = #tpu.pipeline_mode<synchronous>, transform_indices = @transform_1, window_bounds = array<i64: 4, 32, 64>}, {pipeline_mode = #tpu.pipeline_mode<synchronous>, transform_indices = @transform_2, window_bounds = array<i64: 4, 192, 256>}, {pipeline_mode = #tpu.pipeline_mode<synchronous>, transform_indices = @transform_3, window_bounds = array<i64: 1, 256>}, {pipeline_mode = #tpu.pipeline_mode<synchronous>, transform_indices = @transform_4, window_bounds = array<i64: 4, 16, 32>}, {pipeline_mode = #tpu.pipeline_mode<synchronous>, transform_indices = @transform_5, window_bounds = array<i64: 4, 256, 256>}, {pipeline_mode = #tpu.pipeline_mode<synchronous>, transform_indices = @transform_6, window_bounds = array<i64: 1, 256>}, {pipeline_mode = #tpu.pipeline_mode<synchronous>, transform_indices = @transform_7, window_bounds = array<i64: 16, 256>}, {pipeline_mode = #tpu.pipeline_mode<synchronous>, transform_indices = @transform_8, window_bounds = array<i64: 16, 256>}, {pipeline_mode = #tpu.pipeline_mode<synchronous>, transform_indices = @transform_9, window_bounds = array<i64: 4, 8, 16>}, {pipeline_mode = #tpu.pipeline_mode<synchronous>, transform_indices = @transform_10, window_bounds = array<i64: 4, 256, 256>}, {pipeline_mode = #tpu.pipeline_mode<synchronous>, transform_indices = @transform_11, window_bounds = array<i64: 1, 256>}, {pipeline_mode = #tpu.pipeline_mode<synchronous>, transform_indices = @transform_12, window_bounds = array<i64: 8, 256>}, {pipeline_mode = #tpu.pipeline_mode<synchronous>, transform_indices = @transform_13, window_bounds = array<i64: 8, 256>}, {pipeline_mode = #tpu.pipeline_mode<synchronous>, transform_indices = @transform_14, window_bounds = array<i64: 4, 4, 8>}, {pipeline_mode = #tpu.pipeline_mode<synchronous>, transform_indices = @transform_15, window_bounds = array<i64: 4, 256, 256>}, {pipeline_mode = #tpu.pipeline_mode<synchronous>, transform_indices = @transform_16, window_bounds = array<i64: 1, 256>}, {pipeline_mode = #tpu.pipeline_mode<synchronous>, transform_indices = @transform_17, window_bounds = array<i64: 4, 256>}, {pipeline_mode = #tpu.pipeline_mode<synchronous>, transform_indices = @transform_18, window_bounds = array<i64: 4, 256>}, {pipeline_mode = #tpu.pipeline_mode<synchronous>, transform_indices = @transform_19, window_bounds = array<i64: 4, 256>}, {pipeline_mode = #tpu.pipeline_mode<synchronous>, transform_indices = @transform_20, window_bounds = array<i64: 1, 1>}, {transform_indices = @transform_21, window_bounds = array<i64: 1, 1, 1>}]} {
    %c0 = arith.constant 0 : index
    %c0_0 = arith.constant 0 : index
    %c0_1 = arith.constant 0 : index
    %0 = vector.load %arg1[%c0, %c0_0, %c0_1] : memref<1x64x192xbf16, #tpu.memory_space<vmem>>, vector<1x64x192xbf16>
    %1 = vector.shape_cast %0 : vector<1x64x192xbf16> to vector<64x192xbf16>
    %c0_2 = arith.constant 0 : index
    %c0_3 = arith.constant 0 : index
    %c0_4 = arith.constant 0 : index
    %2 = vector.load %arg2[%c0_2, %c0_3, %c0_4] : memref<4x32x64xbf16, #tpu.memory_space<vmem>>, vector<1x32x64xbf16>
    %3 = vector.shape_cast %2 : vector<1x32x64xbf16> to vector<32x64xbf16>
    %cst = arith.constant dense<0.000000e+00> : vector<32x192xf32>
    %4 = tpu.matmul %3, %1, %cst {dimension_numbers = #tpu.dot_dimension_numbers<[1], [0], [0], [1], [0, 0, 1, 1], [], []>} : vector<32x64xbf16>, vector<64x192xbf16>, vector<32x192xf32> -> vector<32x192xf32>
    %5 = arith.truncf %4 : vector<32x192xf32> to vector<32x192xbf16>
    %c0_5 = arith.constant 0 : index
    %c0_6 = arith.constant 0 : index
    %c0_7 = arith.constant 0 : index
    %6 = vector.load %arg3[%c0_5, %c0_6, %c0_7] : memref<4x192x256xbf16, #tpu.memory_space<vmem>>, vector<1x192x256xbf16>
    %7 = vector.shape_cast %6 : vector<1x192x256xbf16> to vector<192x256xbf16>
    %cst_8 = arith.constant dense<0.000000e+00> : vector<32x256xf32>
    %8 = tpu.matmul %5, %7, %cst_8 {dimension_numbers = #tpu.dot_dimension_numbers<[1], [0], [0], [1], [0, 0, 1, 1], [], []>} : vector<32x192xbf16>, vector<192x256xbf16>, vector<32x256xf32> -> vector<32x256xf32>
    %c1 = arith.constant 1 : index
    %c0_9 = arith.constant 0 : index
    %c0_10 = arith.constant 0 : index
    %9 = vector.load %arg2[%c1, %c0_9, %c0_10] : memref<4x32x64xbf16, #tpu.memory_space<vmem>>, vector<1x32x64xbf16>
    %10 = vector.shape_cast %9 : vector<1x32x64xbf16> to vector<32x64xbf16>
    %cst_11 = arith.constant dense<0.000000e+00> : vector<32x192xf32>
    %11 = tpu.matmul %10, %1, %cst_11 {dimension_numbers = #tpu.dot_dimension_numbers<[1], [0], [0], [1], [0, 0, 1, 1], [], []>} : vector<32x64xbf16>, vector<64x192xbf16>, vector<32x192xf32> -> vector<32x192xf32>
    %12 = arith.truncf %11 : vector<32x192xf32> to vector<32x192xbf16>
    %c1_12 = arith.constant 1 : index
    %c0_13 = arith.constant 0 : index
    %c0_14 = arith.constant 0 : index
    %13 = vector.load %arg3[%c1_12, %c0_13, %c0_14] : memref<4x192x256xbf16, #tpu.memory_space<vmem>>, vector<1x192x256xbf16>
    %14 = vector.shape_cast %13 : vector<1x192x256xbf16> to vector<192x256xbf16>
    %cst_15 = arith.constant dense<0.000000e+00> : vector<32x256xf32>
    %15 = tpu.matmul %12, %14, %cst_15 {dimension_numbers = #tpu.dot_dimension_numbers<[1], [0], [0], [1], [0, 0, 1, 1], [], []>} : vector<32x192xbf16>, vector<192x256xbf16>, vector<32x256xf32> -> vector<32x256xf32>
    %16 = arith.addf %8, %15 : vector<32x256xf32>
    %c2 = arith.constant 2 : index
    %c0_16 = arith.constant 0 : index
    %c0_17 = arith.constant 0 : index
    %17 = vector.load %arg2[%c2, %c0_16, %c0_17] : memref<4x32x64xbf16, #tpu.memory_space<vmem>>, vector<1x32x64xbf16>
    %18 = vector.shape_cast %17 : vector<1x32x64xbf16> to vector<32x64xbf16>
    %cst_18 = arith.constant dense<0.000000e+00> : vector<32x192xf32>
    %19 = tpu.matmul %18, %1, %cst_18 {dimension_numbers = #tpu.dot_dimension_numbers<[1], [0], [0], [1], [0, 0, 1, 1], [], []>} : vector<32x64xbf16>, vector<64x192xbf16>, vector<32x192xf32> -> vector<32x192xf32>
    %20 = arith.truncf %19 : vector<32x192xf32> to vector<32x192xbf16>
    %c2_19 = arith.constant 2 : index
    %c0_20 = arith.constant 0 : index
    %c0_21 = arith.constant 0 : index
    %21 = vector.load %arg3[%c2_19, %c0_20, %c0_21] : memref<4x192x256xbf16, #tpu.memory_space<vmem>>, vector<1x192x256xbf16>
    %22 = vector.shape_cast %21 : vector<1x192x256xbf16> to vector<192x256xbf16>
    %cst_22 = arith.constant dense<0.000000e+00> : vector<32x256xf32>
    %23 = tpu.matmul %20, %22, %cst_22 {dimension_numbers = #tpu.dot_dimension_numbers<[1], [0], [0], [1], [0, 0, 1, 1], [], []>} : vector<32x192xbf16>, vector<192x256xbf16>, vector<32x256xf32> -> vector<32x256xf32>
    %24 = arith.addf %16, %23 : vector<32x256xf32>
    %c3 = arith.constant 3 : index
    %c0_23 = arith.constant 0 : index
    %c0_24 = arith.constant 0 : index
    %25 = vector.load %arg2[%c3, %c0_23, %c0_24] : memref<4x32x64xbf16, #tpu.memory_space<vmem>>, vector<1x32x64xbf16>
    %26 = vector.shape_cast %25 : vector<1x32x64xbf16> to vector<32x64xbf16>
    %cst_25 = arith.constant dense<0.000000e+00> : vector<32x192xf32>
    %27 = tpu.matmul %26, %1, %cst_25 {dimension_numbers = #tpu.dot_dimension_numbers<[1], [0], [0], [1], [0, 0, 1, 1], [], []>} : vector<32x64xbf16>, vector<64x192xbf16>, vector<32x192xf32> -> vector<32x192xf32>
    %28 = arith.truncf %27 : vector<32x192xf32> to vector<32x192xbf16>
    %c3_26 = arith.constant 3 : index
    %c0_27 = arith.constant 0 : index
    %c0_28 = arith.constant 0 : index
    %29 = vector.load %arg3[%c3_26, %c0_27, %c0_28] : memref<4x192x256xbf16, #tpu.memory_space<vmem>>, vector<1x192x256xbf16>
    %30 = vector.shape_cast %29 : vector<1x192x256xbf16> to vector<192x256xbf16>
    %cst_29 = arith.constant dense<0.000000e+00> : vector<32x256xf32>
    %31 = tpu.matmul %28, %30, %cst_29 {dimension_numbers = #tpu.dot_dimension_numbers<[1], [0], [0], [1], [0, 0, 1, 1], [], []>} : vector<32x192xbf16>, vector<192x256xbf16>, vector<32x256xf32> -> vector<32x256xf32>
    %32 = arith.addf %24, %31 : vector<32x256xf32>
    %c0_30 = arith.constant 0 : index
    %c0_31 = arith.constant 0 : index
    %33 = vector.load %arg4[%c0_30, %c0_31] : memref<1x256xf32, #tpu.memory_space<vmem>>, vector<1x256xf32>
    %34 = vector.broadcast %33 : vector<1x256xf32> to vector<32x256xf32>
    %35 = arith.addf %32, %34 : vector<32x256xf32>
    %cst_32 = arith.constant 0.000000e+00 : f32
    %36 = vector.broadcast %cst_32 : f32 to vector<32x256xf32>
    %37 = arith.cmpf ogt, %35, %36 : vector<32x256xf32>
    %cst_33 = arith.constant 2.000000e-01 : f32
    %38 = vector.broadcast %cst_33 : f32 to vector<32x256xf32>
    %39 = arith.mulf %38, %35 : vector<32x256xf32>
    %40 = arith.select %37, %35, %39 : vector<32x256xi1>, vector<32x256xf32>
    %41 = arith.truncf %40 : vector<32x256xf32> to vector<32x256xbf16>
    %c0_34 = arith.constant 0 : index
    %c0_35 = arith.constant 0 : index
    %c0_36 = arith.constant 0 : index
    %42 = vector.load %arg5[%c0_34, %c0_35, %c0_36] : memref<4x16x32xbf16, #tpu.memory_space<vmem>>, vector<1x16x32xbf16>
    %43 = vector.shape_cast %42 : vector<1x16x32xbf16> to vector<16x32xbf16>
    %cst_37 = arith.constant dense<0.000000e+00> : vector<16x256xf32>
    %44 = tpu.matmul %43, %41, %cst_37 {dimension_numbers = #tpu.dot_dimension_numbers<[1], [0], [0], [1], [0, 0, 1, 1], [], []>} : vector<16x32xbf16>, vector<32x256xbf16>, vector<16x256xf32> -> vector<16x256xf32>
    %45 = arith.truncf %44 : vector<16x256xf32> to vector<16x256xbf16>
    %c0_38 = arith.constant 0 : index
    %c0_39 = arith.constant 0 : index
    %c0_40 = arith.constant 0 : index
    %46 = vector.load %arg6[%c0_38, %c0_39, %c0_40] : memref<4x256x256xbf16, #tpu.memory_space<vmem>>, vector<1x256x256xbf16>
    %47 = vector.shape_cast %46 : vector<1x256x256xbf16> to vector<256x256xbf16>
    %cst_41 = arith.constant dense<0.000000e+00> : vector<16x256xf32>
    %48 = tpu.matmul %45, %47, %cst_41 {dimension_numbers = #tpu.dot_dimension_numbers<[1], [0], [0], [1], [0, 0, 1, 1], [], []>} : vector<16x256xbf16>, vector<256x256xbf16>, vector<16x256xf32> -> vector<16x256xf32>
    %c1_42 = arith.constant 1 : index
    %c0_43 = arith.constant 0 : index
    %c0_44 = arith.constant 0 : index
    %49 = vector.load %arg5[%c1_42, %c0_43, %c0_44] : memref<4x16x32xbf16, #tpu.memory_space<vmem>>, vector<1x16x32xbf16>
    %50 = vector.shape_cast %49 : vector<1x16x32xbf16> to vector<16x32xbf16>
    %cst_45 = arith.constant dense<0.000000e+00> : vector<16x256xf32>
    %51 = tpu.matmul %50, %41, %cst_45 {dimension_numbers = #tpu.dot_dimension_numbers<[1], [0], [0], [1], [0, 0, 1, 1], [], []>} : vector<16x32xbf16>, vector<32x256xbf16>, vector<16x256xf32> -> vector<16x256xf32>
    %52 = arith.truncf %51 : vector<16x256xf32> to vector<16x256xbf16>
    %c1_46 = arith.constant 1 : index
    %c0_47 = arith.constant 0 : index
    %c0_48 = arith.constant 0 : index
    %53 = vector.load %arg6[%c1_46, %c0_47, %c0_48] : memref<4x256x256xbf16, #tpu.memory_space<vmem>>, vector<1x256x256xbf16>
    %54 = vector.shape_cast %53 : vector<1x256x256xbf16> to vector<256x256xbf16>
    %cst_49 = arith.constant dense<0.000000e+00> : vector<16x256xf32>
    %55 = tpu.matmul %52, %54, %cst_49 {dimension_numbers = #tpu.dot_dimension_numbers<[1], [0], [0], [1], [0, 0, 1, 1], [], []>} : vector<16x256xbf16>, vector<256x256xbf16>, vector<16x256xf32> -> vector<16x256xf32>
    %56 = arith.addf %48, %55 : vector<16x256xf32>
    %c2_50 = arith.constant 2 : index
    %c0_51 = arith.constant 0 : index
    %c0_52 = arith.constant 0 : index
    %57 = vector.load %arg5[%c2_50, %c0_51, %c0_52] : memref<4x16x32xbf16, #tpu.memory_space<vmem>>, vector<1x16x32xbf16>
    %58 = vector.shape_cast %57 : vector<1x16x32xbf16> to vector<16x32xbf16>
    %cst_53 = arith.constant dense<0.000000e+00> : vector<16x256xf32>
    %59 = tpu.matmul %58, %41, %cst_53 {dimension_numbers = #tpu.dot_dimension_numbers<[1], [0], [0], [1], [0, 0, 1, 1], [], []>} : vector<16x32xbf16>, vector<32x256xbf16>, vector<16x256xf32> -> vector<16x256xf32>
    %60 = arith.truncf %59 : vector<16x256xf32> to vector<16x256xbf16>
    %c2_54 = arith.constant 2 : index
    %c0_55 = arith.constant 0 : index
    %c0_56 = arith.constant 0 : index
    %61 = vector.load %arg6[%c2_54, %c0_55, %c0_56] : memref<4x256x256xbf16, #tpu.memory_space<vmem>>, vector<1x256x256xbf16>
    %62 = vector.shape_cast %61 : vector<1x256x256xbf16> to vector<256x256xbf16>
    %cst_57 = arith.constant dense<0.000000e+00> : vector<16x256xf32>
    %63 = tpu.matmul %60, %62, %cst_57 {dimension_numbers = #tpu.dot_dimension_numbers<[1], [0], [0], [1], [0, 0, 1, 1], [], []>} : vector<16x256xbf16>, vector<256x256xbf16>, vector<16x256xf32> -> vector<16x256xf32>
    %64 = arith.addf %56, %63 : vector<16x256xf32>
    %c3_58 = arith.constant 3 : index
    %c0_59 = arith.constant 0 : index
    %c0_60 = arith.constant 0 : index
    %65 = vector.load %arg5[%c3_58, %c0_59, %c0_60] : memref<4x16x32xbf16, #tpu.memory_space<vmem>>, vector<1x16x32xbf16>
    %66 = vector.shape_cast %65 : vector<1x16x32xbf16> to vector<16x32xbf16>
    %cst_61 = arith.constant dense<0.000000e+00> : vector<16x256xf32>
    %67 = tpu.matmul %66, %41, %cst_61 {dimension_numbers = #tpu.dot_dimension_numbers<[1], [0], [0], [1], [0, 0, 1, 1], [], []>} : vector<16x32xbf16>, vector<32x256xbf16>, vector<16x256xf32> -> vector<16x256xf32>
    %68 = arith.truncf %67 : vector<16x256xf32> to vector<16x256xbf16>
    %c3_62 = arith.constant 3 : index
    %c0_63 = arith.constant 0 : index
    %c0_64 = arith.constant 0 : index
    %69 = vector.load %arg6[%c3_62, %c0_63, %c0_64] : memref<4x256x256xbf16, #tpu.memory_space<vmem>>, vector<1x256x256xbf16>
    %70 = vector.shape_cast %69 : vector<1x256x256xbf16> to vector<256x256xbf16>
    %cst_65 = arith.constant dense<0.000000e+00> : vector<16x256xf32>
    %71 = tpu.matmul %68, %70, %cst_65 {dimension_numbers = #tpu.dot_dimension_numbers<[1], [0], [0], [1], [0, 0, 1, 1], [], []>} : vector<16x256xbf16>, vector<256x256xbf16>, vector<16x256xf32> -> vector<16x256xf32>
    %72 = arith.addf %64, %71 : vector<16x256xf32>
    %c0_66 = arith.constant 0 : index
    %c0_67 = arith.constant 0 : index
    %73 = vector.load %arg7[%c0_66, %c0_67] : memref<1x256xf32, #tpu.memory_space<vmem>>, vector<1x256xf32>
    %74 = vector.broadcast %73 : vector<1x256xf32> to vector<16x256xf32>
    %75 = arith.addf %72, %74 : vector<16x256xf32>
    %76 = vector.shape_cast %75 : vector<16x256xf32> to vector<1x16x256xf32>
    %cst_68 = arith.constant dense<0.000000e+00> : vector<1xf32>
    %77 = vector.multi_reduction <add>, %76, %cst_68 [1, 2] : vector<1x16x256xf32> to vector<1xf32>
    %78 = vector.shape_cast %77 : vector<1xf32> to vector<1x1x1xf32>
    %79 = vector.extract %78[0, 0, 0] : f32 from vector<1x1x1xf32>
    %80 = vector.broadcast %79 : f32 to vector<1x1xf32>
    %cst_69 = arith.constant 4.096000e+03 : f32
    %81 = vector.broadcast %cst_69 : f32 to vector<1x1xf32>
    %82 = arith.divf %80, %81 : vector<1x1xf32>
    %83 = vector.broadcast %82 : vector<1x1xf32> to vector<16x256xf32>
    %84 = arith.subf %75, %83 : vector<16x256xf32>
    %85 = arith.mulf %84, %84 : vector<16x256xf32>
    %86 = vector.shape_cast %85 : vector<16x256xf32> to vector<1x16x256xf32>
    %cst_70 = arith.constant dense<0.000000e+00> : vector<1xf32>
    %87 = vector.multi_reduction <add>, %86, %cst_70 [1, 2] : vector<1x16x256xf32> to vector<1xf32>
    %88 = vector.shape_cast %87 : vector<1xf32> to vector<1x1x1xf32>
    %89 = vector.extract %88[0, 0, 0] : f32 from vector<1x1x1xf32>
    %90 = vector.broadcast %89 : f32 to vector<1x1xf32>
    %cst_71 = arith.constant 4.096000e+03 : f32
    %91 = vector.broadcast %cst_71 : f32 to vector<1x1xf32>
    %92 = arith.divf %90, %91 : vector<1x1xf32>
    %cst_72 = arith.constant 9.99999974E-6 : f32
    %93 = vector.broadcast %cst_72 : f32 to vector<1x1xf32>
    %94 = arith.addf %92, %93 : vector<1x1xf32>
    %95 = math.rsqrt %94 : vector<1x1xf32>
    %96 = vector.broadcast %95 : vector<1x1xf32> to vector<16x256xf32>
    %97 = arith.mulf %84, %96 : vector<16x256xf32>
    %c0_73 = arith.constant 0 : index
    %c0_74 = arith.constant 0 : index
    %98 = vector.load %arg8[%c0_73, %c0_74] : memref<16x256xf32, #tpu.memory_space<vmem>>, vector<16x256xf32>
    %99 = arith.mulf %97, %98 : vector<16x256xf32>
    %c0_75 = arith.constant 0 : index
    %c0_76 = arith.constant 0 : index
    %100 = vector.load %arg9[%c0_75, %c0_76] : memref<16x256xf32, #tpu.memory_space<vmem>>, vector<16x256xf32>
    %101 = arith.addf %99, %100 : vector<16x256xf32>
    %cst_77 = arith.constant 0.000000e+00 : f32
    %102 = vector.broadcast %cst_77 : f32 to vector<16x256xf32>
    %103 = arith.cmpf ogt, %101, %102 : vector<16x256xf32>
    %cst_78 = arith.constant 2.000000e-01 : f32
    %104 = vector.broadcast %cst_78 : f32 to vector<16x256xf32>
    %105 = arith.mulf %104, %101 : vector<16x256xf32>
    %106 = arith.select %103, %101, %105 : vector<16x256xi1>, vector<16x256xf32>
    %107 = arith.truncf %106 : vector<16x256xf32> to vector<16x256xbf16>
    %c0_79 = arith.constant 0 : index
    %c0_80 = arith.constant 0 : index
    %c0_81 = arith.constant 0 : index
    %108 = vector.load %arg10[%c0_79, %c0_80, %c0_81] : memref<4x8x16xbf16, #tpu.memory_space<vmem>>, vector<1x8x16xbf16>
    %109 = vector.shape_cast %108 : vector<1x8x16xbf16> to vector<8x16xbf16>
    %cst_82 = arith.constant dense<0.000000e+00> : vector<8x256xf32>
    %110 = tpu.matmul %109, %107, %cst_82 {dimension_numbers = #tpu.dot_dimension_numbers<[1], [0], [0], [1], [0, 0, 1, 1], [], []>} : vector<8x16xbf16>, vector<16x256xbf16>, vector<8x256xf32> -> vector<8x256xf32>
    %111 = arith.truncf %110 : vector<8x256xf32> to vector<8x256xbf16>
    %c0_83 = arith.constant 0 : index
    %c0_84 = arith.constant 0 : index
    %c0_85 = arith.constant 0 : index
    %112 = vector.load %arg11[%c0_83, %c0_84, %c0_85] : memref<4x256x256xbf16, #tpu.memory_space<vmem>>, vector<1x256x256xbf16>
    %113 = vector.shape_cast %112 : vector<1x256x256xbf16> to vector<256x256xbf16>
    %cst_86 = arith.constant dense<0.000000e+00> : vector<8x256xf32>
    %114 = tpu.matmul %111, %113, %cst_86 {dimension_numbers = #tpu.dot_dimension_numbers<[1], [0], [0], [1], [0, 0, 1, 1], [], []>} : vector<8x256xbf16>, vector<256x256xbf16>, vector<8x256xf32> -> vector<8x256xf32>
    %c1_87 = arith.constant 1 : index
    %c0_88 = arith.constant 0 : index
    %c0_89 = arith.constant 0 : index
    %115 = vector.load %arg10[%c1_87, %c0_88, %c0_89] : memref<4x8x16xbf16, #tpu.memory_space<vmem>>, vector<1x8x16xbf16>
    %116 = vector.shape_cast %115 : vector<1x8x16xbf16> to vector<8x16xbf16>
    %cst_90 = arith.constant dense<0.000000e+00> : vector<8x256xf32>
    %117 = tpu.matmul %116, %107, %cst_90 {dimension_numbers = #tpu.dot_dimension_numbers<[1], [0], [0], [1], [0, 0, 1, 1], [], []>} : vector<8x16xbf16>, vector<16x256xbf16>, vector<8x256xf32> -> vector<8x256xf32>
    %118 = arith.truncf %117 : vector<8x256xf32> to vector<8x256xbf16>
    %c1_91 = arith.constant 1 : index
    %c0_92 = arith.constant 0 : index
    %c0_93 = arith.constant 0 : index
    %119 = vector.load %arg11[%c1_91, %c0_92, %c0_93] : memref<4x256x256xbf16, #tpu.memory_space<vmem>>, vector<1x256x256xbf16>
    %120 = vector.shape_cast %119 : vector<1x256x256xbf16> to vector<256x256xbf16>
    %cst_94 = arith.constant dense<0.000000e+00> : vector<8x256xf32>
    %121 = tpu.matmul %118, %120, %cst_94 {dimension_numbers = #tpu.dot_dimension_numbers<[1], [0], [0], [1], [0, 0, 1, 1], [], []>} : vector<8x256xbf16>, vector<256x256xbf16>, vector<8x256xf32> -> vector<8x256xf32>
    %122 = arith.addf %114, %121 : vector<8x256xf32>
    %c2_95 = arith.constant 2 : index
    %c0_96 = arith.constant 0 : index
    %c0_97 = arith.constant 0 : index
    %123 = vector.load %arg10[%c2_95, %c0_96, %c0_97] : memref<4x8x16xbf16, #tpu.memory_space<vmem>>, vector<1x8x16xbf16>
    %124 = vector.shape_cast %123 : vector<1x8x16xbf16> to vector<8x16xbf16>
    %cst_98 = arith.constant dense<0.000000e+00> : vector<8x256xf32>
    %125 = tpu.matmul %124, %107, %cst_98 {dimension_numbers = #tpu.dot_dimension_numbers<[1], [0], [0], [1], [0, 0, 1, 1], [], []>} : vector<8x16xbf16>, vector<16x256xbf16>, vector<8x256xf32> -> vector<8x256xf32>
    %126 = arith.truncf %125 : vector<8x256xf32> to vector<8x256xbf16>
    %c2_99 = arith.constant 2 : index
    %c0_100 = arith.constant 0 : index
    %c0_101 = arith.constant 0 : index
    %127 = vector.load %arg11[%c2_99, %c0_100, %c0_101] : memref<4x256x256xbf16, #tpu.memory_space<vmem>>, vector<1x256x256xbf16>
    %128 = vector.shape_cast %127 : vector<1x256x256xbf16> to vector<256x256xbf16>
    %cst_102 = arith.constant dense<0.000000e+00> : vector<8x256xf32>
    %129 = tpu.matmul %126, %128, %cst_102 {dimension_numbers = #tpu.dot_dimension_numbers<[1], [0], [0], [1], [0, 0, 1, 1], [], []>} : vector<8x256xbf16>, vector<256x256xbf16>, vector<8x256xf32> -> vector<8x256xf32>
    %130 = arith.addf %122, %129 : vector<8x256xf32>
    %c3_103 = arith.constant 3 : index
    %c0_104 = arith.constant 0 : index
    %c0_105 = arith.constant 0 : index
    %131 = vector.load %arg10[%c3_103, %c0_104, %c0_105] : memref<4x8x16xbf16, #tpu.memory_space<vmem>>, vector<1x8x16xbf16>
    %132 = vector.shape_cast %131 : vector<1x8x16xbf16> to vector<8x16xbf16>
    %cst_106 = arith.constant dense<0.000000e+00> : vector<8x256xf32>
    %133 = tpu.matmul %132, %107, %cst_106 {dimension_numbers = #tpu.dot_dimension_numbers<[1], [0], [0], [1], [0, 0, 1, 1], [], []>} : vector<8x16xbf16>, vector<16x256xbf16>, vector<8x256xf32> -> vector<8x256xf32>
    %134 = arith.truncf %133 : vector<8x256xf32> to vector<8x256xbf16>
    %c3_107 = arith.constant 3 : index
    %c0_108 = arith.constant 0 : index
    %c0_109 = arith.constant 0 : index
    %135 = vector.load %arg11[%c3_107, %c0_108, %c0_109] : memref<4x256x256xbf16, #tpu.memory_space<vmem>>, vector<1x256x256xbf16>
    %136 = vector.shape_cast %135 : vector<1x256x256xbf16> to vector<256x256xbf16>
    %cst_110 = arith.constant dense<0.000000e+00> : vector<8x256xf32>
    %137 = tpu.matmul %134, %136, %cst_110 {dimension_numbers = #tpu.dot_dimension_numbers<[1], [0], [0], [1], [0, 0, 1, 1], [], []>} : vector<8x256xbf16>, vector<256x256xbf16>, vector<8x256xf32> -> vector<8x256xf32>
    %138 = arith.addf %130, %137 : vector<8x256xf32>
    %c0_111 = arith.constant 0 : index
    %c0_112 = arith.constant 0 : index
    %139 = vector.load %arg12[%c0_111, %c0_112] : memref<1x256xf32, #tpu.memory_space<vmem>>, vector<1x256xf32>
    %140 = vector.broadcast %139 : vector<1x256xf32> to vector<8x256xf32>
    %141 = arith.addf %138, %140 : vector<8x256xf32>
    %142 = vector.shape_cast %141 : vector<8x256xf32> to vector<1x8x256xf32>
    %cst_113 = arith.constant dense<0.000000e+00> : vector<1xf32>
    %143 = vector.multi_reduction <add>, %142, %cst_113 [1, 2] : vector<1x8x256xf32> to vector<1xf32>
    %144 = vector.shape_cast %143 : vector<1xf32> to vector<1x1x1xf32>
    %145 = vector.extract %144[0, 0, 0] : f32 from vector<1x1x1xf32>
    %146 = vector.broadcast %145 : f32 to vector<1x1xf32>
    %cst_114 = arith.constant 2.048000e+03 : f32
    %147 = vector.broadcast %cst_114 : f32 to vector<1x1xf32>
    %148 = arith.divf %146, %147 : vector<1x1xf32>
    %149 = vector.broadcast %148 : vector<1x1xf32> to vector<8x256xf32>
    %150 = arith.subf %141, %149 : vector<8x256xf32>
    %151 = arith.mulf %150, %150 : vector<8x256xf32>
    %152 = vector.shape_cast %151 : vector<8x256xf32> to vector<1x8x256xf32>
    %cst_115 = arith.constant dense<0.000000e+00> : vector<1xf32>
    %153 = vector.multi_reduction <add>, %152, %cst_115 [1, 2] : vector<1x8x256xf32> to vector<1xf32>
    %154 = vector.shape_cast %153 : vector<1xf32> to vector<1x1x1xf32>
    %155 = vector.extract %154[0, 0, 0] : f32 from vector<1x1x1xf32>
    %156 = vector.broadcast %155 : f32 to vector<1x1xf32>
    %cst_116 = arith.constant 2.048000e+03 : f32
    %157 = vector.broadcast %cst_116 : f32 to vector<1x1xf32>
    %158 = arith.divf %156, %157 : vector<1x1xf32>
    %cst_117 = arith.constant 9.99999974E-6 : f32
    %159 = vector.broadcast %cst_117 : f32 to vector<1x1xf32>
    %160 = arith.addf %158, %159 : vector<1x1xf32>
    %161 = math.rsqrt %160 : vector<1x1xf32>
    %162 = vector.broadcast %161 : vector<1x1xf32> to vector<8x256xf32>
    %163 = arith.mulf %150, %162 : vector<8x256xf32>
    %c0_118 = arith.constant 0 : index
    %c0_119 = arith.constant 0 : index
    %164 = vector.load %arg13[%c0_118, %c0_119] : memref<8x256xf32, #tpu.memory_space<vmem>>, vector<8x256xf32>
    %165 = arith.mulf %163, %164 : vector<8x256xf32>
    %c0_120 = arith.constant 0 : index
    %c0_121 = arith.constant 0 : index
    %166 = vector.load %arg14[%c0_120, %c0_121] : memref<8x256xf32, #tpu.memory_space<vmem>>, vector<8x256xf32>
    %167 = arith.addf %165, %166 : vector<8x256xf32>
    %cst_122 = arith.constant 0.000000e+00 : f32
    %168 = vector.broadcast %cst_122 : f32 to vector<8x256xf32>
    %169 = arith.cmpf ogt, %167, %168 : vector<8x256xf32>
    %cst_123 = arith.constant 2.000000e-01 : f32
    %170 = vector.broadcast %cst_123 : f32 to vector<8x256xf32>
    %171 = arith.mulf %170, %167 : vector<8x256xf32>
    %172 = arith.select %169, %167, %171 : vector<8x256xi1>, vector<8x256xf32>
    %173 = arith.truncf %172 : vector<8x256xf32> to vector<8x256xbf16>
    %c0_124 = arith.constant 0 : index
    %c0_125 = arith.constant 0 : index
    %c0_126 = arith.constant 0 : index
    %174 = vector.load %arg15[%c0_124, %c0_125, %c0_126] : memref<4x4x8xbf16, #tpu.memory_space<vmem>>, vector<1x4x8xbf16>
    %175 = vector.shape_cast %174 : vector<1x4x8xbf16> to vector<4x8xbf16>
    %cst_127 = arith.constant dense<0.000000e+00> : vector<4x256xf32>
    %176 = tpu.matmul %175, %173, %cst_127 {dimension_numbers = #tpu.dot_dimension_numbers<[1], [0], [0], [1], [0, 0, 1, 1], [], []>} : vector<4x8xbf16>, vector<8x256xbf16>, vector<4x256xf32> -> vector<4x256xf32>
    %177 = arith.truncf %176 : vector<4x256xf32> to vector<4x256xbf16>
    %c0_128 = arith.constant 0 : index
    %c0_129 = arith.constant 0 : index
    %c0_130 = arith.constant 0 : index
    %178 = vector.load %arg16[%c0_128, %c0_129, %c0_130] : memref<4x256x256xbf16, #tpu.memory_space<vmem>>, vector<1x256x256xbf16>
    %179 = vector.shape_cast %178 : vector<1x256x256xbf16> to vector<256x256xbf16>
    %cst_131 = arith.constant dense<0.000000e+00> : vector<4x256xf32>
    %180 = tpu.matmul %177, %179, %cst_131 {dimension_numbers = #tpu.dot_dimension_numbers<[1], [0], [0], [1], [0, 0, 1, 1], [], []>} : vector<4x256xbf16>, vector<256x256xbf16>, vector<4x256xf32> -> vector<4x256xf32>
    %c1_132 = arith.constant 1 : index
    %c0_133 = arith.constant 0 : index
    %c0_134 = arith.constant 0 : index
    %181 = vector.load %arg15[%c1_132, %c0_133, %c0_134] : memref<4x4x8xbf16, #tpu.memory_space<vmem>>, vector<1x4x8xbf16>
    %182 = vector.shape_cast %181 : vector<1x4x8xbf16> to vector<4x8xbf16>
    %cst_135 = arith.constant dense<0.000000e+00> : vector<4x256xf32>
    %183 = tpu.matmul %182, %173, %cst_135 {dimension_numbers = #tpu.dot_dimension_numbers<[1], [0], [0], [1], [0, 0, 1, 1], [], []>} : vector<4x8xbf16>, vector<8x256xbf16>, vector<4x256xf32> -> vector<4x256xf32>
    %184 = arith.truncf %183 : vector<4x256xf32> to vector<4x256xbf16>
    %c1_136 = arith.constant 1 : index
    %c0_137 = arith.constant 0 : index
    %c0_138 = arith.constant 0 : index
    %185 = vector.load %arg16[%c1_136, %c0_137, %c0_138] : memref<4x256x256xbf16, #tpu.memory_space<vmem>>, vector<1x256x256xbf16>
    %186 = vector.shape_cast %185 : vector<1x256x256xbf16> to vector<256x256xbf16>
    %cst_139 = arith.constant dense<0.000000e+00> : vector<4x256xf32>
    %187 = tpu.matmul %184, %186, %cst_139 {dimension_numbers = #tpu.dot_dimension_numbers<[1], [0], [0], [1], [0, 0, 1, 1], [], []>} : vector<4x256xbf16>, vector<256x256xbf16>, vector<4x256xf32> -> vector<4x256xf32>
    %188 = arith.addf %180, %187 : vector<4x256xf32>
    %c2_140 = arith.constant 2 : index
    %c0_141 = arith.constant 0 : index
    %c0_142 = arith.constant 0 : index
    %189 = vector.load %arg15[%c2_140, %c0_141, %c0_142] : memref<4x4x8xbf16, #tpu.memory_space<vmem>>, vector<1x4x8xbf16>
    %190 = vector.shape_cast %189 : vector<1x4x8xbf16> to vector<4x8xbf16>
    %cst_143 = arith.constant dense<0.000000e+00> : vector<4x256xf32>
    %191 = tpu.matmul %190, %173, %cst_143 {dimension_numbers = #tpu.dot_dimension_numbers<[1], [0], [0], [1], [0, 0, 1, 1], [], []>} : vector<4x8xbf16>, vector<8x256xbf16>, vector<4x256xf32> -> vector<4x256xf32>
    %192 = arith.truncf %191 : vector<4x256xf32> to vector<4x256xbf16>
    %c2_144 = arith.constant 2 : index
    %c0_145 = arith.constant 0 : index
    %c0_146 = arith.constant 0 : index
    %193 = vector.load %arg16[%c2_144, %c0_145, %c0_146] : memref<4x256x256xbf16, #tpu.memory_space<vmem>>, vector<1x256x256xbf16>
    %194 = vector.shape_cast %193 : vector<1x256x256xbf16> to vector<256x256xbf16>
    %cst_147 = arith.constant dense<0.000000e+00> : vector<4x256xf32>
    %195 = tpu.matmul %192, %194, %cst_147 {dimension_numbers = #tpu.dot_dimension_numbers<[1], [0], [0], [1], [0, 0, 1, 1], [], []>} : vector<4x256xbf16>, vector<256x256xbf16>, vector<4x256xf32> -> vector<4x256xf32>
    %196 = arith.addf %188, %195 : vector<4x256xf32>
    %c3_148 = arith.constant 3 : index
    %c0_149 = arith.constant 0 : index
    %c0_150 = arith.constant 0 : index
    %197 = vector.load %arg15[%c3_148, %c0_149, %c0_150] : memref<4x4x8xbf16, #tpu.memory_space<vmem>>, vector<1x4x8xbf16>
    %198 = vector.shape_cast %197 : vector<1x4x8xbf16> to vector<4x8xbf16>
    %cst_151 = arith.constant dense<0.000000e+00> : vector<4x256xf32>
    %199 = tpu.matmul %198, %173, %cst_151 {dimension_numbers = #tpu.dot_dimension_numbers<[1], [0], [0], [1], [0, 0, 1, 1], [], []>} : vector<4x8xbf16>, vector<8x256xbf16>, vector<4x256xf32> -> vector<4x256xf32>
    %200 = arith.truncf %199 : vector<4x256xf32> to vector<4x256xbf16>
    %c3_152 = arith.constant 3 : index
    %c0_153 = arith.constant 0 : index
    %c0_154 = arith.constant 0 : index
    %201 = vector.load %arg16[%c3_152, %c0_153, %c0_154] : memref<4x256x256xbf16, #tpu.memory_space<vmem>>, vector<1x256x256xbf16>
    %202 = vector.shape_cast %201 : vector<1x256x256xbf16> to vector<256x256xbf16>
    %cst_155 = arith.constant dense<0.000000e+00> : vector<4x256xf32>
    %203 = tpu.matmul %200, %202, %cst_155 {dimension_numbers = #tpu.dot_dimension_numbers<[1], [0], [0], [1], [0, 0, 1, 1], [], []>} : vector<4x256xbf16>, vector<256x256xbf16>, vector<4x256xf32> -> vector<4x256xf32>
    %204 = arith.addf %196, %203 : vector<4x256xf32>
    %c0_156 = arith.constant 0 : index
    %c0_157 = arith.constant 0 : index
    %205 = vector.load %arg17[%c0_156, %c0_157] : memref<1x256xf32, #tpu.memory_space<vmem>>, vector<1x256xf32>
    %206 = vector.broadcast %205 : vector<1x256xf32> to vector<4x256xf32>
    %207 = arith.addf %204, %206 : vector<4x256xf32>
    %208 = vector.shape_cast %207 : vector<4x256xf32> to vector<1x4x256xf32>
    %cst_158 = arith.constant dense<0.000000e+00> : vector<1xf32>
    %209 = vector.multi_reduction <add>, %208, %cst_158 [1, 2] : vector<1x4x256xf32> to vector<1xf32>
    %210 = vector.shape_cast %209 : vector<1xf32> to vector<1x1x1xf32>
    %211 = vector.extract %210[0, 0, 0] : f32 from vector<1x1x1xf32>
    %212 = vector.broadcast %211 : f32 to vector<1x1xf32>
    %cst_159 = arith.constant 1.024000e+03 : f32
    %213 = vector.broadcast %cst_159 : f32 to vector<1x1xf32>
    %214 = arith.divf %212, %213 : vector<1x1xf32>
    %215 = vector.broadcast %214 : vector<1x1xf32> to vector<4x256xf32>
    %216 = arith.subf %207, %215 : vector<4x256xf32>
    %217 = arith.mulf %216, %216 : vector<4x256xf32>
    %218 = vector.shape_cast %217 : vector<4x256xf32> to vector<1x4x256xf32>
    %cst_160 = arith.constant dense<0.000000e+00> : vector<1xf32>
    %219 = vector.multi_reduction <add>, %218, %cst_160 [1, 2] : vector<1x4x256xf32> to vector<1xf32>
    %220 = vector.shape_cast %219 : vector<1xf32> to vector<1x1x1xf32>
    %221 = vector.extract %220[0, 0, 0] : f32 from vector<1x1x1xf32>
    %222 = vector.broadcast %221 : f32 to vector<1x1xf32>
    %cst_161 = arith.constant 1.024000e+03 : f32
    %223 = vector.broadcast %cst_161 : f32 to vector<1x1xf32>
    %224 = arith.divf %222, %223 : vector<1x1xf32>
    %cst_162 = arith.constant 9.99999974E-6 : f32
    %225 = vector.broadcast %cst_162 : f32 to vector<1x1xf32>
    %226 = arith.addf %224, %225 : vector<1x1xf32>
    %227 = math.rsqrt %226 : vector<1x1xf32>
    %228 = vector.broadcast %227 : vector<1x1xf32> to vector<4x256xf32>
    %229 = arith.mulf %216, %228 : vector<4x256xf32>
    %c0_163 = arith.constant 0 : index
    %c0_164 = arith.constant 0 : index
    %230 = vector.load %arg18[%c0_163, %c0_164] : memref<4x256xf32, #tpu.memory_space<vmem>>, vector<4x256xf32>
    %231 = arith.mulf %229, %230 : vector<4x256xf32>
    %c0_165 = arith.constant 0 : index
    %c0_166 = arith.constant 0 : index
    %232 = vector.load %arg19[%c0_165, %c0_166] : memref<4x256xf32, #tpu.memory_space<vmem>>, vector<4x256xf32>
    %233 = arith.addf %231, %232 : vector<4x256xf32>
    %cst_167 = arith.constant 0.000000e+00 : f32
    %234 = vector.broadcast %cst_167 : f32 to vector<4x256xf32>
    %235 = arith.cmpf ogt, %233, %234 : vector<4x256xf32>
    %cst_168 = arith.constant 2.000000e-01 : f32
    %236 = vector.broadcast %cst_168 : f32 to vector<4x256xf32>
    %237 = arith.mulf %236, %233 : vector<4x256xf32>
    %238 = arith.select %235, %233, %237 : vector<4x256xi1>, vector<4x256xf32>
    %c0_169 = arith.constant 0 : index
    %c0_170 = arith.constant 0 : index
    %239 = vector.load %arg20[%c0_169, %c0_170] : memref<4x256xf32, #tpu.memory_space<vmem>>, vector<4x256xf32>
    %240 = arith.mulf %238, %239 : vector<4x256xf32>
    %241 = vector.shape_cast %240 : vector<4x256xf32> to vector<1x4x256xf32>
    %cst_171 = arith.constant dense<0.000000e+00> : vector<1xf32>
    %242 = vector.multi_reduction <add>, %241, %cst_171 [1, 2] : vector<1x4x256xf32> to vector<1xf32>
    %243 = vector.shape_cast %242 : vector<1xf32> to vector<1x1x1xf32>
    %244 = vector.extract %243[0, 0, 0] : f32 from vector<1x1x1xf32>
    %245 = vector.broadcast %244 : f32 to vector<1x1xf32>
    %c0_172 = arith.constant 0 : index
    %c0_173 = arith.constant 0 : index
    %246 = vector.load %arg21[%c0_172, %c0_173] : memref<1x1xf32, #tpu.memory_space<vmem>>, vector<1x1xf32>
    %247 = arith.addf %245, %246 : vector<1x1xf32>
    %c0_174 = arith.constant 0 : index
    %c0_175 = arith.constant 0 : index
    %c0_176 = arith.constant 0 : index
    %248 = vector.load %arg22[%c0_174, %c0_175, %c0_176] : memref<1x1x1xf32, #tpu.memory_space<vmem>>, vector<1x1x1xf32>
    %249 = vector.shape_cast %248 : vector<1x1x1xf32> to vector<1x1xf32>
    %250 = vector.shape_cast %247 : vector<1x1xf32> to vector<1x1x1xf32>
    tpu.vector_store %arg22[%c0_174, %c0_175, %c0_176], %250 {strides = array<i32>} : memref<1x1x1xf32, #tpu.memory_space<vmem>>, vector<1x1x1xf32>,
    return
  }
  func.func @transform_0(%arg0: i32) -> (i32, i32, i32) {
    %c0_i32 = arith.constant 0 : i32
    %c0_i32_0 = arith.constant 0 : i32
    %c0_i32_1 = arith.constant 0 : i32
    return %arg0, %c0_i32, %c0_i32_0 : i32, i32, i32
  }
  func.func @transform_1(%arg0: i32) -> (i32, i32, i32) {
    %c0_i32 = arith.constant 0 : i32
    %c0_i32_0 = arith.constant 0 : i32
    %c0_i32_1 = arith.constant 0 : i32
    %c0_i32_2 = arith.constant 0 : i32
    return %c0_i32, %c0_i32_0, %c0_i32_1 : i32, i32, i32
  }
  func.func @transform_2(%arg0: i32) -> (i32, i32, i32) {
    %c0_i32 = arith.constant 0 : i32
    %c0_i32_0 = arith.constant 0 : i32
    %c0_i32_1 = arith.constant 0 : i32
    %c0_i32_2 = arith.constant 0 : i32
    return %c0_i32, %c0_i32_0, %c0_i32_1 : i32, i32, i32
  }
  func.func @transform_3(%arg0: i32) -> (i32, i32) {
    %c0_i32 = arith.constant 0 : i32
    %c0_i32_0 = arith.constant 0 : i32
    %c0_i32_1 = arith.constant 0 : i32
    return %c0_i32, %c0_i32_0 : i32, i32
  }
  func.func @transform_4(%arg0: i32) -> (i32, i32, i32) {
    %c0_i32 = arith.constant 0 : i32
    %c0_i32_0 = arith.constant 0 : i32
    %c0_i32_1 = arith.constant 0 : i32
    %c0_i32_2 = arith.constant 0 : i32
    return %c0_i32, %c0_i32_0, %c0_i32_1 : i32, i32, i32
  }
  func.func @transform_5(%arg0: i32) -> (i32, i32, i32) {
    %c0_i32 = arith.constant 0 : i32
    %c0_i32_0 = arith.constant 0 : i32
    %c0_i32_1 = arith.constant 0 : i32
    %c0_i32_2 = arith.constant 0 : i32
    return %c0_i32, %c0_i32_0, %c0_i32_1 : i32, i32, i32
  }
  func.func @transform_6(%arg0: i32) -> (i32, i32) {
    %c0_i32 = arith.constant 0 : i32
    %c0_i32_0 = arith.constant 0 : i32
    %c0_i32_1 = arith.constant 0 : i32
    return %c0_i32, %c0_i32_0 : i32, i32
  }
  func.func @transform_7(%arg0: i32) -> (i32, i32) {
    %c0_i32 = arith.constant 0 : i32
    %c0_i32_0 = arith.constant 0 : i32
    %c0_i32_1 = arith.constant 0 : i32
    return %c0_i32, %c0_i32_0 : i32, i32
  }
  func.func @transform_8(%arg0: i32) -> (i32, i32) {
    %c0_i32 = arith.constant 0 : i32
    %c0_i32_0 = arith.constant 0 : i32
    %c0_i32_1 = arith.constant 0 : i32
    return %c0_i32, %c0_i32_0 : i32, i32
  }
  func.func @transform_9(%arg0: i32) -> (i32, i32, i32) {
    %c0_i32 = arith.constant 0 : i32
    %c0_i32_0 = arith.constant 0 : i32
    %c0_i32_1 = arith.constant 0 : i32
    %c0_i32_2 = arith.constant 0 : i32
    return %c0_i32, %c0_i32_0, %c0_i32_1 : i32, i32, i32
  }
  func.func @transform_10(%arg0: i32) -> (i32, i32, i32) {
    %c0_i32 = arith.constant 0 : i32
    %c0_i32_0 = arith.constant 0 : i32
    %c0_i32_1 = arith.constant 0 : i32
    %c0_i32_2 = arith.constant 0 : i32
    return %c0_i32, %c0_i32_0, %c0_i32_1 : i32, i32, i32
  }
  func.func @transform_11(%arg0: i32) -> (i32, i32) {
    %c0_i32 = arith.constant 0 : i32
    %c0_i32_0 = arith.constant 0 : i32
    %c0_i32_1 = arith.constant 0 : i32
    return %c0_i32, %c0_i32_0 : i32, i32
  }
  func.func @transform_12(%arg0: i32) -> (i32, i32) {
    %c0_i32 = arith.constant 0 : i32
    %c0_i32_0 = arith.constant 0 : i32
    %c0_i32_1 = arith.constant 0 : i32
    return %c0_i32, %c0_i32_0 : i32, i32
  }
  func.func @transform_13(%arg0: i32) -> (i32, i32) {
    %c0_i32 = arith.constant 0 : i32
    %c0_i32_0 = arith.constant 0 : i32
    %c0_i32_1 = arith.constant 0 : i32
    return %c0_i32, %c0_i32_0 : i32, i32
  }
  func.func @transform_14(%arg0: i32) -> (i32, i32, i32) {
    %c0_i32 = arith.constant 0 : i32
    %c0_i32_0 = arith.constant 0 : i32
    %c0_i32_1 = arith.constant 0 : i32
    %c0_i32_2 = arith.constant 0 : i32
    return %c0_i32, %c0_i32_0, %c0_i32_1 : i32, i32, i32
  }
  func.func @transform_15(%arg0: i32) -> (i32, i32, i32) {
    %c0_i32 = arith.constant 0 : i32
    %c0_i32_0 = arith.constant 0 : i32
    %c0_i32_1 = arith.constant 0 : i32
    %c0_i32_2 = arith.constant 0 : i32
    return %c0_i32, %c0_i32_0, %c0_i32_1 : i32, i32, i32
  }
  func.func @transform_16(%arg0: i32) -> (i32, i32) {
    %c0_i32 = arith.constant 0 : i32
    %c0_i32_0 = arith.constant 0 : i32
    %c0_i32_1 = arith.constant 0 : i32
    return %c0_i32, %c0_i32_0 : i32, i32
  }
  func.func @transform_17(%arg0: i32) -> (i32, i32) {
    %c0_i32 = arith.constant 0 : i32
    %c0_i32_0 = arith.constant 0 : i32
    %c0_i32_1 = arith.constant 0 : i32
    return %c0_i32, %c0_i32_0 : i32, i32
  }
  func.func @transform_18(%arg0: i32) -> (i32, i32) {
    %c0_i32 = arith.constant 0 : i32
    %c0_i32_0 = arith.constant 0 : i32
    %c0_i32_1 = arith.constant 0 : i32
    return %c0_i32, %c0_i32_0 : i32, i32
  }
  func.func @transform_19(%arg0: i32) -> (i32, i32) {
    %c0_i32 = arith.constant 0 : i32
    %c0_i32_0 = arith.constant 0 : i32
    %c0_i32_1 = arith.constant 0 : i32
    return %c0_i32, %c0_i32_0 : i32, i32
  }
  func.func @transform_20(%arg0: i32) -> (i32, i32) {
    %c0_i32 = arith.constant 0 : i32
    %c0_i32_0 = arith.constant 0 : i32
    %c0_i32_1 = arith.constant 0 : i32
    return %c0_i32, %c0_i32_0 : i32, i32
  }
  func.func @transform_21(%arg0: i32) -> (i32, i32, i32) {
    %c0_i32 = arith.constant 0 : i32
    %c0_i32_0 = arith.constant 0 : i32
    %c0_i32_1 = arith.constant 0 : i32
    return %arg0, %c0_i32, %c0_i32_0 : i32, i32, i32
  }
}

</mosaic_0001>

<bundles_post_ra>
// kernel: discriminator_forward.1
= control target key start
LH: loop header
LB: loop body
LE: loop exit
PB: predicated region body
PF: predicated region fallthrough
CT: control target
= control target key end

     0   :  { %s7490_s26 = smov 0   ;;  %s9351_s0 = inlined_call_operand.vmem [shape: bf16[2,64,192], index: 0, kind: input, shape index: {}]   ;;  %s9352_s1 = inlined_call_operand.vmem [shape: bf16[4,32,64], index: 1, kind: input, shape index: {}]   ;;  %s9353_s2 = inlined_call_operand.vmem [shape: bf16[4,192,256], index: 2, kind: input, shape index: {}]   ;;  %s9354_s3 = inlined_call_operand.vmem [shape: f32[1,256], index: 3, kind: input, shape index: {}]   ;;  %s9355_s4 = inlined_call_operand.vmem [shape: bf16[4,16,32], index: 4, kind: input, shape index: {}]   ;;  %s9356_s5 = inlined_call_operand.vmem [shape: bf16[4,256,256], index: 5, kind: input, shape index: {}]   ;;  %s9357_s6 = inlined_call_operand.vmem [shape: f32[1,256], index: 6, kind: input, shape index: {}]   ;;  %s9358_s7 = inlined_call_operand.vmem [shape: f32[16,256], index: 7, kind: input, shape index: {}]   ;;  %s9359_s8 = inlined_call_operand.vmem [shape: f32[16,256], index: 8, kind: input, shape index: {}]   ;;  %s9360_s9 = inlined_call_operand.vmem [shape: bf16[4,8,16], index: 9, kind: input, shape index: {}]   ;;  %s9361_s10 = inlined_call_operand.vmem [shape: bf16[4,256,256], index: 10, kind: input, shape index: {}]   ;;  %s9362_s11 = inlined_call_operand.vmem [shape: f32[1,256], index: 11, kind: input, shape index: {}]   ;;  %s9363_s12 = inlined_call_operand.vmem [shape: f32[8,256], index: 12, kind: input, shape index: {}]   ;;  %s9364_s13 = inlined_call_operand.vmem [shape: f32[8,256], index: 13, kind: input, shape index: {}]   ;;  %s9365_s14 = inlined_call_operand.vmem [shape: bf16[4,4,8], index: 14, kind: input, shape index: {}]   ;;  %s9366_s15 = inlined_call_operand.vmem [shape: bf16[4,256,256], index: 15, kind: input, shape index: {}]   ;;  %s9367_s16 = inlined_call_operand.vmem [shape: f32[1,256], index: 16, kind: input, shape index: {}]   ;;  %s9368_s17 = inlined_call_operand.vmem [shape: f32[4,256], index: 17, kind: input, shape index: {}]   ;;  %s9369_s18 = inlined_call_operand.vmem [shape: f32[4,256], index: 18, kind: input, shape index: {}]   ;;  %s9370_s19 = inlined_call_operand.vmem [shape: f32[4,256], index: 19, kind: input, shape index: {}]   ;;  %s9371_s20 = inlined_call_operand.<no memory space> [shape: f32[1,1], index: 20, kind: input, shape index: {}]   ;;  %s9372_s21 = inlined_call_operand.vmem [shape: f32[2,1,1], index: 21, kind: output, shape index: {}]  }
   0x1   :  { %9377 = sst [smem:[#allocation3_spill]] %s9351_s0  ;;  %v26_v0 = vstv %s9371_s20 }
   0x2   :  { %9378 = sst [smem:[#allocation4_spill]] %s9352_s1  ;;  %27 = vst [vmem:[#allocation2] sm:$0x1] %v26_v0 }
   0x3   :  { %9379 = sst [smem:[#allocation5_spill]] %s9353_s2 }
   0x4   :  { %9380 = sst [smem:[#allocation6_spill]] %s9354_s3 }
   0x5   :  { %9381 = sst [smem:[#allocation7_spill]] %s9355_s4 }
   0x6   :  { %9382 = sst [smem:[#allocation8_spill]] %s9356_s5 }
   0x7 LB: > { %s5630_s27 = sadd.s32 4294967295, %s7374_s26   ;;  %p5634_p0 = scmp.ge.s32.totalorder %s7374_s26, 1  ;;  %s7374_s26 = sphi %s7490_s26, %s33_s26  }
   0x8   : > { %p589_p1 = scmp.lt.s32.totalorder %s7374_s26, 3 }
   0xa   : > { %p590_p2 = pnand %p5634_p0, %p589_p1 }
   0xb   : > { %p647_p3 = scmp.lt.s32.totalorder (!%p590_p2), %s5630_s27, 1  ;;  %v7376_v1 = vmov (!%p590_p2), 0   ;;  %s9383_s29 = sld [smem:[#allocation3_spill]] (!%p590_p2)  ;;  %vm718_vm0 = vcmask (!%p590_p2), 523264   ;;  %vm1902_vm9 = vcmask (!%p590_p2), 261120   ;;  %vm3160_vm14 = vcmask (!%p590_p2), 130048  }
   0xc   : > { %593 = sbr.rel (%p590_p2) target bundleno = 4555 (0x11cb), region = 104  ;;  %859 = vmatprep.mubr.bf16.mxu1 (!%p590_p2), %v7376_v1  ;;  %757 = vmatprep.mubr.bf16.mxu0 (!%p590_p2), %v7376_v1  ;;  %s9384_s5 = sld [smem:[#allocation5_spill]] (!%p590_p2) }
   0xd   : > { %s9385_s1 = sld [smem:[#allocation4_spill]] (!%p590_p2)  ;;  %s9386_s25 = sld [smem:[#allocation6_spill]] (!%p590_p2) }
   0xe   : > { %s9387_s28 = sld [smem:[#allocation7_spill]] (!%p590_p2)  ;;  %s9388_s4 = sld [smem:[#allocation8_spill]] (!%p590_p2) }
  0x12   : > { %v6637_v10 = vld [vmem:[%s9384_s5 + $0xc4] ss:$8 sps:$4 sm:$0xff] (!%p590_p2)   ;;  %v6635_v13 = vld [vmem:[%s9384_s5 + $0xc0] ss:$8 sps:$4 sm:$0xff] (!%p590_p2)   ;;  %v6640_v14 = vld [vmem:[%s9384_s5 + $0xd4] ss:$8 sps:$4 sm:$0xff] (!%p590_p2)  }
  0x13   : > { %s9390_s27 = smov (!%p647_p3, %s5630_s27), 1  ;;  %v6627_v11 = vld [vmem:[%s9385_s1 + $0x10] sm:$0xff]   ;;  %v6629_v12 = vld [vmem:[%s9385_s1] sm:$0xff]   ;;  %v6628_v15 = vld [vmem:[%s9385_s1 + $0x18] sm:$0xff]  }
  0x14   : > { %s6555_s20 = sshll.u32 %s9390_s27, 6  ;;  %v6630_v16 = vld [vmem:[%s9385_s1 + $0x8] sm:$0xff]   ;;  %v6638_v17 = vld [vmem:[%s9384_s5 + $0xd0] ss:$8 sps:$4 sm:$0xff]   ;;  %v6646_v20 = vld [vmem:[%s9384_s5 + $0xf4] ss:$8 sps:$4 sm:$0xff]  }
  0x15   : > { %s651_s0 = scalar_lea.vmem %s9383_s29, %s6555_s20  ;;  %v6643_v18 = vld [vmem:[%s9384_s5 + $0xe4] ss:$8 sps:$4 sm:$0xff]   ;;  %v6641_v19 = vld [vmem:[%s9384_s5 + $0xe0] ss:$8 sps:$4 sm:$0xff]   ;;  %v6644_v21 = vld [vmem:[%s9384_s5 + $0xf0] ss:$8 sps:$4 sm:$0xff]  }
  0x16   : > { %v6615_v2 = vld [vmem:[%s651_s0 + $0x4] ss:$8 sps:$4 sm:$0xff]   ;;  %v7506_v3 = vld [vmem:[%s651_s0] ss:$8 sps:$4 sm:$0xff]   ;;  %v7508_v4 = vld [vmem:[%s651_s0 + $0x14] ss:$8 sps:$4 sm:$0xff]  }
  0x17   : > { %827 = vmatprep.subr.bf16.mxu1 %v6615_v2  ;;  %725 = vmatprep.subr.bf16.mxu0 %v6615_v2  ;;  %v7511_v5 = vld [vmem:[%s651_s0 + $0x10] ss:$8 sps:$4 sm:$0xff]   ;;  %v7515_v6 = vld [vmem:[%s651_s0 + $0x24] ss:$8 sps:$4 sm:$0xff]   ;;  %v7519_v7 = vld [vmem:[%s651_s0 + $0x20] ss:$8 sps:$4 sm:$0xff]  }
  0x18   : > { %828 = vmatpush1.bf16.msra.mxu1 %v7506_v3  ;;  %726 = vmatpush1.bf16.msra.mxu0 %v7506_v3  ;;  %v7523_v8 = vld [vmem:[%s651_s0 + $0x34] ss:$8 sps:$4 sm:$0xff]   ;;  %v7527_v9 = vld [vmem:[%s651_s0 + $0x30] ss:$8 sps:$4 sm:$0xff]   ;;  %v6631_v22 = vld [vmem:[%s9385_s1 + $0x20] sm:$0xff]  }
  0x19   : > { %829 = vmatprep.subr.bf16.mxu1 %v7508_v4  ;;  %727 = vmatprep.subr.bf16.mxu0 %v7508_v4  ;;  %v6649_v23 = vld [vmem:[%s9384_s5 + $0x104] ss:$8 sps:$4 sm:$0xff]   ;;  %v6647_v24 = vld [vmem:[%s9384_s5 + $0x100] ss:$8 sps:$4 sm:$0xff]   ;;  %v6652_v25 = vld [vmem:[%s9384_s5 + $0x114] ss:$8 sps:$4 sm:$0xff]  }
  0x1a   : > { %v6650_v26 = vld [vmem:[%s9384_s5 + $0x110] ss:$8 sps:$4 sm:$0xff]   ;;  %v6632_v27 = vld [vmem:[%s9385_s1 + $0x28] sm:$0xff]   ;;  %v6658_v30 = vld [vmem:[%s9384_s5 + $0x134] ss:$8 sps:$4 sm:$0xff]  }
  0x1b   : > { %v6655_v28 = vld [vmem:[%s9384_s5 + $0x124] ss:$8 sps:$4 sm:$0xff]   ;;  %v6653_v29 = vld [vmem:[%s9384_s5 + $0x120] ss:$8 sps:$4 sm:$0xff]   ;;  %v6656_v31 = vld [vmem:[%s9384_s5 + $0x130] ss:$8 sps:$4 sm:$0xff]  }
  0x1c   : > { %830 = vmatpush1.bf16.msra.mxu1 %v7511_v5  ;;  %728 = vmatpush1.bf16.msra.mxu0 %v7511_v5  ;;  %v6633_v32 = vld [vmem:[%s9385_s1 + $0x30] sm:$0xff]   ;;  %v6661_v33 = vld [vmem:[%s9384_s5 + $0x144] ss:$8 sps:$4 sm:$0xff]   ;;  %v6659_v34 = vld [vmem:[%s9384_s5 + $0x140] ss:$8 sps:$4 sm:$0xff]  }
  0x1d   : > { %831 = vmatprep.subr.bf16.mxu1 %v7515_v6  ;;  %729 = vmatprep.subr.bf16.mxu0 %v7515_v6  ;;  %v6664_v35 = vld [vmem:[%s9384_s5 + $0x154] ss:$8 sps:$4 sm:$0xff]   ;;  %v6662_v36 = vld [vmem:[%s9384_s5 + $0x150] ss:$8 sps:$4 sm:$0xff]   ;;  %v6667_v38 = vld [vmem:[%s9384_s5 + $0x164] ss:$8 sps:$4 sm:$0xff]  }
  0x1e   : > { %v6634_v37 = vld [vmem:[%s9385_s1 + $0x38] sm:$0xff]   ;;  %v6665_v39 = vld [vmem:[%s9384_s5 + $0x160] ss:$8 sps:$4 sm:$0xff]   ;;  %v6673_v42 = vld [vmem:[%s9384_s5 + $0x4] ss:$8 sps:$4 sm:$0xff]  }
  0x1f   : > { %v6670_v40 = vld [vmem:[%s9384_s5 + $0x174] ss:$8 sps:$4 sm:$0xff]   ;;  %v6668_v41 = vld [vmem:[%s9384_s5 + $0x170] ss:$8 sps:$4 sm:$0xff]   ;;  %v6671_v54 = vld [vmem:[%s9384_s5] ss:$8 sps:$4 sm:$0xff]  }
  0x20   : > { %832 = vmatpush1.bf16.msra.mxu1 %v7519_v7  ;;  %730 = vmatpush1.bf16.msra.mxu0 %v7519_v7  ;;  %v6676_v56 = vld [vmem:[%s9384_s5 + $0x14] ss:$8 sps:$4 sm:$0xff]   ;;  %v6674_v57 = vld [vmem:[%s9384_s5 + $0x10] ss:$8 sps:$4 sm:$0xff]   ;;  %v6679_v60 = vld [vmem:[%s9384_s5 + $0x24] ss:$8 sps:$4 sm:$0xff]  }
  0x21   : > { %833 = vmatprep.subr.bf16.mxu1 %v7523_v8  ;;  %731 = vmatprep.subr.bf16.mxu0 %v7523_v8 }
  0x24   : > { %834 = vmatpush1.bf16.msra.mxu1 %v7527_v9  ;;  %732 = vmatpush1.bf16.msra.mxu0 %v7527_v9 }
  0x25   : > { %1288 = vmatprep.subr.bf16.mxu1 %v6615_v2  ;;  %1035 = vmatprep.subr.bf16.mxu0 %v6637_v10  ;;  %v6680_v10 = vld [vmem:[%s9384_s5 + $0x30] ss:$8 sps:$4 sm:$0xff]  }
  0x27   : > { %5655 = vmatmul.mubr.msk.bf16.vlgmr.msra.gmra.mrb[0].mxu1 %vm718_vm0, %v6627_v11  ;;  %5647 = vmatmul.mubr.msk.bf16.vlgmr.msra.gmra.mrb[0].mxu0 %vm718_vm0, %v6629_v12  ;;  %v6685_v12 = vld [vmem:[%s9384_s5 + $0x44] ss:$8 sps:$4 sm:$0xff]  }
  0x28   : > { %869 = vmatprep.mubr.bf16.mxu1 %v7376_v1  ;;  %1289 = vmatpush1.bf16.msra.mxu1 %v7506_v3 }
  0x29   : > { %1290 = vmatprep.subr.bf16.mxu1 %v7508_v4  ;;  %767 = vmatprep.mubr.bf16.mxu0 %v7376_v1 }
  0x2a   : > { %1036 = vmatpush1.bf16.msra.mxu0 %v6635_v13 }
  0x2b   : > { %1037 = vmatprep.subr.bf16.mxu0 %v6640_v14 }
  0x2c   : > { %1291 = vmatpush1.bf16.msra.mxu1 %v7511_v5 }
  0x2d   : > { %1292 = vmatprep.subr.bf16.mxu1 %v7515_v6 }
  0x2e   : > { %1038 = vmatpush1.bf16.msra.mxu0 %v6638_v17  ;;  %v6683_v17 = vld [vmem:[%s9384_s5 + $0x40] ss:$8 sps:$4 sm:$0xff]  }
  0x2f   : > { %5656 = vmatmul.mubr.msk.bf16.gmra.mrb[4].mxu1 %vm718_vm0, %v6628_v15  ;;  %5648 = vmatmul.mubr.msk.bf16.gmra.mrb[4].mxu0 %vm718_vm0, %v6630_v16 }
  0x30   : > { %1293 = vmatpush1.bf16.msra.mxu1 %v7519_v7  ;;  %1320 = vmatprep.mubr.bf16.mxu1 %v7376_v1 }
  0x31   : > { %1294 = vmatprep.subr.bf16.mxu1 %v7523_v8  ;;  %1039 = vmatprep.subr.bf16.mxu0 %v6643_v18 }
  0x32   : > { %1040 = vmatpush1.bf16.msra.mxu0 %v6641_v19  ;;  %v6688_v19 = vld [vmem:[%s9384_s5 + $0x54] ss:$8 sps:$4 sm:$0xff]  }
  0x33   : > { %1041 = vmatprep.subr.bf16.mxu0 %v6646_v20  ;;  %v6686_v20 = vld [vmem:[%s9384_s5 + $0x50] ss:$8 sps:$4 sm:$0xff]  }
  0x34   : > { %1295 = vmatpush1.bf16.msra.mxu1 %v7527_v9 }
  0x35   : > { %1578 = vmatprep.subr.bf16.mxu1 %v6615_v2 }
  0x36   : > { %1042 = vmatpush1.bf16.msra.mxu0 %v6644_v21 }
  0x37   : > { %5739 = vmatmul.mubr.msk.bf16.vlgmr.msra.gmra.mrb[8].mxu1 %vm718_vm0, %v6631_v22  ;;  %1043 = vmatprep.subr.bf16.mxu0 %v6649_v23  ;;  %v6691_v22 = vld [vmem:[%s9384_s5 + $0x64] ss:$8 sps:$4 sm:$0xff]  }
  0x38   : > { %1579 = vmatpush1.bf16.msra.mxu1 %v7506_v3  ;;  %1330 = vmatprep.mubr.bf16.mxu1 %v7376_v1 }
  0x39   : > { %1580 = vmatprep.subr.bf16.mxu1 %v7508_v4 }
  0x3a   : > { %1044 = vmatpush1.bf16.msra.mxu0 %v6647_v24 }
  0x3b   : > { %1045 = vmatprep.subr.bf16.mxu0 %v6652_v25 }
  0x3c   : > { %1581 = vmatpush1.bf16.msra.mxu1 %v7511_v5 }
  0x3d   : > { %1582 = vmatprep.subr.bf16.mxu1 %v7515_v6  ;;  %v6677_v6 = vld [vmem:[%s9384_s5 + $0x20] ss:$8 sps:$4 sm:$0xff]  }
  0x3e   : > { %1046 = vmatpush1.bf16.msra.mxu0 %v6650_v26 }
  0x3f   : > { %5740 = vmatmul.mubr.msk.bf16.gmra.mrb[12].mxu1 %vm718_vm0, %v6632_v27  ;;  %1047 = vmatprep.subr.bf16.mxu0 %v6655_v28  ;;  %v6689_v27 = vld [vmem:[%s9384_s5 + $0x60] ss:$8 sps:$4 sm:$0xff]  }
  0x40   : > { %1583 = vmatpush1.bf16.msra.mxu1 %v7519_v7  ;;  %1610 = vmatprep.mubr.bf16.mxu1 %v7376_v1 }
  0x41   : > { %1584 = vmatprep.subr.bf16.mxu1 %v7523_v8 }
  0x42   : > { %1048 = vmatpush1.bf16.msra.mxu0 %v6653_v29  ;;  %v6694_v29 = vld [vmem:[%s9384_s5 + $0x74] ss:$8 sps:$4 sm:$0xff]  }
  0x43   : > { %1049 = vmatprep.subr.bf16.mxu0 %v6658_v30  ;;  %v6692_v30 = vld [vmem:[%s9384_s5 + $0x70] ss:$8 sps:$4 sm:$0xff]  }
  0x44   : > { %1585 = vmatpush1.bf16.msra.mxu1 %v7527_v9  ;;  %v6682_v9 = vld [vmem:[%s9384_s5 + $0x34] ss:$8 sps:$4 sm:$0xff]  }
  0x46   : > { %1050 = vmatpush1.bf16.msra.mxu0 %v6656_v31 }
  0x47   : > { %5797 = vmatmul.mubr.msk.bf16.vlgmr.msra.gmra.mrb[16].mxu1 %vm718_vm0, %v6633_v32  ;;  %1051 = vmatprep.subr.bf16.mxu0 %v6661_v33  ;;  %v6697_v32 = vld [vmem:[%s9384_s5 + $0x84] ss:$8 sps:$4 sm:$0xff]  }
  0x48   : > { %1620 = vmatprep.mubr.bf16.mxu1 %v7376_v1 }
  0x4a   : > { %1052 = vmatpush1.bf16.msra.mxu0 %v6659_v34 }
  0x4b   : > { %1053 = vmatprep.subr.bf16.mxu0 %v6664_v35 }
  0x4e   : > { %1054 = vmatpush1.bf16.msra.mxu0 %v6662_v36 }
  0x4f   : > { %5798 = vmatmul.mubr.msk.bf16.gmra.mrb[20].mxu1 %vm718_vm0, %v6634_v37  ;;  %1055 = vmatprep.subr.bf16.mxu0 %v6667_v38  ;;  %v6695_v37 = vld [vmem:[%s9384_s5 + $0x80] ss:$8 sps:$4 sm:$0xff]  }
  0x50   : > { %1938 = vmatprep.mubr.bf16.mxu1 %v7376_v1 }
  0x52   : > { %1056 = vmatpush1.bf16.msra.mxu0 %v6665_v39  ;;  %v6700_v39 = vld [vmem:[%s9384_s5 + $0x94] ss:$8 sps:$4 sm:$0xff]  }
  0x53   : > { %1057 = vmatprep.subr.bf16.mxu0 %v6670_v40  ;;  %v6698_v40 = vld [vmem:[%s9384_s5 + $0x90] ss:$8 sps:$4 sm:$0xff]  }
  0x56   : > { %1058 = vmatpush1.bf16.msra.mxu0 %v6668_v41 }
  0x57   : > { %1214 = vmatprep.subr.bf16.mxu0 %v6673_v42  ;;  %v6703_v42 = vld [vmem:[%s9384_s5 + $0xa4] ss:$8 sps:$4 sm:$0xff]  }
  0xfa   : > { %v861_v43 = vpop.f32.mrb[0].mxu1  ;;  %v7662_v44 = vpop.f32.mrb[0].mxu0 }
  0xfb   : > { %v863_v45 = vpop.f32.mrb[1].mxu1  ;;  %v761_v46 = vpop.f32.mrb[1].mxu0 }
  0xfc   : > { %v865_v47 = vpop.f32.mrb[2].mxu1  ;;  %v7664_v48 = vpop.f32.mrb[2].mxu0 }
  0xfd   : > { %v880_v49 = vpack.c.bf16 %v865_v47, %v861_v43  ;;  %v867_v50 = vpop.f32.mrb[3].mxu1  ;;  %v778_v51 = vpack.c.bf16 %v7664_v48, %v7662_v44  ;;  %v765_v52 = vpop.f32.mrb[3].mxu0  ;;  %v6713_v44 = vld [vmem:[%s9384_s5 + $0x1a0] ss:$8 sps:$4 sm:$0xff]   ;;  %v6718_v48 = vld [vmem:[%s9384_s5 + $0x1b4] ss:$8 sps:$4 sm:$0xff]  }
  0xfe   : > { %v881_v53 = vpack.c.bf16 %v867_v50, %v863_v45  ;;  %v779_v55 = vpack.c.bf16 %v765_v52, %v761_v46  ;;  %v6706_v52 = vld [vmem:[%s9384_s5 + $0xb4] ss:$8 sps:$4 sm:$0xff]  }
 0x100   : > { %5705 = vmatprep.mubr.msk.bf16.mxu0 %vm718_vm0, %v881_v53  ;;  %v6704_v53 = vld [vmem:[%s9384_s5 + $0xb0] ss:$8 sps:$4 sm:$0xff]  }
 0x101   : > { %1068 = vmatmul.mubr.bf16.vlgmr.msra.gmra.mrb[8].mxu0 %v880_v49  ;;  %v6701_v49 = vld [vmem:[%s9384_s5 + $0xa0] ss:$8 sps:$4 sm:$0xff]  }
 0x102   : > { %1215 = vmatpush1.bf16.msra.mxu0 %v6671_v54  ;;  %v871_v58 = vpop.f32.mrb[4].mxu1  ;;  %v7678_v59 = vpop.f32.mrb[4].mxu0  ;;  %v6709_v54 = vld [vmem:[%s9384_s5 + $0x184] ss:$8 sps:$4 sm:$0xff]  }
 0x103   : > { %1216 = vmatprep.subr.bf16.mxu0 %v6676_v56  ;;  %v873_v61 = vpop.f32.mrb[5].mxu1  ;;  %v7683_v62 = vpop.f32.mrb[5].mxu0  ;;  %v6712_v56 = vld [vmem:[%s9384_s5 + $0x194] ss:$8 sps:$4 sm:$0xff]  }
 0x104   : > { %v875_v63 = vpop.f32.mrb[6].mxu1  ;;  %v7685_v0 = vpop.f32.mrb[6].mxu0 }
 0x105   : > { %v882_v2 = vpack.c.bf16 %v875_v63, %v871_v58  ;;  %v877_v3 = vpop.f32.mrb[7].mxu1  ;;  %v780_v4 = vpack.c.bf16 %v7685_v0, %v7678_v59  ;;  %v7689_v5 = vpop.f32.mrb[7].mxu0  ;;  %v6715_v58 = vld [vmem:[%s9384_s5 + $0x1a4] ss:$8 sps:$4 sm:$0xff]   ;;  %v6719_v59 = vld [vmem:[%s9384_s5 + $0x1c0] ss:$8 sps:$4 sm:$0xff]  }
 0x106   : > { %1217 = vmatpush1.bf16.msra.mxu0 %v6674_v57  ;;  %v883_v7 = vpack.c.bf16 %v877_v3, %v873_v61  ;;  %v781_v8 = vpack.c.bf16 %v7689_v5, %v7683_v62  ;;  %v6710_v57 = vld [vmem:[%s9384_s5 + $0x190] ss:$8 sps:$4 sm:$0xff]   ;;  %v6724_v61 = vld [vmem:[%s9384_s5 + $0x1d4] ss:$8 sps:$4 sm:$0xff]   ;;  %v6727_v63 = vld [vmem:[%s9384_s5 + $0x1e4] ss:$8 sps:$4 sm:$0xff]  }
 0x107   : > { %1218 = vmatprep.subr.bf16.mxu0 %v6679_v60  ;;  %v6721_v60 = vld [vmem:[%s9384_s5 + $0x1c4] ss:$8 sps:$4 sm:$0xff]   ;;  %v6722_v62 = vld [vmem:[%s9384_s5 + $0x1d0] ss:$8 sps:$4 sm:$0xff]   ;;  %v6725_v0 = vld [vmem:[%s9384_s5 + $0x1e0] ss:$8 sps:$4 sm:$0xff]  }
 0x108   : > { %5706 = vmatprep.mubr.msk.bf16.mxu0 %vm718_vm0, %v883_v7  ;;  %v6728_v3 = vld [vmem:[%s9384_s5 + $0x1f0] ss:$8 sps:$4 sm:$0xff]   ;;  %v6731_v5 = vld [vmem:[%s9384_s5 + $0x200] ss:$8 sps:$4 sm:$0xff]  }
 0x109   : > { %1078 = vmatmul.mubr.bf16.gmra.mrb[12].mxu0 %v882_v2  ;;  %v6730_v2 = vld [vmem:[%s9384_s5 + $0x1f4] ss:$8 sps:$4 sm:$0xff]   ;;  %v6734_v7 = vld [vmem:[%s9384_s5 + $0x210] ss:$8 sps:$4 sm:$0xff]  }
 0x10a   : > { %1219 = vmatpush1.bf16.msra.mxu0 %v6677_v6  ;;  %5731 = vmatprep.mubr.msk.bf16.mxu0 %vm718_vm0, %v779_v55  ;;  %v7704_v11 = vpop.f32.mrb[8].mxu1  ;;  %v6707_v55 = vld [vmem:[%s9384_s5 + $0x180] ss:$8 sps:$4 sm:$0xff]   ;;  %v6736_v6 = vld [vmem:[%s9384_s5 + $0x214] ss:$8 sps:$4 sm:$0xff]  }
 0x10b   : > { %1220 = vmatprep.subr.bf16.mxu0 %v6682_v9  ;;  %v7709_v13 = vpop.f32.mrb[9].mxu1  ;;  %v6737_v9 = vld [vmem:[%s9384_s5 + $0x220] ss:$8 sps:$4 sm:$0xff]  }
 0x10c   : > { %v7711_v14 = vpop.f32.mrb[10].mxu1 }
 0x10d   : > { %v1341_v15 = vpack.c.bf16 %v7711_v14, %v7704_v11  ;;  %v7715_v16 = vpop.f32.mrb[11].mxu1  ;;  %v6749_v11 = vld [vmem:[%s9384_s5 + $0x260] ss:$8 sps:$4 sm:$0xff]   ;;  %v6754_v14 = vld [vmem:[%s9384_s5 + $0x274] ss:$8 sps:$4 sm:$0xff]  }
 0x10e   : > { %1221 = vmatpush1.bf16.msra.mxu0 %v6680_v10  ;;  %v1342_v18 = vpack.c.bf16 %v7715_v16, %v7709_v13  ;;  %v6742_v10 = vld [vmem:[%s9384_s5 + $0x234] ss:$8 sps:$4 sm:$0xff]   ;;  %v6745_v13 = vld [vmem:[%s9384_s5 + $0x244] ss:$8 sps:$4 sm:$0xff]   ;;  %v6743_v16 = vld [vmem:[%s9384_s5 + $0x240] ss:$8 sps:$4 sm:$0xff]  }
 0x10f   : > { %1222 = vmatprep.subr.bf16.mxu0 %v6685_v12  ;;  %v6740_v12 = vld [vmem:[%s9384_s5 + $0x230] ss:$8 sps:$4 sm:$0xff]  }
 0x112   : > { %1223 = vmatpush1.bf16.msra.mxu0 %v6683_v17  ;;  %v7728_v21 = vpop.f32.mrb[12].mxu1  ;;  %v6748_v17 = vld [vmem:[%s9384_s5 + $0x254] ss:$8 sps:$4 sm:$0xff]  }
 0x113   : > { %1224 = vmatprep.subr.bf16.mxu0 %v6688_v19  ;;  %v7733_v23 = vpop.f32.mrb[13].mxu1  ;;  %v6751_v19 = vld [vmem:[%s9384_s5 + $0x264] ss:$8 sps:$4 sm:$0xff]  }
 0x114   : > { %v7735_v24 = vpop.f32.mrb[14].mxu1 }
 0x115   : > { %v1343_v25 = vpack.c.bf16 %v7735_v24, %v7728_v21  ;;  %v7739_v26 = vpop.f32.mrb[15].mxu1  ;;  %v6755_v21 = vld [vmem:[%s9384_s5 + $0x280] ss:$8 sps:$4 sm:$0xff]   ;;  %v6763_v24 = vld [vmem:[%s9384_s5 + $0x2a4] ss:$8 sps:$4 sm:$0xff]  }
 0x116   : > { %1225 = vmatpush1.bf16.msra.mxu0 %v6686_v20  ;;  %v1344_v28 = vpack.c.bf16 %v7739_v26, %v7733_v23  ;;  %v6757_v20 = vld [vmem:[%s9384_s5 + $0x284] ss:$8 sps:$4 sm:$0xff]   ;;  %v6758_v23 = vld [vmem:[%s9384_s5 + $0x290] ss:$8 sps:$4 sm:$0xff]   ;;  %v6766_v26 = vld [vmem:[%s9384_s5 + $0x2b4] ss:$8 sps:$4 sm:$0xff]  }
 0x117   : > { %1226 = vmatprep.subr.bf16.mxu0 %v6691_v22  ;;  %v6760_v22 = vld [vmem:[%s9384_s5 + $0x294] ss:$8 sps:$4 sm:$0xff]  }
 0x11a   : > { %1227 = vmatpush1.bf16.msra.mxu0 %v6689_v27  ;;  %v7752_v31 = vpop.f32.mrb[16].mxu1  ;;  %v6764_v27 = vld [vmem:[%s9384_s5 + $0x2b0] ss:$8 sps:$4 sm:$0xff]  }
 0x11b   : > { %1228 = vmatprep.subr.bf16.mxu0 %v6694_v29  ;;  %v7757_v33 = vpop.f32.mrb[17].mxu1  ;;  %v6767_v29 = vld [vmem:[%s9384_s5 + $0x2c0] ss:$8 sps:$4 sm:$0xff]  }
 0x11c   : > { %v7759_v34 = vpop.f32.mrb[18].mxu1 }
 0x11d   : > { %v1631_v35 = vpack.c.bf16 %v7759_v34, %v7752_v31  ;;  %v7763_v36 = vpop.f32.mrb[19].mxu1  ;;  %v1847_v31 = vld [vmem:[%s9386_s25] sm:$0x3] }
 0x11e   : > { %1229 = vmatpush1.bf16.msra.mxu0 %v6692_v30  ;;  %v1632_v38 = vpack.c.bf16 %v7763_v36, %v7757_v33  ;;  %v6772_v30 = vld [vmem:[%s9384_s5 + $0x2d4] ss:$8 sps:$4 sm:$0xff]   ;;  %v6775_v33 = vld [vmem:[%s9384_s5 + $0x2e4] ss:$8 sps:$4 sm:$0xff]   ;;  %v6773_v36 = vld [vmem:[%s9384_s5 + $0x2e0] ss:$8 sps:$4 sm:$0xff]  }
 0x11f   : > { %1230 = vmatprep.subr.bf16.mxu0 %v6697_v32  ;;  %v6770_v32 = vld [vmem:[%s9384_s5 + $0x2d0] ss:$8 sps:$4 sm:$0xff]  }
 0x122   : > { %1231 = vmatpush1.bf16.msra.mxu0 %v6695_v37  ;;  %v7776_v41 = vpop.f32.mrb[20].mxu1  ;;  %v6778_v37 = vld [vmem:[%s9384_s5 + $0x2f4] ss:$8 sps:$4 sm:$0xff]  }
 0x123   : > { %1232 = vmatprep.subr.bf16.mxu0 %v6700_v39  ;;  %v7781_v43 = vpop.f32.mrb[21].mxu1  ;;  %v1849_v39 = vlaneseq }
 0x124   : > { %v7783_v45 = vpop.f32.mrb[22].mxu1 }
 0x125   : > { %v1633_v46 = vpack.c.bf16 %v7783_v45, %v7776_v41  ;;  %v7787_v47 = vpop.f32.mrb[23].mxu1 }
 0x126   : > { %1233 = vmatpush1.bf16.msra.mxu0 %v6698_v40  ;;  %v1634_v50 = vpack.c.bf16 %v7787_v47, %v7781_v43  ;;  %v1850_v40 = vshrl.u32 %v1849_v39, 7  ;;  %v6810_v39 = vld [vmem:[%s9388_s4 + $0x194] ss:$8 sps:$4 sm:$0xff]  }
 0x127   : > { %1234 = vmatprep.subr.bf16.mxu0 %v6703_v42 }
 0x128   : > { %v7983_v42 = vsub.s32 0, %v1850_v40  ;;  %v7988_v34 = vsub.s32 1, %v1850_v40  ;;  %v6808_v40 = vld [vmem:[%s9388_s4 + $0x190] ss:$8 sps:$4 sm:$0xff]  }
 0x12a   : > { %1235 = vmatpush1.bf16.msra.mxu0 %v6701_v49  ;;  %v1856_v43 = vrot.slane %v1847_v31, %v7988_v34 }
 0x12b   : > { %1236 = vmatprep.subr.bf16.mxu0 %v6706_v52 }
 0x12e   : > { %1237 = vmatpush1.bf16.msra.mxu0 %v6704_v53 }
 0x12f   : > { %1496 = vmatprep.subr.bf16.mxu0 %v6709_v54 }
 0x131   : > { %1247 = vmatmul.mubr.bf16.vlgmr.msra.gmra.mrb[8].mxu0 %v778_v51  ;;  %v6716_v51 = vld [vmem:[%s9384_s5 + $0x1b0] ss:$8 sps:$4 sm:$0xff]  }
 0x132   : > { %1497 = vmatpush1.bf16.msra.mxu0 %v6707_v55  ;;  %5732 = vmatprep.mubr.msk.bf16.mxu0 %vm718_vm0, %v781_v8  ;;  %v6739_v8 = vld [vmem:[%s9384_s5 + $0x224] ss:$8 sps:$4 sm:$0xff]  }
 0x133   : > { %1498 = vmatprep.subr.bf16.mxu0 %v6712_v56 }
 0x136   : > { %1499 = vmatpush1.bf16.msra.mxu0 %v6710_v57 }
 0x137   : > { %1500 = vmatprep.subr.bf16.mxu0 %v6715_v58 }
 0x139   : > { %1257 = vmatmul.mubr.bf16.gmra.mrb[12].mxu0 %v780_v4  ;;  %v6733_v4 = vld [vmem:[%s9384_s5 + $0x204] ss:$8 sps:$4 sm:$0xff]  }
 0x13a   : > { %1501 = vmatpush1.bf16.msra.mxu0 %v6713_v44  ;;  %5789 = vmatprep.mubr.msk.bf16.mxu0 %vm718_vm0, %v1342_v18  ;;  %v6746_v18 = vld [vmem:[%s9384_s5 + $0x250] ss:$8 sps:$4 sm:$0xff]  }
 0x13b   : > { %1502 = vmatprep.subr.bf16.mxu0 %v6718_v48 }
 0x13e   : > { %1503 = vmatpush1.bf16.msra.mxu0 %v6716_v51 }
 0x13f   : > { %1504 = vmatprep.subr.bf16.mxu0 %v6721_v60 }
 0x142   : > { %1505 = vmatpush1.bf16.msra.mxu0 %v6719_v59 }
 0x143   : > { %1506 = vmatprep.subr.bf16.mxu0 %v6724_v61 }
 0x146   : > { %1507 = vmatpush1.bf16.msra.mxu0 %v6722_v62 }
 0x147   : > { %1508 = vmatprep.subr.bf16.mxu0 %v6727_v63 }
 0x14a   : > { %1509 = vmatpush1.bf16.msra.mxu0 %v6725_v0 }
 0x14b   : > { %1510 = vmatprep.subr.bf16.mxu0 %v6730_v2 }
 0x14e   : > { %1511 = vmatpush1.bf16.msra.mxu0 %v6728_v3 }
 0x14f   : > { %1512 = vmatprep.subr.bf16.mxu0 %v6733_v4 }
 0x152   : > { %1513 = vmatpush1.bf16.msra.mxu0 %v6731_v5 }
 0x153   : > { %1514 = vmatprep.subr.bf16.mxu0 %v6736_v6 }
 0x156   : > { %1515 = vmatpush1.bf16.msra.mxu0 %v6734_v7 }
 0x157   : > { %1516 = vmatprep.subr.bf16.mxu0 %v6739_v8 }
 0x15a   : > { %1517 = vmatpush1.bf16.msra.mxu0 %v6737_v9 }
 0x15b   : > { %1518 = vmatprep.subr.bf16.mxu0 %v6742_v10 }
 0x15e   : > { %1519 = vmatpush1.bf16.msra.mxu0 %v6740_v12 }
 0x15f   : > { %1786 = vmatprep.subr.bf16.mxu0 %v6745_v13 }
 0x161   : > { %1529 = vmatmul.mubr.bf16.vlgmr.msra.gmra.mrb[8].mxu0 %v1341_v15  ;;  %v6752_v15 = vld [vmem:[%s9384_s5 + $0x270] ss:$8 sps:$4 sm:$0xff]  }
 0x162   : > { %1787 = vmatpush1.bf16.msra.mxu0 %v6743_v16  ;;  %5790 = vmatprep.mubr.msk.bf16.mxu0 %vm718_vm0, %v1344_v28  ;;  %v6769_v28 = vld [vmem:[%s9384_s5 + $0x2c4] ss:$8 sps:$4 sm:$0xff]  }
 0x163   : > { %1788 = vmatprep.subr.bf16.mxu0 %v6748_v17 }
 0x166   : > { %1789 = vmatpush1.bf16.msra.mxu0 %v6746_v18 }
 0x167   : > { %1790 = vmatprep.subr.bf16.mxu0 %v6751_v19  ;;  %v6779_v19 = vld [vmem:[%s9387_s28] sm:$0xff]  }
 0x169   : > { %1539 = vmatmul.mubr.bf16.gmra.mrb[12].mxu0 %v1343_v25  ;;  %v6761_v25 = vld [vmem:[%s9384_s5 + $0x2a0] ss:$8 sps:$4 sm:$0xff]  }
 0x16a   : > { %1791 = vmatpush1.bf16.msra.mxu0 %v6749_v11  ;;  %5847 = vmatprep.mubr.msk.bf16.mxu0 %vm718_vm0, %v1632_v38  ;;  %v6776_v38 = vld [vmem:[%s9384_s5 + $0x2f0] ss:$8 sps:$4 sm:$0xff]   ;;  %v6783_v11 = vld [vmem:[%s9388_s4 + $0x104] ss:$8 sps:$4 sm:$0xff]  }
 0x16b   : > { %1792 = vmatprep.subr.bf16.mxu0 %v6754_v14  ;;  %v6780_v14 = vld [vmem:[%s9387_s28 + $0x8] sm:$0xff]  }
 0x16e   : > { %1793 = vmatpush1.bf16.msra.mxu0 %v6752_v15  ;;  %v6781_v15 = vld [vmem:[%s9388_s4 + $0x100] ss:$8 sps:$4 sm:$0xff]  }
 0x16f   : > { %1794 = vmatprep.subr.bf16.mxu0 %v6757_v20  ;;  %v6786_v20 = vld [vmem:[%s9388_s4 + $0x114] ss:$8 sps:$4 sm:$0xff]  }
 0x172   : > { %1795 = vmatpush1.bf16.msra.mxu0 %v6755_v21  ;;  %v6784_v21 = vld [vmem:[%s9388_s4 + $0x110] ss:$8 sps:$4 sm:$0xff]  }
 0x173   : > { %1796 = vmatprep.subr.bf16.mxu0 %v6760_v22  ;;  %v6789_v22 = vld [vmem:[%s9388_s4 + $0x124] ss:$8 sps:$4 sm:$0xff]  }
 0x176   : > { %1797 = vmatpush1.bf16.msra.mxu0 %v6758_v23  ;;  %v6787_v23 = vld [vmem:[%s9388_s4 + $0x120] ss:$8 sps:$4 sm:$0xff]  }
 0x177   : > { %1798 = vmatprep.subr.bf16.mxu0 %v6763_v24  ;;  %v6792_v24 = vld [vmem:[%s9388_s4 + $0x134] ss:$8 sps:$4 sm:$0xff]  }
 0x17a   : > { %1799 = vmatpush1.bf16.msra.mxu0 %v6761_v25  ;;  %v6790_v25 = vld [vmem:[%s9388_s4 + $0x130] ss:$8 sps:$4 sm:$0xff]  }
 0x17b   : > { %1800 = vmatprep.subr.bf16.mxu0 %v6766_v26  ;;  %v6795_v26 = vld [vmem:[%s9388_s4 + $0x144] ss:$8 sps:$4 sm:$0xff]  }
 0x17e   : > { %1801 = vmatpush1.bf16.msra.mxu0 %v6764_v27  ;;  %v6793_v27 = vld [vmem:[%s9388_s4 + $0x140] ss:$8 sps:$4 sm:$0xff]  }
 0x17f   : > { %1802 = vmatprep.subr.bf16.mxu0 %v6769_v28  ;;  %v6798_v28 = vld [vmem:[%s9388_s4 + $0x154] ss:$8 sps:$4 sm:$0xff]  }
 0x182   : > { %1803 = vmatpush1.bf16.msra.mxu0 %v6767_v29  ;;  %v6796_v29 = vld [vmem:[%s9388_s4 + $0x150] ss:$8 sps:$4 sm:$0xff]  }
 0x183   : > { %1804 = vmatprep.subr.bf16.mxu0 %v6772_v30  ;;  %v6801_v30 = vld [vmem:[%s9388_s4 + $0x164] ss:$8 sps:$4 sm:$0xff]  }
 0x186   : > { %1805 = vmatpush1.bf16.msra.mxu0 %v6770_v32  ;;  %v6799_v32 = vld [vmem:[%s9388_s4 + $0x160] ss:$8 sps:$4 sm:$0xff]  }
 0x187   : > { %1806 = vmatprep.subr.bf16.mxu0 %v6775_v33  ;;  %v6804_v33 = vld [vmem:[%s9388_s4 + $0x174] ss:$8 sps:$4 sm:$0xff]  }
 0x18a   : > { %1807 = vmatpush1.bf16.msra.mxu0 %v6773_v36  ;;  %v6802_v36 = vld [vmem:[%s9388_s4 + $0x170] ss:$8 sps:$4 sm:$0xff]  }
 0x18b   : > { %1808 = vmatprep.subr.bf16.mxu0 %v6778_v37  ;;  %v6807_v37 = vld [vmem:[%s9388_s4 + $0x184] ss:$8 sps:$4 sm:$0xff]  }
 0x18e   : > { %1809 = vmatpush1.bf16.msra.mxu0 %v6776_v38  ;;  %v6805_v38 = vld [vmem:[%s9388_s4 + $0x180] ss:$8 sps:$4 sm:$0xff]  }
 0x191   : > { %1819 = vmatmul.mubr.bf16.vlgmr.msra.gmra.mrb[8].mxu0 %v1631_v35  ;;  %v1852_v35 = vrot.slane %v1847_v31, %v7983_v42  ;;  %v6813_v31 = vld [vmem:[%s9388_s4 + $0x1a4] ss:$8 sps:$4 sm:$0xff]  }
 0x192   : > { %5848 = vmatprep.mubr.msk.bf16.mxu0 %vm718_vm0, %v1634_v50 }
 0x199   : > { %1829 = vmatmul.mubr.bf16.gmra.mrb[12].mxu0 %v1633_v46 }
 0x19a   : > { %3196 = vmatprep.mubr.bf16.mxu0 %v7376_v1 }
 0x264   : > { %v1820_v47 = vpop.f32.mrb[8].mxu0 }
 0x265   : > { %v1859_v49 = vadd.f32 %v1852_v35, %v1820_v47  ;;  %v1822_v41 = vpop.f32.mrb[9].mxu0  ;;  %v6814_v47 = vld [vmem:[%s9388_s4 + $0x1b0] ss:$8 sps:$4 sm:$0xff]  }
 0x266   : > { %v1860_v45 = vadd.f32 %v1856_v43, %v1822_v41  ;;  %v1824_v46 = vpop.f32.mrb[10].mxu0  ;;  %v6817_v41 = vld [vmem:[%s9388_s4 + $0x1c0] ss:$8 sps:$4 sm:$0xff]  }
 0x267   : > { %v1875_v50 = vmul.f32 0.2, %v1859_v49  ;;  %v1861_v52 = vadd.f32 %v1852_v35, %v1824_v46  ;;  %v1826_v53 = vpop.f32.mrb[11].mxu0  ;;  %vm1867_vm1 = vcmp.gt.f32.partialorder %v1859_v49, 0.0  ;;  %v6820_v46 = vld [vmem:[%s9388_s4 + $0x1d0] ss:$8 sps:$4 sm:$0xff]  }
 0x268   : > { %v1876_v54 = vmul.f32 0.2, %v1860_v45  ;;  %v1862_v55 = vadd.f32 %v1856_v43, %v1826_v53  ;;  %vm1868_vm2 = vcmp.gt.f32.partialorder %v1860_v45, 0.0  ;;  %v6828_v53 = vld [vmem:[%s9388_s4 + $0x1f4] ss:$8 sps:$4 sm:$0xff]  }
 0x269   : > { %vm1869_vm3 = vcmp.gt.f32.partialorder %v1861_v52, 0.0  ;;  %v1877_v56 = vmul.f32 0.2, %v1861_v52  ;;  %v1883_v58 = vsel %vm1867_vm1, %v1859_v49, %v1875_v50  ;;  %v6819_v49 = vld [vmem:[%s9388_s4 + $0x1c4] ss:$8 sps:$4 sm:$0xff]   ;;  %vm4358_vm1 = vcmask 1043456  }
 0x26a   : > { %vm1870_vm4 = vcmp.gt.f32.partialorder %v1862_v55, 0.0  ;;  %v1878_v57 = vmul.f32 0.2, %v1862_v55  ;;  %v1884_v48 = vsel %vm1868_vm2, %v1860_v45, %v1876_v54  ;;  %v6822_v45 = vld [vmem:[%s9388_s4 + $0x1d4] ss:$8 sps:$4 sm:$0xff]   ;;  %vm4354_vm2 = vcmask 64512  }
 0x26b   : > { %v1885_v44 = vsel %vm1869_vm3, %v1861_v52, %v1877_v56  ;;  %v6823_v50 = vld [vmem:[%s9388_s4 + $0x1e0] ss:$8 sps:$4 sm:$0xff]   ;;  %v6825_v52 = vld [vmem:[%s9388_s4 + $0x1e4] ss:$8 sps:$4 sm:$0xff]   ;;  %v6826_v54 = vld [vmem:[%s9388_s4 + $0x1f0] ss:$8 sps:$4 sm:$0xff]  }
 0x26c   : > { %v7992_v51 = vpack.c.bf16 %v1885_v44, %v1883_v58  ;;  %v1886_v60 = vsel %vm1870_vm4, %v1862_v55, %v1878_v57  ;;  %v1830_v59 = vpop.f32.mrb[12].mxu0  ;;  %v6831_v55 = vld [vmem:[%s9388_s4 + $0x4] ss:$8 sps:$4 sm:$0xff]  }
 0x26d   : > { %v7994_v61 = vpack.c.bf16 %v1886_v60, %v1884_v48  ;;  %v1863_v62 = vadd.f32 %v1852_v35, %v1830_v59  ;;  %v1832_v63 = vpop.f32.mrb[13].mxu0 }
 0x26e   : > { %v1864_v0 = vadd.f32 %v1856_v43, %v1832_v63  ;;  %v1834_v2 = vpop.f32.mrb[14].mxu0 }
 0x26f   : > { %v1879_v3 = vmul.f32 0.2, %v1863_v62  ;;  %v1865_v4 = vadd.f32 %v1852_v35, %v1834_v2  ;;  %v1836_v5 = vpop.f32.mrb[15].mxu0  ;;  %1906 = vmatprep.subr.bf16.mxu1 %v7994_v61  ;;  %vm1871_vm5 = vcmp.gt.f32.partialorder %v1863_v62, 0.0  ;;  %v6811_v35 = vld [vmem:[%s9388_s4 + $0x1a0] ss:$8 sps:$4 sm:$0xff]  }
 0x270   : > { %v1880_v6 = vmul.f32 0.2, %v1864_v0  ;;  %v1866_v7 = vadd.f32 %v1856_v43, %v1836_v5  ;;  %1907 = vmatpush1.bf16.msra.mxu1 %v7992_v51  ;;  %vm1872_vm6 = vcmp.gt.f32.partialorder %v1864_v0, 0.0  ;;  %v6816_v43 = vld [vmem:[%s9388_s4 + $0x1b4] ss:$8 sps:$4 sm:$0xff]  }
 0x271   : > { %vm1873_vm7 = vcmp.gt.f32.partialorder %v1865_v4, 0.0  ;;  %v1881_v8 = vmul.f32 0.2, %v1865_v4  ;;  %v1887_v10 = vsel %vm1871_vm5, %v1863_v62, %v1879_v3  ;;  %v6834_v5 = vld [vmem:[%s9388_s4 + $0x14] ss:$8 sps:$4 sm:$0xff]   ;;  %vm5581_vm5 = vcmask 0  }
 0x272   : > { %vm1874_vm8 = vcmp.gt.f32.partialorder %v1866_v7, 0.0  ;;  %v1882_v9 = vmul.f32 0.2, %v1866_v7  ;;  %v1888_v13 = vsel %vm1872_vm6, %v1864_v0, %v1880_v6  ;;  %v6832_v6 = vld [vmem:[%s9388_s4 + $0x10] ss:$8 sps:$4 sm:$0xff]  }
 0x273   : > { %v1889_v12 = vsel %vm1873_vm7, %v1865_v4, %v1881_v8  ;;  %v6829_v4 = vld [vmem:[%s9388_s4] ss:$8 sps:$4 sm:$0xff]  }
 0x274   : > { %v7998_v16 = vpack.c.bf16 %v1889_v12, %v1887_v10  ;;  %v1890_v17 = vsel %vm1874_vm8, %v1866_v7, %v1882_v9  ;;  %v6837_v7 = vld [vmem:[%s9388_s4 + $0x24] ss:$8 sps:$4 sm:$0xff]   ;;  %v6835_v8 = vld [vmem:[%s9388_s4 + $0x20] ss:$8 sps:$4 sm:$0xff]   ;;  %v6840_v9 = vld [vmem:[%s9388_s4 + $0x34] ss:$8 sps:$4 sm:$0xff]  }
 0x275   : > { %v8000_v18 = vpack.c.bf16 %v1890_v17, %v1888_v13  ;;  %v6838_v10 = vld [vmem:[%s9388_s4 + $0x30] ss:$8 sps:$4 sm:$0xff]   ;;  %v6843_v12 = vld [vmem:[%s9388_s4 + $0x44] ss:$8 sps:$4 sm:$0xff]   ;;  %v6841_v13 = vld [vmem:[%s9388_s4 + $0x40] ss:$8 sps:$4 sm:$0xff]  }
 0x276   : > { %v6846_v17 = vld [vmem:[%s9388_s4 + $0x54] ss:$8 sps:$4 sm:$0xff]  }
 0x277   : > { %1908 = vmatprep.subr.bf16.mxu1 %v8000_v18 }
 0x278   : > { %1909 = vmatpush1.bf16.msra.mxu1 %v7998_v16 }
 0x279   : > { %1994 = vmatprep.subr.bf16.mxu1 %v7994_v61 }
 0x27b   : > { %5850 = vmatmul.mubr.msk.bf16.vlgmr.msra.gmra.mrb[24].mxu1 %vm1902_vm9, %v6779_v19  ;;  %v6844_v19 = vld [vmem:[%s9388_s4 + $0x50] ss:$8 sps:$4 sm:$0xff]  }
 0x27c   : > { %1995 = vmatpush1.bf16.msra.mxu1 %v7992_v51  ;;  %2026 = vmatprep.mubr.bf16.mxu1 %v7376_v1 }
 0x27d   : > { %1996 = vmatprep.subr.bf16.mxu1 %v8000_v18 }
 0x280   : > { %1997 = vmatpush1.bf16.msra.mxu1 %v7998_v16 }
 0x281   : > { %2232 = vmatprep.subr.bf16.mxu1 %v6783_v11  ;;  %v6849_v11 = vld [vmem:[%s9388_s4 + $0x64] ss:$8 sps:$4 sm:$0xff]  }
 0x283   : > { %5854 = vmatmul.mubr.msk.bf16.vlgmr.msra.gmra.mrb[28].mxu1 %vm1902_vm9, %v6780_v14  ;;  %v6847_v14 = vld [vmem:[%s9388_s4 + $0x60] ss:$8 sps:$4 sm:$0xff]  }
 0x284   : > { %2233 = vmatpush1.bf16.msra.mxu1 %v6781_v15  ;;  %v6852_v15 = vld [vmem:[%s9388_s4 + $0x74] ss:$8 sps:$4 sm:$0xff]  }
 0x285   : > { %2234 = vmatprep.subr.bf16.mxu1 %v6786_v20  ;;  %v6850_v20 = vld [vmem:[%s9388_s4 + $0x70] ss:$8 sps:$4 sm:$0xff]  }
 0x288   : > { %2235 = vmatpush1.bf16.msra.mxu1 %v6784_v21  ;;  %v6855_v21 = vld [vmem:[%s9388_s4 + $0x84] ss:$8 sps:$4 sm:$0xff]  }
 0x289   : > { %2236 = vmatprep.subr.bf16.mxu1 %v6789_v22  ;;  %v6853_v22 = vld [vmem:[%s9388_s4 + $0x80] ss:$8 sps:$4 sm:$0xff]  }
 0x28c   : > { %2237 = vmatpush1.bf16.msra.mxu1 %v6787_v23  ;;  %v6858_v23 = vld [vmem:[%s9388_s4 + $0x94] ss:$8 sps:$4 sm:$0xff]  }
 0x28d   : > { %2238 = vmatprep.subr.bf16.mxu1 %v6792_v24  ;;  %v6856_v24 = vld [vmem:[%s9388_s4 + $0x90] ss:$8 sps:$4 sm:$0xff]  }
 0x290   : > { %2239 = vmatpush1.bf16.msra.mxu1 %v6790_v25  ;;  %v6861_v25 = vld [vmem:[%s9388_s4 + $0xa4] ss:$8 sps:$4 sm:$0xff]  }
 0x291   : > { %2240 = vmatprep.subr.bf16.mxu1 %v6795_v26  ;;  %v6859_v26 = vld [vmem:[%s9388_s4 + $0xa0] ss:$8 sps:$4 sm:$0xff]  }
 0x294   : > { %2241 = vmatpush1.bf16.msra.mxu1 %v6793_v27  ;;  %v6864_v27 = vld [vmem:[%s9388_s4 + $0xb4] ss:$8 sps:$4 sm:$0xff]  }
 0x295   : > { %2242 = vmatprep.subr.bf16.mxu1 %v6798_v28  ;;  %v6862_v28 = vld [vmem:[%s9388_s4 + $0xb0] ss:$8 sps:$4 sm:$0xff]  }
 0x298   : > { %2243 = vmatpush1.bf16.msra.mxu1 %v6796_v29  ;;  %v6867_v29 = vld [vmem:[%s9388_s4 + $0xc4] ss:$8 sps:$4 sm:$0xff]  }
 0x299   : > { %2244 = vmatprep.subr.bf16.mxu1 %v6801_v30  ;;  %v6865_v30 = vld [vmem:[%s9388_s4 + $0xc0] ss:$8 sps:$4 sm:$0xff]  }
 0x29c   : > { %2245 = vmatpush1.bf16.msra.mxu1 %v6799_v32  ;;  %v6870_v32 = vld [vmem:[%s9388_s4 + $0xd4] ss:$8 sps:$4 sm:$0xff]  }
 0x29d   : > { %2246 = vmatprep.subr.bf16.mxu1 %v6804_v33  ;;  %v6868_v33 = vld [vmem:[%s9388_s4 + $0xd0] ss:$8 sps:$4 sm:$0xff]  }
 0x2a0   : > { %2247 = vmatpush1.bf16.msra.mxu1 %v6802_v36  ;;  %v6873_v36 = vld [vmem:[%s9388_s4 + $0xe4] ss:$8 sps:$4 sm:$0xff]  }
 0x2a1   : > { %2248 = vmatprep.subr.bf16.mxu1 %v6807_v37  ;;  %v6871_v37 = vld [vmem:[%s9388_s4 + $0xe0] ss:$8 sps:$4 sm:$0xff]  }
 0x2a4   : > { %2249 = vmatpush1.bf16.msra.mxu1 %v6805_v38  ;;  %v6876_v38 = vld [vmem:[%s9388_s4 + $0xf4] ss:$8 sps:$4 sm:$0xff]  }
 0x2a5   : > { %2250 = vmatprep.subr.bf16.mxu1 %v6810_v39  ;;  %v6874_v39 = vld [vmem:[%s9388_s4 + $0xf0] ss:$8 sps:$4 sm:$0xff]  }
 0x2a8   : > { %2251 = vmatpush1.bf16.msra.mxu1 %v6808_v40  ;;  %v6880_v40 = vld [vmem:[%s9388_s4 + $0x204] ss:$8 sps:$4 sm:$0xff]  }
 0x2a9   : > { %2252 = vmatprep.subr.bf16.mxu1 %v6813_v31  ;;  %v6877_v31 = vld [vmem:[%s9387_s28 + $0x10] sm:$0xff]  }
 0x2ac   : > { %2253 = vmatpush1.bf16.msra.mxu1 %v6811_v35  ;;  %v6878_v35 = vld [vmem:[%s9388_s4 + $0x200] ss:$8 sps:$4 sm:$0xff]  }
 0x2ad   : > { %2254 = vmatprep.subr.bf16.mxu1 %v6816_v43  ;;  %v6883_v43 = vld [vmem:[%s9388_s4 + $0x214] ss:$8 sps:$4 sm:$0xff]  }
 0x2b0   : > { %2255 = vmatpush1.bf16.msra.mxu1 %v6814_v47  ;;  %v6881_v47 = vld [vmem:[%s9388_s4 + $0x210] ss:$8 sps:$4 sm:$0xff]  }
 0x2b1   : > { %2256 = vmatprep.subr.bf16.mxu1 %v6819_v49  ;;  %v6886_v49 = vld [vmem:[%s9388_s4 + $0x224] ss:$8 sps:$4 sm:$0xff]  }
 0x2b4   : > { %2257 = vmatpush1.bf16.msra.mxu1 %v6817_v41  ;;  %v6884_v41 = vld [vmem:[%s9388_s4 + $0x220] ss:$8 sps:$4 sm:$0xff]  }
 0x2b5   : > { %2258 = vmatprep.subr.bf16.mxu1 %v6822_v45  ;;  %v6889_v45 = vld [vmem:[%s9388_s4 + $0x234] ss:$8 sps:$4 sm:$0xff]  }
 0x2b8   : > { %2259 = vmatpush1.bf16.msra.mxu1 %v6820_v46  ;;  %v6887_v46 = vld [vmem:[%s9388_s4 + $0x230] ss:$8 sps:$4 sm:$0xff]  }
 0x2b9   : > { %2260 = vmatprep.subr.bf16.mxu1 %v6825_v52  ;;  %v6890_v52 = vld [vmem:[%s9388_s4 + $0x240] ss:$8 sps:$4 sm:$0xff]  }
 0x2bc   : > { %2261 = vmatpush1.bf16.msra.mxu1 %v6823_v50  ;;  %v6892_v50 = vld [vmem:[%s9388_s4 + $0x244] ss:$8 sps:$4 sm:$0xff]  }
 0x2bd   : > { %2262 = vmatprep.subr.bf16.mxu1 %v6828_v53  ;;  %v6895_v53 = vld [vmem:[%s9388_s4 + $0x254] ss:$8 sps:$4 sm:$0xff]  }
 0x2c0   : > { %2263 = vmatpush1.bf16.msra.mxu1 %v6826_v54  ;;  %v6893_v54 = vld [vmem:[%s9388_s4 + $0x250] ss:$8 sps:$4 sm:$0xff]  }
 0x2c1   : > { %2435 = vmatprep.subr.bf16.mxu1 %v6831_v55  ;;  %v6898_v55 = vld [vmem:[%s9388_s4 + $0x264] ss:$8 sps:$4 sm:$0xff]  }
 0x34e   : > { %v8116_v56 = vpop.f32.mrb[24].mxu1 }
 0x34f   : > { %v1942_v57 = vpop.f32.mrb[25].mxu1 }
 0x350   : > { %v8118_v58 = vpop.f32.mrb[26].mxu1 }
 0x351   : > { %v1949_v44 = vpack.c.bf16 %v8118_v58, %v8116_v56  ;;  %v1946_v48 = vpop.f32.mrb[27].mxu1  ;;  %v6896_v56 = vld [vmem:[%s9388_s4 + $0x260] ss:$8 sps:$4 sm:$0xff]   ;;  %v6899_v58 = vld [vmem:[%s9388_s4 + $0x270] ss:$8 sps:$4 sm:$0xff]  }
 0x352   : > { %v1950_v60 = vpack.c.bf16 %v1946_v48, %v1942_v57  ;;  %v6901_v57 = vld [vmem:[%s9388_s4 + $0x274] ss:$8 sps:$4 sm:$0xff]   ;;  %v6902_v48 = vld [vmem:[%s9388_s4 + $0x280] ss:$8 sps:$4 sm:$0xff]  }
 0x356   : > { %v2028_v59 = vpop.f32.mrb[28].mxu1 }
 0x357   : > { %v2030_v62 = vpop.f32.mrb[29].mxu1 }
 0x358   : > { %v2032_v63 = vpop.f32.mrb[30].mxu1 }
 0x359   : > { %v2037_v0 = vpack.c.bf16 %v2032_v63, %v2028_v59  ;;  %v2034_v2 = vpop.f32.mrb[31].mxu1  ;;  %v6905_v59 = vld [vmem:[%s9388_s4 + $0x290] ss:$8 sps:$4 sm:$0xff]   ;;  %v6908_v63 = vld [vmem:[%s9388_s4 + $0x2a0] ss:$8 sps:$4 sm:$0xff]  }
 0x35a   : > { %v2038_v3 = vpack.c.bf16 %v2034_v2, %v2030_v62  ;;  %v6910_v62 = vld [vmem:[%s9388_s4 + $0x2a4] ss:$8 sps:$4 sm:$0xff]   ;;  %v6911_v2 = vld [vmem:[%s9388_s4 + $0x2b0] ss:$8 sps:$4 sm:$0xff]  }
 0x35c   : > { %2264 = vmatprep.mubr.bf16.mxu1 %v2038_v3  ;;  %v6916_v3 = vld [vmem:[%s9388_s4 + $0x2c4] ss:$8 sps:$4 sm:$0xff]  }
 0x35d   : > { %2265 = vmatmul.mubr.bf16.vlgmr.msra.gmra.mrb[32].mxu1 %v2037_v0  ;;  %v6913_v0 = vld [vmem:[%s9388_s4 + $0x2b4] ss:$8 sps:$4 sm:$0xff]  }
 0x35e   : > { %2436 = vmatpush1.bf16.msra.mxu1 %v6829_v4  ;;  %2467 = vmatprep.mubr.bf16.mxu1 %v1950_v60  ;;  %v6907_v60 = vld [vmem:[%s9388_s4 + $0x294] ss:$8 sps:$4 sm:$0xff]   ;;  %v6914_v4 = vld [vmem:[%s9388_s4 + $0x2c0] ss:$8 sps:$4 sm:$0xff]  }
 0x35f   : > { %2437 = vmatprep.subr.bf16.mxu1 %v6834_v5  ;;  %v6919_v5 = vld [vmem:[%s9388_s4 + $0x2d4] ss:$8 sps:$4 sm:$0xff]  }
 0x362   : > { %2438 = vmatpush1.bf16.msra.mxu1 %v6832_v6  ;;  %v6917_v6 = vld [vmem:[%s9388_s4 + $0x2d0] ss:$8 sps:$4 sm:$0xff]  }
 0x363   : > { %2439 = vmatprep.subr.bf16.mxu1 %v6837_v7  ;;  %v6922_v7 = vld [vmem:[%s9388_s4 + $0x2e4] ss:$8 sps:$4 sm:$0xff]  }
 0x366   : > { %2440 = vmatpush1.bf16.msra.mxu1 %v6835_v8  ;;  %v6920_v8 = vld [vmem:[%s9388_s4 + $0x2e0] ss:$8 sps:$4 sm:$0xff]  }
 0x367   : > { %2441 = vmatprep.subr.bf16.mxu1 %v6840_v9  ;;  %v6925_v9 = vld [vmem:[%s9388_s4 + $0x2f4] ss:$8 sps:$4 sm:$0xff]  }
 0x36a   : > { %2442 = vmatpush1.bf16.msra.mxu1 %v6838_v10  ;;  %v6923_v10 = vld [vmem:[%s9388_s4 + $0x2f0] ss:$8 sps:$4 sm:$0xff]  }
 0x36b   : > { %2443 = vmatprep.subr.bf16.mxu1 %v6843_v12 }
 0x36e   : > { %2444 = vmatpush1.bf16.msra.mxu1 %v6841_v13 }
 0x36f   : > { %2445 = vmatprep.subr.bf16.mxu1 %v6846_v17 }
 0x372   : > { %2446 = vmatpush1.bf16.msra.mxu1 %v6844_v19 }
 0x373   : > { %2447 = vmatprep.subr.bf16.mxu1 %v6849_v11 }
 0x376   : > { %2448 = vmatpush1.bf16.msra.mxu1 %v6847_v14 }
 0x377   : > { %2449 = vmatprep.subr.bf16.mxu1 %v6852_v15  ;;  %v6929_v15 = vld [vmem:[%s9388_s4 + $0x304] ss:$8 sps:$4 sm:$0xff]  }
 0x37a   : > { %2450 = vmatpush1.bf16.msra.mxu1 %v6850_v20  ;;  %v6927_v20 = vld [vmem:[%s9388_s4 + $0x300] ss:$8 sps:$4 sm:$0xff]  }
 0x37b   : > { %2451 = vmatprep.subr.bf16.mxu1 %v6855_v21  ;;  %v6933_v21 = vld [vmem:[%s9388_s4 + $0x320] ss:$8 sps:$4 sm:$0xff]  }
 0x37e   : > { %2452 = vmatpush1.bf16.msra.mxu1 %v6853_v22  ;;  %v6938_v22 = vld [vmem:[%s9388_s4 + $0x334] ss:$8 sps:$4 sm:$0xff]  }
 0x37f   : > { %2453 = vmatprep.subr.bf16.mxu1 %v6858_v23  ;;  %v6936_v23 = vld [vmem:[%s9388_s4 + $0x330] ss:$8 sps:$4 sm:$0xff]  }
 0x382   : > { %2454 = vmatpush1.bf16.msra.mxu1 %v6856_v24  ;;  %v6941_v24 = vld [vmem:[%s9388_s4 + $0x344] ss:$8 sps:$4 sm:$0xff]  }
 0x383   : > { %2455 = vmatprep.subr.bf16.mxu1 %v6861_v25  ;;  %v6939_v25 = vld [vmem:[%s9388_s4 + $0x340] ss:$8 sps:$4 sm:$0xff]  }
 0x386   : > { %2456 = vmatpush1.bf16.msra.mxu1 %v6859_v26  ;;  %v6944_v26 = vld [vmem:[%s9388_s4 + $0x354] ss:$8 sps:$4 sm:$0xff]  }
 0x387   : > { %2457 = vmatprep.subr.bf16.mxu1 %v6864_v27  ;;  %v6942_v27 = vld [vmem:[%s9388_s4 + $0x350] ss:$8 sps:$4 sm:$0xff]  }
 0x38a   : > { %2458 = vmatpush1.bf16.msra.mxu1 %v6862_v28  ;;  %v6947_v28 = vld [vmem:[%s9388_s4 + $0x364] ss:$8 sps:$4 sm:$0xff]  }
 0x38b   : > { %2459 = vmatprep.subr.bf16.mxu1 %v6867_v29  ;;  %v6945_v29 = vld [vmem:[%s9388_s4 + $0x360] ss:$8 sps:$4 sm:$0xff]  }
 0x38e   : > { %2460 = vmatpush1.bf16.msra.mxu1 %v6865_v30  ;;  %v6950_v30 = vld [vmem:[%s9388_s4 + $0x374] ss:$8 sps:$4 sm:$0xff]  }
 0x38f   : > { %2461 = vmatprep.subr.bf16.mxu1 %v6870_v32  ;;  %v6948_v32 = vld [vmem:[%s9388_s4 + $0x370] ss:$8 sps:$4 sm:$0xff]  }
 0x392   : > { %2462 = vmatpush1.bf16.msra.mxu1 %v6868_v33  ;;  %v6953_v33 = vld [vmem:[%s9388_s4 + $0x384] ss:$8 sps:$4 sm:$0xff]  }
 0x393   : > { %2463 = vmatprep.subr.bf16.mxu1 %v6873_v36  ;;  %v6951_v36 = vld [vmem:[%s9388_s4 + $0x380] ss:$8 sps:$4 sm:$0xff]  }
 0x396   : > { %2464 = vmatpush1.bf16.msra.mxu1 %v6871_v37  ;;  %v6956_v37 = vld [vmem:[%s9388_s4 + $0x394] ss:$8 sps:$4 sm:$0xff]  }
 0x397   : > { %2465 = vmatprep.subr.bf16.mxu1 %v6876_v38  ;;  %v6954_v38 = vld [vmem:[%s9388_s4 + $0x390] ss:$8 sps:$4 sm:$0xff]  }
 0x39a   : > { %2466 = vmatpush1.bf16.msra.mxu1 %v6874_v39  ;;  %v6959_v39 = vld [vmem:[%s9388_s4 + $0x3a4] ss:$8 sps:$4 sm:$0xff]  }
 0x39b   : > { %2489 = vmatprep.subr.bf16.mxu1 %v7994_v61 }
 0x39d   : > { %2468 = vmatmul.mubr.bf16.vlgmr.msra.gmra.mrb[32].mxu1 %v1949_v44  ;;  %v6904_v44 = vld [vmem:[%s9388_s4 + $0x284] ss:$8 sps:$4 sm:$0xff]  }
 0x39e   : > { %2490 = vmatpush1.bf16.msra.mxu1 %v7992_v51  ;;  %2521 = vmatprep.mubr.bf16.mxu1 %v7376_v1 }
 0x39f   : > { %2491 = vmatprep.subr.bf16.mxu1 %v8000_v18 }
 0x3a2   : > { %2492 = vmatpush1.bf16.msra.mxu1 %v7998_v16 }
 0x3a3   : > { %2727 = vmatprep.subr.bf16.mxu1 %v6880_v40  ;;  %v6957_v40 = vld [vmem:[%s9388_s4 + $0x3a0] ss:$8 sps:$4 sm:$0xff]  }
 0x3a5   : > { %5954 = vmatmul.mubr.msk.bf16.vlgmr.msra.gmra.mrb[36].mxu1 %vm1902_vm9, %v6877_v31  ;;  %v6962_v31 = vld [vmem:[%s9388_s4 + $0x3b4] ss:$8 sps:$4 sm:$0xff]  }
 0x3a6   : > { %2728 = vmatpush1.bf16.msra.mxu1 %v6878_v35  ;;  %v6960_v35 = vld [vmem:[%s9388_s4 + $0x3b0] ss:$8 sps:$4 sm:$0xff]  }
 0x3a7   : > { %2729 = vmatprep.subr.bf16.mxu1 %v6883_v43  ;;  %v6965_v43 = vld [vmem:[%s9388_s4 + $0x3c4] ss:$8 sps:$4 sm:$0xff]  }
 0x3aa   : > { %2730 = vmatpush1.bf16.msra.mxu1 %v6881_v47  ;;  %v6963_v47 = vld [vmem:[%s9388_s4 + $0x3c0] ss:$8 sps:$4 sm:$0xff]  }
 0x3ab   : > { %2731 = vmatprep.subr.bf16.mxu1 %v6886_v49  ;;  %v6968_v49 = vld [vmem:[%s9388_s4 + $0x3d4] ss:$8 sps:$4 sm:$0xff]  }
 0x3ae   : > { %2732 = vmatpush1.bf16.msra.mxu1 %v6884_v41  ;;  %v6966_v41 = vld [vmem:[%s9388_s4 + $0x3d0] ss:$8 sps:$4 sm:$0xff]  }
 0x3af   : > { %2733 = vmatprep.subr.bf16.mxu1 %v6889_v45  ;;  %v6971_v45 = vld [vmem:[%s9388_s4 + $0x3e4] ss:$8 sps:$4 sm:$0xff]  }
 0x3b2   : > { %2734 = vmatpush1.bf16.msra.mxu1 %v6887_v46  ;;  %v6969_v46 = vld [vmem:[%s9388_s4 + $0x3e0] ss:$8 sps:$4 sm:$0xff]  }
 0x3b3   : > { %2735 = vmatprep.subr.bf16.mxu1 %v6892_v50  ;;  %v6974_v50 = vld [vmem:[%s9388_s4 + $0x3f4] ss:$8 sps:$4 sm:$0xff]  }
 0x3b6   : > { %2736 = vmatpush1.bf16.msra.mxu1 %v6890_v52  ;;  %v6972_v52 = vld [vmem:[%s9388_s4 + $0x3f0] ss:$8 sps:$4 sm:$0xff]  }
 0x3b7   : > { %2737 = vmatprep.subr.bf16.mxu1 %v6895_v53 }
 0x3ba   : > { %2738 = vmatpush1.bf16.msra.mxu1 %v6893_v54 }
 0x3bb   : > { %2739 = vmatprep.subr.bf16.mxu1 %v6898_v55 }
 0x3be   : > { %2740 = vmatpush1.bf16.msra.mxu1 %v6896_v56 }
 0x3bf   : > { %2741 = vmatprep.subr.bf16.mxu1 %v6901_v57 }
 0x3c2   : > { %2742 = vmatpush1.bf16.msra.mxu1 %v6899_v58 }
 0x3c3   : > { %2743 = vmatprep.subr.bf16.mxu1 %v6904_v44  ;;  %v3070_v44 = vld [vmem:[%s9357_s6] sm:$0x3] }
 0x3c6   : > { %2744 = vmatpush1.bf16.msra.mxu1 %v6902_v48  ;;  %v3075_v48 = vrot.slane %v3070_v44, %v7983_v42 }
 0x3c7   : > { %2745 = vmatprep.subr.bf16.mxu1 %v6907_v60  ;;  %v3079_v60 = vrot.slane %v3070_v44, %v7988_v34 }
 0x3ca   : > { %2746 = vmatpush1.bf16.msra.mxu1 %v6905_v59 }
 0x3cb   : > { %2747 = vmatprep.subr.bf16.mxu1 %v6910_v62 }
 0x3ce   : > { %2748 = vmatpush1.bf16.msra.mxu1 %v6908_v63 }
 0x3cf   : > { %2749 = vmatprep.subr.bf16.mxu1 %v6913_v0 }
 0x3d2   : > { %2750 = vmatpush1.bf16.msra.mxu1 %v6911_v2 }
 0x3d3   : > { %2751 = vmatprep.subr.bf16.mxu1 %v6916_v3 }
 0x3d6   : > { %2752 = vmatpush1.bf16.msra.mxu1 %v6914_v4 }
 0x3d7   : > { %2753 = vmatprep.subr.bf16.mxu1 %v6919_v5 }
 0x3da   : > { %2754 = vmatpush1.bf16.msra.mxu1 %v6917_v6 }
 0x3db   : > { %2755 = vmatprep.subr.bf16.mxu1 %v6922_v7 }
 0x3de   : > { %2756 = vmatpush1.bf16.msra.mxu1 %v6920_v8 }
 0x3df   : > { %2757 = vmatprep.subr.bf16.mxu1 %v6925_v9 }
 0x3e2   : > { %2758 = vmatpush1.bf16.msra.mxu1 %v6923_v10 }
 0x3e3   : > { %2785 = vmatprep.subr.bf16.mxu1 %v7994_v61  ;;  %v6926_v61 = vld [vmem:[%s9387_s28 + $0x18] sm:$0xff]  }
 0x478   : > { %v2523_v12 = vpop.f32.mrb[36].mxu1 }
 0x479   : > { %v2525_v13 = vpop.f32.mrb[37].mxu1 }
 0x47a   : > { %v2527_v17 = vpop.f32.mrb[38].mxu1 }
 0x47b   : > { %v2532_v19 = vpack.c.bf16 %v2527_v17, %v2523_v12  ;;  %v2529_v11 = vpop.f32.mrb[39].mxu1 }
 0x47c   : > { %v2533_v14 = vpack.c.bf16 %v2529_v11, %v2525_v13 }
 0x47e   : > { %2759 = vmatprep.mubr.bf16.mxu1 %v2533_v14 }
 0x47f   : > { %2760 = vmatmul.mubr.bf16.vlgmr.msra.gmra.mrb[32].mxu1 %v2532_v19 }
 0x480   : > { %2786 = vmatpush1.bf16.msra.mxu1 %v7992_v51  ;;  %2817 = vmatprep.mubr.bf16.mxu1 %v7376_v1  ;;  %v6932_v51 = vld [vmem:[%s9388_s4 + $0x314] ss:$8 sps:$4 sm:$0xff]  }
 0x481   : > { %2787 = vmatprep.subr.bf16.mxu1 %v8000_v18  ;;  %v6930_v18 = vld [vmem:[%s9388_s4 + $0x310] ss:$8 sps:$4 sm:$0xff]  }
 0x484   : > { %2788 = vmatpush1.bf16.msra.mxu1 %v7998_v16  ;;  %v6935_v16 = vld [vmem:[%s9388_s4 + $0x324] ss:$8 sps:$4 sm:$0xff]  }
 0x485   : > { %3023 = vmatprep.subr.bf16.mxu1 %v6929_v15 }
 0x487   : > { %6022 = vmatmul.mubr.msk.bf16.vlgmr.msra.gmra.mrb[40].mxu1 %vm1902_vm9, %v6926_v61 }
 0x488   : > { %3024 = vmatpush1.bf16.msra.mxu1 %v6927_v20 }
 0x489   : > { %3025 = vmatprep.subr.bf16.mxu1 %v6932_v51 }
 0x48c   : > { %3026 = vmatpush1.bf16.msra.mxu1 %v6930_v18 }
 0x48d   : > { %3027 = vmatprep.subr.bf16.mxu1 %v6935_v16 }
 0x490   : > { %3028 = vmatpush1.bf16.msra.mxu1 %v6933_v21 }
 0x491   : > { %3029 = vmatprep.subr.bf16.mxu1 %v6938_v22 }
 0x494   : > { %3030 = vmatpush1.bf16.msra.mxu1 %v6936_v23 }
 0x495   : > { %3031 = vmatprep.subr.bf16.mxu1 %v6941_v24 }
 0x498   : > { %3032 = vmatpush1.bf16.msra.mxu1 %v6939_v25 }
 0x499   : > { %3033 = vmatprep.subr.bf16.mxu1 %v6944_v26 }
 0x49c   : > { %3034 = vmatpush1.bf16.msra.mxu1 %v6942_v27 }
 0x49d   : > { %3035 = vmatprep.subr.bf16.mxu1 %v6947_v28 }
 0x4a0   : > { %3036 = vmatpush1.bf16.msra.mxu1 %v6945_v29 }
 0x4a1   : > { %3037 = vmatprep.subr.bf16.mxu1 %v6950_v30 }
 0x4a4   : > { %3038 = vmatpush1.bf16.msra.mxu1 %v6948_v32 }
 0x4a5   : > { %3039 = vmatprep.subr.bf16.mxu1 %v6953_v33 }
 0x4a8   : > { %3040 = vmatpush1.bf16.msra.mxu1 %v6951_v36 }
 0x4a9   : > { %3041 = vmatprep.subr.bf16.mxu1 %v6956_v37 }
 0x4ac   : > { %3042 = vmatpush1.bf16.msra.mxu1 %v6954_v38 }
 0x4ad   : > { %3043 = vmatprep.subr.bf16.mxu1 %v6959_v39 }
 0x4b0   : > { %3044 = vmatpush1.bf16.msra.mxu1 %v6957_v40  ;;  %v3130_v40 = vld [vmem:[%s9358_s7 + $0x8] sm:$0xff] }
 0x4b1   : > { %3045 = vmatprep.subr.bf16.mxu1 %v6962_v31 }
 0x4b4   : > { %3046 = vmatpush1.bf16.msra.mxu1 %v6960_v35  ;;  %v3132_v35 = vld [vmem:[%s9358_s7 + $0x18] sm:$0xff] }
 0x4b5   : > { %3047 = vmatprep.subr.bf16.mxu1 %v6965_v43  ;;  %v3129_v43 = vld [vmem:[%s9358_s7] sm:$0xff] }
 0x4b8   : > { %3048 = vmatpush1.bf16.msra.mxu1 %v6963_v47  ;;  %v3131_v47 = vld [vmem:[%s9358_s7 + $0x10] sm:$0xff] }
 0x4b9   : > { %3049 = vmatprep.subr.bf16.mxu1 %v6968_v49 }
 0x4bc   : > { %3050 = vmatpush1.bf16.msra.mxu1 %v6966_v41 }
 0x4bd   : > { %3051 = vmatprep.subr.bf16.mxu1 %v6971_v45  ;;  %v3138_v45 = vld [vmem:[%s9359_s8 + $0x8] sm:$0xff] }
 0x4c0   : > { %3052 = vmatpush1.bf16.msra.mxu1 %v6969_v46 }
 0x4c1   : > { %3053 = vmatprep.subr.bf16.mxu1 %v6974_v50 }
 0x4c4   : > { %3054 = vmatpush1.bf16.msra.mxu1 %v6972_v52  ;;  %v3140_v52 = vld [vmem:[%s9359_s8 + $0x18] sm:$0xff] }
 0x55a   : > { %v2819_v53 = vpop.f32.mrb[40].mxu1 }
 0x55b   : > { %v2821_v54 = vpop.f32.mrb[41].mxu1 }
 0x55c   : > { %v2823_v55 = vpop.f32.mrb[42].mxu1 }
 0x55d   : > { %v2828_v56 = vpack.c.bf16 %v2823_v55, %v2819_v53  ;;  %v2825_v57 = vpop.f32.mrb[43].mxu1  ;;  %v3137_v53 = vld [vmem:[%s9359_s8] sm:$0xff] }
 0x55e   : > { %v2829_v58 = vpack.c.bf16 %v2825_v57, %v2821_v54  ;;  %v3139_v54 = vld [vmem:[%s9359_s8 + $0x10] sm:$0xff] }
 0x560   : > { %3055 = vmatprep.mubr.bf16.mxu1 %v2829_v58 }
 0x561   : > { %3056 = vmatmul.mubr.bf16.vlgmr.msra.gmra.mrb[32].mxu1 %v2828_v56 }
 0x562   : > { %3759 = vmatprep.mubr.bf16.mxu1 %v7376_v1 }
 0x634   : > { %v3057_v59 = vpop.f32.mrb[32].mxu1 }
 0x635   : > { %v3082_v62 = vadd.f32 %v3075_v48, %v3057_v59  ;;  %v3059_v63 = vpop.f32.mrb[33].mxu1 }
 0x636   : > { %v3083_v0 = vadd.f32 %v3079_v60, %v3059_v63  ;;  %v3061_v2 = vpop.f32.mrb[34].mxu1 }
 0x637   : > { %v3084_v3 = vadd.f32 %v3075_v48, %v3061_v2  ;;  %v3063_v4 = vpop.f32.mrb[35].mxu1 }
 0x638   : > { %v3086_v5 = vadd.f32 %v3083_v0, %v3082_v62  ;;  %v3085_v6 = vadd.f32 %v3079_v60, %v3063_v4 }
 0x63a   : > { %v3087_v7 = vadd.f32 %v3086_v5, %v3084_v3 }
 0x63c   : > { %v3088_v8 = vadd.f32 %v3087_v7, %v3085_v6 }
 0x63e   : > { %3089 = vadd.xlane.f32.xlu0 %v3088_v8 }
 0x6cb   : > { %v3090_v9 = vpop.xlane.xlu0 %3089 }
 0x6cc   : > { %v3091_v10 = vrot.slane %v3090_v9, 4 }
 0x6ce   : > { %v3092_v12 = vadd.f32 %v3091_v10, %v3090_v9  ;;  %v3159_v9 = vld [vmem:[%s9360_s9] sm:$0xf]  ;;  %v6186_v10 = vld [vmem:[%s9360_s9 + $0x8] sm:$0xf] }
 0x6d0   : > { %v3093_v13 = vrot.slane %v3092_v12, 2 }
 0x6d2   : > { %v3094_v17 = vadd.f32 %v3093_v13, %v3092_v12  ;;  %v6977_v12 = vld [vmem:[%s9361_s10 + $0x104] ss:$8 sps:$4 sm:$0xff]  }
 0x6d3   : > { %v6088_v13 = vld [vmem:[%s9360_s9 + $0x4] sm:$0xf] }
 0x6d4   : > { %v3095_v19 = vrot.slane %v3094_v17, 1 }
 0x6d6   : > { %v3096_v11 = vadd.f32 %v3095_v19, %v3094_v17  ;;  %v6975_v17 = vld [vmem:[%s9361_s10 + $0x100] ss:$8 sps:$4 sm:$0xff]   ;;  %v6980_v19 = vld [vmem:[%s9361_s10 + $0x114] ss:$8 sps:$4 sm:$0xff]  }
 0x6d8   : > { %6592 = vpush %v3096_v11  ;;  %v6978_v11 = vld [vmem:[%s9361_s10 + $0x110] ss:$8 sps:$4 sm:$0xff]  }
 0x709   : > { %s6593_s23 = spop %6592 }
 0x70a   : > { %v3098_v14 = vstv %s6593_s23 }
 0x70b   : > { %v3100_v15 = vmul.f32 0.00024414063, %v3098_v14  ;;  %v6983_v14 = vld [vmem:[%s9361_s10 + $0x124] ss:$8 sps:$4 sm:$0xff]  }
 0x70d   : > { %v3101_v61 = vsub.f32 %v3082_v62, %v3100_v15  ;;  %v3102_v20 = vsub.f32 %v3083_v0, %v3100_v15  ;;  %v3103_v51 = vsub.f32 %v3084_v3, %v3100_v15  ;;  %v3104_v18 = vsub.f32 %v3085_v6, %v3100_v15  ;;  %v6981_v15 = vld [vmem:[%s9361_s10 + $0x120] ss:$8 sps:$4 sm:$0xff]  }
 0x70f   : > { %v3105_v16 = vmul.f32 %v3101_v61, %v3101_v61  ;;  %v3106_v21 = vmul.f32 %v3102_v20, %v3102_v20  ;;  %v3107_v22 = vmul.f32 %v3103_v51, %v3103_v51  ;;  %v3108_v24 = vmul.f32 %v3104_v18, %v3104_v18 }
 0x711   : > { %v3109_v23 = vadd.f32 %v3106_v21, %v3105_v16  ;;  %v6992_v16 = vld [vmem:[%s9361_s10 + $0x154] ss:$8 sps:$4 sm:$0xff]   ;;  %v6990_v21 = vld [vmem:[%s9361_s10 + $0x150] ss:$8 sps:$4 sm:$0xff]  }
 0x713   : > { %v3110_v25 = vadd.f32 %v3109_v23, %v3107_v22  ;;  %v6995_v22 = vld [vmem:[%s9361_s10 + $0x164] ss:$8 sps:$4 sm:$0xff]   ;;  %v6993_v23 = vld [vmem:[%s9361_s10 + $0x160] ss:$8 sps:$4 sm:$0xff]  }
 0x715   : > { %v3111_v26 = vadd.f32 %v3110_v25, %v3108_v24  ;;  %v6998_v24 = vld [vmem:[%s9361_s10 + $0x174] ss:$8 sps:$4 sm:$0xff]   ;;  %v6996_v25 = vld [vmem:[%s9361_s10 + $0x170] ss:$8 sps:$4 sm:$0xff]  }
 0x717   : > { %3112 = vadd.xlane.f32.xlu0 %v3111_v26  ;;  %v7001_v26 = vld [vmem:[%s9361_s10 + $0x184] ss:$8 sps:$4 sm:$0xff]  }
 0x7a4   : > { %v3113_v27 = vpop.xlane.xlu0 %3112 }
 0x7a5   : > { %v3114_v28 = vrot.slane %v3113_v27, 4 }
 0x7a7   : > { %v3115_v29 = vadd.f32 %v3114_v28, %v3113_v27  ;;  %v6999_v27 = vld [vmem:[%s9361_s10 + $0x180] ss:$8 sps:$4 sm:$0xff]   ;;  %v7004_v28 = vld [vmem:[%s9361_s10 + $0x194] ss:$8 sps:$4 sm:$0xff]  }
 0x7a9   : > { %v3116_v30 = vrot.slane %v3115_v29, 2 }
 0x7ab   : > { %v3117_v32 = vadd.f32 %v3116_v30, %v3115_v29  ;;  %v7002_v29 = vld [vmem:[%s9361_s10 + $0x190] ss:$8 sps:$4 sm:$0xff]   ;;  %v7007_v30 = vld [vmem:[%s9361_s10 + $0x1a4] ss:$8 sps:$4 sm:$0xff]  }
 0x7ad   : > { %v3118_v33 = vrot.slane %v3117_v32, 1 }
 0x7af   : > { %v3119_v36 = vadd.f32 %v3118_v33, %v3117_v32  ;;  %v7005_v32 = vld [vmem:[%s9361_s10 + $0x1a0] ss:$8 sps:$4 sm:$0xff]   ;;  %v7010_v33 = vld [vmem:[%s9361_s10 + $0x1b4] ss:$8 sps:$4 sm:$0xff]  }
 0x7b1   : > { %6594 = vpush %v3119_v36  ;;  %v7008_v36 = vld [vmem:[%s9361_s10 + $0x1b0] ss:$8 sps:$4 sm:$0xff]  }
 0x7e2   : > { %s6595_s24 = spop %6594 }
 0x7e3   : > { %v3121_v37 = vstv %s6595_s24 }
 0x7e4   : > { %v3122_v38 = vmul.f32 0.00024414063, %v3121_v37  ;;  %v7013_v37 = vld [vmem:[%s9361_s10 + $0x1c4] ss:$8 sps:$4 sm:$0xff]  }
 0x7e6   : > { %v3123_v39 = vadd.f32 1e-05, %v3122_v38  ;;  %v7011_v38 = vld [vmem:[%s9361_s10 + $0x1c0] ss:$8 sps:$4 sm:$0xff]  }
 0x7e8   : > { %7362 = vrsqrt.f32 %v3123_v39  ;;  %v7016_v39 = vld [vmem:[%s9361_s10 + $0x1d4] ss:$8 sps:$4 sm:$0xff]  }
 0x7f2   : > { %v7363_v31 = vpop.eup %7362 }
 0x7f3   : > { %v3126_v49 = vmul.f32 %v7363_v31, %v3102_v20  ;;  %v3128_v41 = vmul.f32 %v7363_v31, %v3104_v18  ;;  %v3125_v46 = vmul.f32 %v7363_v31, %v3101_v61  ;;  %v3127_v50 = vmul.f32 %v7363_v31, %v3103_v51  ;;  %v6986_v61 = vld [vmem:[%s9361_s10 + $0x134] ss:$8 sps:$4 sm:$0xff]   ;;  %v6984_v20 = vld [vmem:[%s9361_s10 + $0x130] ss:$8 sps:$4 sm:$0xff]   ;;  %v6989_v51 = vld [vmem:[%s9361_s10 + $0x144] ss:$8 sps:$4 sm:$0xff]  }
 0x7f4   : > { %v6987_v18 = vld [vmem:[%s9361_s10 + $0x140] ss:$8 sps:$4 sm:$0xff]  }
 0x7f5   : > { %v3134_v55 = vmul.f32 %v3130_v40, %v3126_v49  ;;  %v3136_v56 = vmul.f32 %v3132_v35, %v3128_v41  ;;  %v3133_v57 = vmul.f32 %v3129_v43, %v3125_v46  ;;  %v3135_v58 = vmul.f32 %v3131_v47, %v3127_v50  ;;  %v7014_v40 = vld [vmem:[%s9361_s10 + $0x1d0] ss:$8 sps:$4 sm:$0xff]   ;;  %v7017_v31 = vld [vmem:[%s9361_s10 + $0x1e0] ss:$8 sps:$4 sm:$0xff]   ;;  %v7019_v35 = vld [vmem:[%s9361_s10 + $0x1e4] ss:$8 sps:$4 sm:$0xff]  }
 0x7f6   : > { %v7022_v43 = vld [vmem:[%s9361_s10 + $0x1f4] ss:$8 sps:$4 sm:$0xff]   ;;  %v7020_v47 = vld [vmem:[%s9361_s10 + $0x1f0] ss:$8 sps:$4 sm:$0xff]   ;;  %v7025_v49 = vld [vmem:[%s9361_s10 + $0x4] ss:$8 sps:$4 sm:$0xff]  }
 0x7f7   : > { %v3142_v44 = vadd.f32 %v3138_v45, %v3134_v55  ;;  %v3144_v48 = vadd.f32 %v3140_v52, %v3136_v56  ;;  %v3141_v60 = vadd.f32 %v3137_v53, %v3133_v57  ;;  %v3143_v59 = vadd.f32 %v3139_v54, %v3135_v58  ;;  %v7028_v41 = vld [vmem:[%s9361_s10 + $0x204] ss:$8 sps:$4 sm:$0xff]   ;;  %v7026_v45 = vld [vmem:[%s9361_s10 + $0x200] ss:$8 sps:$4 sm:$0xff]   ;;  %v7034_v46 = vld [vmem:[%s9361_s10 + $0x214] ss:$8 sps:$4 sm:$0xff]  }
 0x7f8   : > { %v7032_v50 = vld [vmem:[%s9361_s10 + $0x210] ss:$8 sps:$4 sm:$0xff]   ;;  %v7040_v52 = vld [vmem:[%s9361_s10 + $0x224] ss:$8 sps:$4 sm:$0xff]   ;;  %v7038_v53 = vld [vmem:[%s9361_s10 + $0x220] ss:$8 sps:$4 sm:$0xff]  }
 0x7f9   : > { %vm3146_vm10 = vcmp.gt.f32.partialorder %v3142_v44, 0.0  ;;  %vm3148_vm11 = vcmp.gt.f32.partialorder %v3144_v48, 0.0  ;;  %v3150_v62 = vmul.f32 0.2, %v3142_v44  ;;  %v3152_v63 = vmul.f32 0.2, %v3144_v48 }
 0x7fa   : > { %vm3145_vm12 = vcmp.gt.f32.partialorder %v3141_v60, 0.0  ;;  %vm3147_vm13 = vcmp.gt.f32.partialorder %v3143_v59, 0.0  ;;  %v3149_v0 = vmul.f32 0.2, %v3141_v60  ;;  %v3151_v2 = vmul.f32 0.2, %v3143_v59 }
 0x7fb   : > { %v3154_v3 = vsel %vm3146_vm10, %v3142_v44, %v3150_v62  ;;  %v3156_v4 = vsel %vm3148_vm11, %v3144_v48, %v3152_v63  ;;  %v7046_v54 = vld [vmem:[%s9361_s10 + $0x234] ss:$8 sps:$4 sm:$0xff]   ;;  %v7044_v55 = vld [vmem:[%s9361_s10 + $0x230] ss:$8 sps:$4 sm:$0xff]   ;;  %v7052_v56 = vld [vmem:[%s9361_s10 + $0x244] ss:$8 sps:$4 sm:$0xff]  }
 0x7fc   : > { %v8458_v5 = vpack.c.bf16 %v3156_v4, %v3154_v3  ;;  %v3153_v6 = vsel %vm3145_vm12, %v3141_v60, %v3149_v0  ;;  %v3155_v7 = vsel %vm3147_vm13, %v3143_v59, %v3151_v2  ;;  %v7050_v57 = vld [vmem:[%s9361_s10 + $0x240] ss:$8 sps:$4 sm:$0xff]   ;;  %v7058_v58 = vld [vmem:[%s9361_s10 + $0x254] ss:$8 sps:$4 sm:$0xff]   ;;  %v7056_v44 = vld [vmem:[%s9361_s10 + $0x250] ss:$8 sps:$4 sm:$0xff]  }
 0x7fd   : > { %v8460_v8 = vpack.c.bf16 %v3155_v7, %v3153_v6  ;;  %v7064_v48 = vld [vmem:[%s9361_s10 + $0x264] ss:$8 sps:$4 sm:$0xff]   ;;  %v7062_v60 = vld [vmem:[%s9361_s10 + $0x260] ss:$8 sps:$4 sm:$0xff]   ;;  %v7070_v59 = vld [vmem:[%s9361_s10 + $0x274] ss:$8 sps:$4 sm:$0xff]  }
 0x7fe   : > { %3164 = vmatprep.subr.bf16.mxu0 %v8458_v5  ;;  %3727 = vmatprep.subr.bf16.mxu1 %v8458_v5  ;;  %v7068_v62 = vld [vmem:[%s9361_s10 + $0x270] ss:$8 sps:$4 sm:$0xff]   ;;  %v7076_v63 = vld [vmem:[%s9361_s10 + $0x284] ss:$8 sps:$4 sm:$0xff]   ;;  %v7074_v0 = vld [vmem:[%s9361_s10 + $0x280] ss:$8 sps:$4 sm:$0xff]  }
 0x7ff   : > { %3165 = vmatpush1.bf16.msra.mxu0 %v8460_v8  ;;  %3728 = vmatpush1.bf16.msra.mxu1 %v8460_v8  ;;  %v7082_v2 = vld [vmem:[%s9361_s10 + $0x294] ss:$8 sps:$4 sm:$0xff]   ;;  %v7080_v3 = vld [vmem:[%s9361_s10 + $0x290] ss:$8 sps:$4 sm:$0xff]   ;;  %v7088_v4 = vld [vmem:[%s9361_s10 + $0x2a4] ss:$8 sps:$4 sm:$0xff]  }
 0x800   : > { %3244 = vmatprep.subr.bf16.mxu0 %v8458_v5  ;;  %3963 = vmatprep.subr.bf16.mxu1 %v7028_v41  ;;  %v7086_v6 = vld [vmem:[%s9361_s10 + $0x2a0] ss:$8 sps:$4 sm:$0xff]   ;;  %v7094_v7 = vld [vmem:[%s9361_s10 + $0x2b4] ss:$8 sps:$4 sm:$0xff]   ;;  %v7053_v41 = vld [vmem:[%s9361_s10 + $0x50] ss:$8 sps:$4 sm:$0xff]  }
 0x802   : > { %6087 = vmatmul.mubr.msk.bf16.vlgmr.msra.gmra.mrb[16].mxu0 %vm3160_vm14, %v3159_v9  ;;  %6187 = vmatmul.mubr.msk.bf16.vlgmr.msra.gmra.mrb[44].mxu1 %vm3160_vm14, %v6186_v10  ;;  %v7092_v9 = vld [vmem:[%s9361_s10 + $0x2b0] ss:$8 sps:$4 sm:$0xff]   ;;  %v7100_v10 = vld [vmem:[%s9361_s10 + $0x2c4] ss:$8 sps:$4 sm:$0xff]  }
 0x803   : > { %3245 = vmatpush1.bf16.msra.mxu0 %v8460_v8  ;;  %3276 = vmatprep.mubr.bf16.mxu0 %v7376_v1 }
 0x804   : > { %3480 = vmatprep.subr.bf16.mxu0 %v6977_v12  ;;  %3964 = vmatpush1.bf16.msra.mxu1 %v7026_v45  ;;  %v7098_v12 = vld [vmem:[%s9361_s10 + $0x2c0] ss:$8 sps:$4 sm:$0xff]   ;;  %v7061_v45 = vld [vmem:[%s9361_s10 + $0x64] ss:$8 sps:$4 sm:$0xff]  }
 0x805   : > { %3965 = vmatprep.subr.bf16.mxu1 %v7034_v46  ;;  %v7059_v46 = vld [vmem:[%s9361_s10 + $0x60] ss:$8 sps:$4 sm:$0xff]  }
 0x808   : > { %3966 = vmatpush1.bf16.msra.mxu1 %v7032_v50  ;;  %v7067_v50 = vld [vmem:[%s9361_s10 + $0x74] ss:$8 sps:$4 sm:$0xff]  }
 0x809   : > { %3967 = vmatprep.subr.bf16.mxu1 %v7040_v52  ;;  %v7065_v52 = vld [vmem:[%s9361_s10 + $0x70] ss:$8 sps:$4 sm:$0xff]  }
 0x80a   : > { %6089 = vmatmul.mubr.msk.bf16.vlgmr.msra.gmra.mrb[20].mxu0 %vm3160_vm14, %v6088_v13  ;;  %v7106_v13 = vld [vmem:[%s9361_s10 + $0x2d4] ss:$8 sps:$4 sm:$0xff]  }
 0x80b   : > { %3481 = vmatpush1.bf16.msra.mxu0 %v6975_v17  ;;  %v7104_v17 = vld [vmem:[%s9361_s10 + $0x2d0] ss:$8 sps:$4 sm:$0xff]  }
 0x80c   : > { %3482 = vmatprep.subr.bf16.mxu0 %v6980_v19  ;;  %3968 = vmatpush1.bf16.msra.mxu1 %v7038_v53  ;;  %v7112_v19 = vld [vmem:[%s9361_s10 + $0x2e4] ss:$8 sps:$4 sm:$0xff]  }
 0x80d   : > { %3969 = vmatprep.subr.bf16.mxu1 %v7046_v54  ;;  %v7073_v53 = vld [vmem:[%s9361_s10 + $0x84] ss:$8 sps:$4 sm:$0xff]   ;;  %v7071_v54 = vld [vmem:[%s9361_s10 + $0x80] ss:$8 sps:$4 sm:$0xff]  }
 0x80f   : > { %3483 = vmatpush1.bf16.msra.mxu0 %v6978_v11  ;;  %v7110_v11 = vld [vmem:[%s9361_s10 + $0x2e0] ss:$8 sps:$4 sm:$0xff]  }
 0x810   : > { %3484 = vmatprep.subr.bf16.mxu0 %v6983_v14  ;;  %3970 = vmatpush1.bf16.msra.mxu1 %v7044_v55  ;;  %v7118_v14 = vld [vmem:[%s9361_s10 + $0x2f4] ss:$8 sps:$4 sm:$0xff]  }
 0x811   : > { %3971 = vmatprep.subr.bf16.mxu1 %v7052_v56  ;;  %v7079_v55 = vld [vmem:[%s9361_s10 + $0x94] ss:$8 sps:$4 sm:$0xff]   ;;  %v7077_v56 = vld [vmem:[%s9361_s10 + $0x90] ss:$8 sps:$4 sm:$0xff]  }
 0x813   : > { %3485 = vmatpush1.bf16.msra.mxu0 %v6981_v15  ;;  %v7116_v15 = vld [vmem:[%s9361_s10 + $0x2f0] ss:$8 sps:$4 sm:$0xff]  }
 0x814   : > { %3486 = vmatprep.subr.bf16.mxu0 %v6986_v61  ;;  %3972 = vmatpush1.bf16.msra.mxu1 %v7050_v57  ;;  %v7085_v57 = vld [vmem:[%s9361_s10 + $0xa4] ss:$8 sps:$4 sm:$0xff]  }
 0x815   : > { %3973 = vmatprep.subr.bf16.mxu1 %v7058_v58  ;;  %v7083_v58 = vld [vmem:[%s9361_s10 + $0xa0] ss:$8 sps:$4 sm:$0xff]  }
 0x817   : > { %3487 = vmatpush1.bf16.msra.mxu0 %v6984_v20 }
 0x818   : > { %3488 = vmatprep.subr.bf16.mxu0 %v6989_v51  ;;  %3974 = vmatpush1.bf16.msra.mxu1 %v7056_v44  ;;  %v7091_v44 = vld [vmem:[%s9361_s10 + $0xb4] ss:$8 sps:$4 sm:$0xff]  }
 0x819   : > { %3975 = vmatprep.subr.bf16.mxu1 %v7064_v48  ;;  %v7089_v48 = vld [vmem:[%s9361_s10 + $0xb0] ss:$8 sps:$4 sm:$0xff]  }
 0x81b   : > { %3489 = vmatpush1.bf16.msra.mxu0 %v6987_v18 }
 0x81c   : > { %3490 = vmatprep.subr.bf16.mxu0 %v6992_v16  ;;  %3976 = vmatpush1.bf16.msra.mxu1 %v7062_v60  ;;  %v7097_v60 = vld [vmem:[%s9361_s10 + $0xc4] ss:$8 sps:$4 sm:$0xff]  }
 0x81d   : > { %3977 = vmatprep.subr.bf16.mxu1 %v7070_v59  ;;  %v7095_v59 = vld [vmem:[%s9361_s10 + $0xc0] ss:$8 sps:$4 sm:$0xff]  }
 0x81f   : > { %3491 = vmatpush1.bf16.msra.mxu0 %v6990_v21 }
 0x820   : > { %3492 = vmatprep.subr.bf16.mxu0 %v6995_v22  ;;  %3978 = vmatpush1.bf16.msra.mxu1 %v7068_v62  ;;  %v7103_v62 = vld [vmem:[%s9361_s10 + $0xd4] ss:$8 sps:$4 sm:$0xff]  }
 0x821   : > { %3979 = vmatprep.subr.bf16.mxu1 %v7076_v63  ;;  %v7101_v63 = vld [vmem:[%s9361_s10 + $0xd0] ss:$8 sps:$4 sm:$0xff]  }
 0x823   : > { %3493 = vmatpush1.bf16.msra.mxu0 %v6993_v23 }
 0x824   : > { %3494 = vmatprep.subr.bf16.mxu0 %v6998_v24  ;;  %3980 = vmatpush1.bf16.msra.mxu1 %v7074_v0  ;;  %v7109_v0 = vld [vmem:[%s9361_s10 + $0xe4] ss:$8 sps:$4 sm:$0xff]  }
 0x825   : > { %3981 = vmatprep.subr.bf16.mxu1 %v7082_v2  ;;  %v7107_v2 = vld [vmem:[%s9361_s10 + $0xe0] ss:$8 sps:$4 sm:$0xff]  }
 0x827   : > { %3495 = vmatpush1.bf16.msra.mxu0 %v6996_v25 }
 0x828   : > { %3496 = vmatprep.subr.bf16.mxu0 %v7001_v26  ;;  %3982 = vmatpush1.bf16.msra.mxu1 %v7080_v3  ;;  %v7115_v3 = vld [vmem:[%s9361_s10 + $0xf4] ss:$8 sps:$4 sm:$0xff]  }
 0x829   : > { %3983 = vmatprep.subr.bf16.mxu1 %v7088_v4  ;;  %v7113_v4 = vld [vmem:[%s9361_s10 + $0xf0] ss:$8 sps:$4 sm:$0xff]  }
 0x82b   : > { %3497 = vmatpush1.bf16.msra.mxu0 %v6999_v27 }
 0x82c   : > { %3498 = vmatprep.subr.bf16.mxu0 %v7004_v28  ;;  %3984 = vmatpush1.bf16.msra.mxu1 %v7086_v6 }
 0x82d   : > { %3985 = vmatprep.subr.bf16.mxu1 %v7094_v7  ;;  %v6252_v7 = vld [vmem:[%s9360_s9 + $0xc] sm:$0xf] }
 0x82f   : > { %3499 = vmatpush1.bf16.msra.mxu0 %v7002_v29  ;;  %v7023_v29 = vld [vmem:[%s9361_s10] ss:$8 sps:$4 sm:$0xff]  }
 0x830   : > { %3500 = vmatprep.subr.bf16.mxu0 %v7007_v30  ;;  %3986 = vmatpush1.bf16.msra.mxu1 %v7092_v9  ;;  %v7119_v9 = vld [vmem:[%s9361_s10 + $0x300] ss:$8 sps:$4 sm:$0xff]  }
 0x831   : > { %3987 = vmatprep.subr.bf16.mxu1 %v7100_v10  ;;  %v7121_v10 = vld [vmem:[%s9361_s10 + $0x304] ss:$8 sps:$4 sm:$0xff]  }
 0x833   : > { %3501 = vmatpush1.bf16.msra.mxu0 %v7005_v32 }
 0x834   : > { %3502 = vmatprep.subr.bf16.mxu0 %v7010_v33  ;;  %3988 = vmatpush1.bf16.msra.mxu1 %v7098_v12  ;;  %v7127_v12 = vld [vmem:[%s9361_s10 + $0x324] ss:$8 sps:$4 sm:$0xff]  }
 0x835   : > { %3989 = vmatprep.subr.bf16.mxu1 %v7106_v13  ;;  %v7125_v13 = vld [vmem:[%s9361_s10 + $0x320] ss:$8 sps:$4 sm:$0xff]  }
 0x837   : > { %3503 = vmatpush1.bf16.msra.mxu0 %v7008_v36  ;;  %v7031_v36 = vld [vmem:[%s9361_s10 + $0x14] ss:$8 sps:$4 sm:$0xff]  }
 0x838   : > { %3504 = vmatprep.subr.bf16.mxu0 %v7013_v37  ;;  %3990 = vmatpush1.bf16.msra.mxu1 %v7104_v17  ;;  %v7130_v17 = vld [vmem:[%s9361_s10 + $0x334] ss:$8 sps:$4 sm:$0xff]  }
 0x839   : > { %3991 = vmatprep.subr.bf16.mxu1 %v7112_v19  ;;  %v7128_v19 = vld [vmem:[%s9361_s10 + $0x330] ss:$8 sps:$4 sm:$0xff]  }
 0x83b   : > { %3505 = vmatpush1.bf16.msra.mxu0 %v7011_v38  ;;  %v7029_v38 = vld [vmem:[%s9361_s10 + $0x10] ss:$8 sps:$4 sm:$0xff]  }
 0x83c   : > { %3506 = vmatprep.subr.bf16.mxu0 %v7016_v39  ;;  %3992 = vmatpush1.bf16.msra.mxu1 %v7110_v11  ;;  %v7037_v39 = vld [vmem:[%s9361_s10 + $0x24] ss:$8 sps:$4 sm:$0xff]  }
 0x83d   : > { %3993 = vmatprep.subr.bf16.mxu1 %v7118_v14  ;;  %v7133_v11 = vld [vmem:[%s9361_s10 + $0x344] ss:$8 sps:$4 sm:$0xff]   ;;  %v7131_v14 = vld [vmem:[%s9361_s10 + $0x340] ss:$8 sps:$4 sm:$0xff]  }
 0x83f   : > { %3507 = vmatpush1.bf16.msra.mxu0 %v7014_v40  ;;  %v7035_v40 = vld [vmem:[%s9361_s10 + $0x20] ss:$8 sps:$4 sm:$0xff]  }
 0x840   : > { %3508 = vmatprep.subr.bf16.mxu0 %v7019_v35  ;;  %3994 = vmatpush1.bf16.msra.mxu1 %v7116_v15  ;;  %v7041_v35 = vld [vmem:[%s9361_s10 + $0x30] ss:$8 sps:$4 sm:$0xff]   ;;  %v7136_v15 = vld [vmem:[%s9361_s10 + $0x354] ss:$8 sps:$4 sm:$0xff]  }
 0x843   : > { %3509 = vmatpush1.bf16.msra.mxu0 %v7017_v31  ;;  %v7043_v31 = vld [vmem:[%s9361_s10 + $0x34] ss:$8 sps:$4 sm:$0xff]  }
 0x844   : > { %3510 = vmatprep.subr.bf16.mxu0 %v7022_v43  ;;  %v7049_v43 = vld [vmem:[%s9361_s10 + $0x44] ss:$8 sps:$4 sm:$0xff]  }
 0x847   : > { %3511 = vmatpush1.bf16.msra.mxu0 %v7020_v47  ;;  %v7047_v47 = vld [vmem:[%s9361_s10 + $0x40] ss:$8 sps:$4 sm:$0xff]  }
 0x848   : > { %3681 = vmatprep.subr.bf16.mxu0 %v7025_v49  ;;  %v7055_v49 = vld [vmem:[%s9361_s10 + $0x54] ss:$8 sps:$4 sm:$0xff]  }
 0x8d5   : > { %v8676_v61 = vpop.f32.mrb[16].mxu0  ;;  %v3761_v20 = vpop.f32.mrb[44].mxu1 }
 0x8d6   : > { %v3200_v51 = vpop.f32.mrb[17].mxu0  ;;  %v3768_v18 = vpack.c.bf16 %v3761_v20, %v3761_v20  ;;  %v3763_v16 = vpop.f32.mrb[45].mxu1  ;;  %v3205_v6 = vpack.c.bf16 %v8676_v61, %v8676_v61  ;;  %v7134_v61 = vld [vmem:[%s9361_s10 + $0x350] ss:$8 sps:$4 sm:$0xff]   ;;  %v7139_v20 = vld [vmem:[%s9361_s10 + $0x364] ss:$8 sps:$4 sm:$0xff]  }
 0x8d7   : > { %v3202_v21 = vpop.f32.mrb[18].mxu0  ;;  %v3769_v22 = vpack.c.bf16 %v3763_v16, %v3763_v16  ;;  %v3765_v23 = vpop.f32.mrb[46].mxu1  ;;  %v3206_v37 = vpack.c.bf16 %v3200_v51, %v3200_v51  ;;  %v7137_v51 = vld [vmem:[%s9361_s10 + $0x360] ss:$8 sps:$4 sm:$0xff]   ;;  %v7140_v16 = vld [vmem:[%s9361_s10 + $0x370] ss:$8 sps:$4 sm:$0xff]  }
 0x8d8   : > { %v3203_v24 = vpop.f32.mrb[19].mxu0  ;;  %v3766_v25 = vpop.f32.mrb[47].mxu1  ;;  %v7145_v21 = vld [vmem:[%s9361_s10 + $0x384] ss:$8 sps:$4 sm:$0xff]   ;;  %v7148_v23 = vld [vmem:[%s9361_s10 + $0x394] ss:$8 sps:$4 sm:$0xff]  }
 0x8d9   : > { %3995 = vmatprep.mubr.bf16.mxu1 %v3769_v22  ;;  %v7143_v22 = vld [vmem:[%s9361_s10 + $0x380] ss:$8 sps:$4 sm:$0xff]   ;;  %v7146_v24 = vld [vmem:[%s9361_s10 + $0x390] ss:$8 sps:$4 sm:$0xff]   ;;  %v7151_v25 = vld [vmem:[%s9361_s10 + $0x3a4] ss:$8 sps:$4 sm:$0xff]  }
 0x8da   : > { %3996 = vmatmul.mubr.bf16.vlgmr.msra.gmra.mrb[48].mxu1 %v3768_v18  ;;  %v7142_v18 = vld [vmem:[%s9361_s10 + $0x374] ss:$8 sps:$4 sm:$0xff]  }
 0x8db   : > { %4397 = vmatprep.mubr.bf16.mxu1 %v7376_v1 }
 0x8dd   : > { %v3278_v26 = vpop.f32.mrb[20].mxu0 }
 0x8de   : > { %v3280_v27 = vpop.f32.mrb[21].mxu0  ;;  %v3285_v32 = vpack.c.bf16 %v3278_v26, %v3278_v26  ;;  %v7149_v26 = vld [vmem:[%s9361_s10 + $0x3a0] ss:$8 sps:$4 sm:$0xff]  }
 0x8df   : > { %v3286_v28 = vpack.c.bf16 %v3280_v27, %v3280_v27  ;;  %v3282_v30 = vpop.f32.mrb[22].mxu0  ;;  %v7154_v27 = vld [vmem:[%s9361_s10 + $0x3b4] ss:$8 sps:$4 sm:$0xff]  }
 0x8e0   : > { %v3283_v33 = vpop.f32.mrb[23].mxu0  ;;  %v7155_v30 = vld [vmem:[%s9361_s10 + $0x3c0] ss:$8 sps:$4 sm:$0xff]  }
 0x8e1   : > { %3512 = vmatprep.mubr.bf16.mxu0 %v3286_v28  ;;  %v7152_v28 = vld [vmem:[%s9361_s10 + $0x3b0] ss:$8 sps:$4 sm:$0xff]  }
 0x8e2   : > { %3513 = vmatmul.mubr.bf16.vlgmr.msra.gmra.mrb[24].mxu0 %v3285_v32  ;;  %v7160_v32 = vld [vmem:[%s9361_s10 + $0x3d4] ss:$8 sps:$4 sm:$0xff]   ;;  %v7158_v33 = vld [vmem:[%s9361_s10 + $0x3d0] ss:$8 sps:$4 sm:$0xff]  }
 0x8e3   : > { %3682 = vmatpush1.bf16.msra.mxu0 %v7023_v29  ;;  %3713 = vmatprep.mubr.bf16.mxu0 %v3206_v37  ;;  %v7157_v29 = vld [vmem:[%s9361_s10 + $0x3c4] ss:$8 sps:$4 sm:$0xff]   ;;  %v7161_v37 = vld [vmem:[%s9361_s10 + $0x3e0] ss:$8 sps:$4 sm:$0xff]  }
 0x8e4   : > { %3683 = vmatprep.subr.bf16.mxu0 %v7031_v36  ;;  %v7163_v36 = vld [vmem:[%s9361_s10 + $0x3e4] ss:$8 sps:$4 sm:$0xff]  }
 0x8e7   : > { %3684 = vmatpush1.bf16.msra.mxu0 %v7029_v38  ;;  %v7166_v38 = vld [vmem:[%s9361_s10 + $0x3f4] ss:$8 sps:$4 sm:$0xff]  }
 0x8e8   : > { %3685 = vmatprep.subr.bf16.mxu0 %v7037_v39  ;;  %v7164_v39 = vld [vmem:[%s9361_s10 + $0x3f0] ss:$8 sps:$4 sm:$0xff]  }
 0x8eb   : > { %3686 = vmatpush1.bf16.msra.mxu0 %v7035_v40 }
 0x8ec   : > { %3687 = vmatprep.subr.bf16.mxu0 %v7043_v31 }
 0x8ef   : > { %3688 = vmatpush1.bf16.msra.mxu0 %v7041_v35 }
 0x8f0   : > { %3689 = vmatprep.subr.bf16.mxu0 %v7049_v43 }
 0x8f3   : > { %3690 = vmatpush1.bf16.msra.mxu0 %v7047_v47 }
 0x8f4   : > { %3691 = vmatprep.subr.bf16.mxu0 %v7055_v49 }
 0x8f7   : > { %3692 = vmatpush1.bf16.msra.mxu0 %v7053_v41 }
 0x8f8   : > { %3693 = vmatprep.subr.bf16.mxu0 %v7061_v45 }
 0x8fb   : > { %3694 = vmatpush1.bf16.msra.mxu0 %v7059_v46 }
 0x8fc   : > { %3695 = vmatprep.subr.bf16.mxu0 %v7067_v50 }
 0x8ff   : > { %3696 = vmatpush1.bf16.msra.mxu0 %v7065_v52 }
 0x900   : > { %3697 = vmatprep.subr.bf16.mxu0 %v7073_v53 }
 0x903   : > { %3698 = vmatpush1.bf16.msra.mxu0 %v7071_v54 }
 0x904   : > { %3699 = vmatprep.subr.bf16.mxu0 %v7079_v55 }
 0x907   : > { %3700 = vmatpush1.bf16.msra.mxu0 %v7077_v56 }
 0x908   : > { %3701 = vmatprep.subr.bf16.mxu0 %v7085_v57 }
 0x90b   : > { %3702 = vmatpush1.bf16.msra.mxu0 %v7083_v58 }
 0x90c   : > { %3703 = vmatprep.subr.bf16.mxu0 %v7091_v44 }
 0x90f   : > { %3704 = vmatpush1.bf16.msra.mxu0 %v7089_v48 }
 0x910   : > { %3705 = vmatprep.subr.bf16.mxu0 %v7097_v60 }
 0x913   : > { %3706 = vmatpush1.bf16.msra.mxu0 %v7095_v59 }
 0x914   : > { %3707 = vmatprep.subr.bf16.mxu0 %v7103_v62 }
 0x917   : > { %3708 = vmatpush1.bf16.msra.mxu0 %v7101_v63  ;;  %v4290_v63 = vld [vmem:[%s9362_s11] sm:$0x3] }
 0x918   : > { %3709 = vmatprep.subr.bf16.mxu0 %v7109_v0  ;;  %v4295_v0 = vrot.slane %v4290_v63, %v7983_v42 }
 0x91b   : > { %3710 = vmatpush1.bf16.msra.mxu0 %v7107_v2 }
 0x91c   : > { %3711 = vmatprep.subr.bf16.mxu0 %v7115_v3  ;;  %v4299_v3 = vrot.slane %v4290_v63, %v7988_v34 }
 0x91f   : > { %3712 = vmatpush1.bf16.msra.mxu0 %v7113_v4 }
 0x920   : > { %4011 = vmatprep.subr.bf16.mxu0 %v8458_v5  ;;  %v7124_v5 = vld [vmem:[%s9361_s10 + $0x314] ss:$8 sps:$4 sm:$0xff]  }
 0x922   : > { %3714 = vmatmul.mubr.bf16.vlgmr.msra.gmra.mrb[28].mxu0 %v3205_v6 }
 0x923   : > { %4012 = vmatpush1.bf16.msra.mxu0 %v8460_v8  ;;  %4043 = vmatprep.mubr.bf16.mxu0 %v7376_v1  ;;  %v7122_v8 = vld [vmem:[%s9361_s10 + $0x310] ss:$8 sps:$4 sm:$0xff]  }
 0x924   : > { %4247 = vmatprep.subr.bf16.mxu0 %v7121_v10 }
 0x92a   : > { %6253 = vmatmul.mubr.msk.bf16.vlgmr.msra.gmra.mrb[32].mxu0 %vm3160_vm14, %v6252_v7 }
 0x92b   : > { %4248 = vmatpush1.bf16.msra.mxu0 %v7119_v9 }
 0x92c   : > { %4249 = vmatprep.subr.bf16.mxu0 %v7124_v5 }
 0x92f   : > { %4250 = vmatpush1.bf16.msra.mxu0 %v7122_v8 }
 0x930   : > { %4251 = vmatprep.subr.bf16.mxu0 %v7127_v12 }
 0x933   : > { %4252 = vmatpush1.bf16.msra.mxu0 %v7125_v13 }
 0x934   : > { %4253 = vmatprep.subr.bf16.mxu0 %v7130_v17 }
 0x937   : > { %4254 = vmatpush1.bf16.msra.mxu0 %v7128_v19 }
 0x938   : > { %4255 = vmatprep.subr.bf16.mxu0 %v7133_v11 }
 0x93b   : > { %4256 = vmatpush1.bf16.msra.mxu0 %v7131_v14 }
 0x93c   : > { %4257 = vmatprep.subr.bf16.mxu0 %v7136_v15 }
 0x93f   : > { %4258 = vmatpush1.bf16.msra.mxu0 %v7134_v61 }
 0x940   : > { %4259 = vmatprep.subr.bf16.mxu0 %v7139_v20 }
 0x943   : > { %4260 = vmatpush1.bf16.msra.mxu0 %v7137_v51 }
 0x944   : > { %4261 = vmatprep.subr.bf16.mxu0 %v7142_v18 }
 0x947   : > { %4262 = vmatpush1.bf16.msra.mxu0 %v7140_v16 }
 0x948   : > { %4263 = vmatprep.subr.bf16.mxu0 %v7145_v21 }
 0x94b   : > { %4264 = vmatpush1.bf16.msra.mxu0 %v7143_v22 }
 0x94c   : > { %4265 = vmatprep.subr.bf16.mxu0 %v7148_v23 }
 0x94f   : > { %4266 = vmatpush1.bf16.msra.mxu0 %v7146_v24  ;;  %v7167_v24 = vld [vmem:[%s9366_s15] ss:$8 sps:$4 sm:$0xff]  }
 0x950   : > { %4267 = vmatprep.subr.bf16.mxu0 %v7151_v25  ;;  %v7169_v25 = vld [vmem:[%s9366_s15 + $0x4] ss:$8 sps:$4 sm:$0xff]  }
 0x953   : > { %4268 = vmatpush1.bf16.msra.mxu0 %v7149_v26  ;;  %v7172_v26 = vld [vmem:[%s9366_s15 + $0x14] ss:$8 sps:$4 sm:$0xff]  }
 0x954   : > { %4269 = vmatprep.subr.bf16.mxu0 %v7154_v27  ;;  %v7170_v27 = vld [vmem:[%s9366_s15 + $0x10] ss:$8 sps:$4 sm:$0xff]  }
 0x957   : > { %4270 = vmatpush1.bf16.msra.mxu0 %v7152_v28  ;;  %v7175_v28 = vld [vmem:[%s9366_s15 + $0x24] ss:$8 sps:$4 sm:$0xff]  }
 0x958   : > { %4271 = vmatprep.subr.bf16.mxu0 %v7157_v29  ;;  %v7173_v29 = vld [vmem:[%s9366_s15 + $0x20] ss:$8 sps:$4 sm:$0xff]  }
 0x95b   : > { %4272 = vmatpush1.bf16.msra.mxu0 %v7155_v30  ;;  %v7178_v30 = vld [vmem:[%s9366_s15 + $0x34] ss:$8 sps:$4 sm:$0xff]  }
 0x95c   : > { %4273 = vmatprep.subr.bf16.mxu0 %v7160_v32  ;;  %v7176_v32 = vld [vmem:[%s9366_s15 + $0x30] ss:$8 sps:$4 sm:$0xff]  }
 0x95f   : > { %4274 = vmatpush1.bf16.msra.mxu0 %v7158_v33  ;;  %v7181_v33 = vld [vmem:[%s9366_s15 + $0x44] ss:$8 sps:$4 sm:$0xff]  }
 0x960   : > { %4275 = vmatprep.subr.bf16.mxu0 %v7163_v36  ;;  %v7179_v36 = vld [vmem:[%s9366_s15 + $0x40] ss:$8 sps:$4 sm:$0xff]  }
 0x963   : > { %4276 = vmatpush1.bf16.msra.mxu0 %v7161_v37  ;;  %v7184_v37 = vld [vmem:[%s9366_s15 + $0x54] ss:$8 sps:$4 sm:$0xff]  }
 0x964   : > { %4277 = vmatprep.subr.bf16.mxu0 %v7166_v38  ;;  %v7182_v38 = vld [vmem:[%s9366_s15 + $0x50] ss:$8 sps:$4 sm:$0xff]  }
 0x967   : > { %4278 = vmatpush1.bf16.msra.mxu0 %v7164_v39  ;;  %v7187_v39 = vld [vmem:[%s9366_s15 + $0x64] ss:$8 sps:$4 sm:$0xff]  }
 0x968   : > { %4882 = vmatprep.subr.bf16.mxu0 %v7169_v25  ;;  %v7215_v25 = vld [vmem:[%s9366_s15 + $0x100] ss:$8 sps:$4 sm:$0xff]  }
 0x9ad   : > { %v3997_v40 = vpop.f32.mrb[48].mxu1 }
 0x9ae   : > { %v3999_v31 = vpop.f32.mrb[49].mxu1 }
 0x9af   : > { %v4001_v35 = vpop.f32.mrb[50].mxu1 }
 0x9b0   : > { %v4002_v43 = vpop.f32.mrb[51].mxu1  ;;  %v7188_v35 = vld [vmem:[%s9366_s15 + $0x70] ss:$8 sps:$4 sm:$0xff]  }
 0x9b1   : > { %v7193_v43 = vld [vmem:[%s9366_s15 + $0x84] ss:$8 sps:$4 sm:$0xff]  }
 0x9b5   : > { %v3514_v47 = vpop.f32.mrb[24].mxu0 }
 0x9b6   : > { %v3516_v49 = vpop.f32.mrb[25].mxu0 }
 0x9b7   : > { %v3518_v41 = vpop.f32.mrb[26].mxu0 }
 0x9b8   : > { %v3519_v45 = vpop.f32.mrb[27].mxu0  ;;  %v7194_v41 = vld [vmem:[%s9366_s15 + $0x90] ss:$8 sps:$4 sm:$0xff]  }
 0x9b9   : > { %v7199_v45 = vld [vmem:[%s9366_s15 + $0xa4] ss:$8 sps:$4 sm:$0xff]  }
 0x9f5   : > { %v3715_v46 = vpop.f32.mrb[28].mxu0 }
 0x9f6   : > { %v3716_v50 = vadd.f32 %v3715_v46, %v3514_v47  ;;  %v3717_v52 = vpop.f32.mrb[29].mxu0  ;;  %v7191_v47 = vld [vmem:[%s9366_s15 + $0x80] ss:$8 sps:$4 sm:$0xff]  }
 0x9f7   : > { %v3718_v53 = vadd.f32 %v3717_v52, %v3516_v49  ;;  %v3719_v54 = vpop.f32.mrb[30].mxu0  ;;  %v7196_v49 = vld [vmem:[%s9366_s15 + $0x94] ss:$8 sps:$4 sm:$0xff]   ;;  %v7197_v46 = vld [vmem:[%s9366_s15 + $0xa0] ss:$8 sps:$4 sm:$0xff]  }
 0x9f8   : > { %v4004_v55 = vadd.f32 %v3997_v40, %v3716_v50  ;;  %v3720_v56 = vpop.f32.mrb[31].mxu0  ;;  %v7185_v40 = vld [vmem:[%s9366_s15 + $0x60] ss:$8 sps:$4 sm:$0xff]   ;;  %v7202_v50 = vld [vmem:[%s9366_s15 + $0xb4] ss:$8 sps:$4 sm:$0xff]  }
 0x9f9   : > { %v4005_v57 = vadd.f32 %v3999_v31, %v3718_v53  ;;  %v7190_v31 = vld [vmem:[%s9366_s15 + $0x74] ss:$8 sps:$4 sm:$0xff]   ;;  %v7200_v52 = vld [vmem:[%s9366_s15 + $0xb0] ss:$8 sps:$4 sm:$0xff]   ;;  %v7205_v53 = vld [vmem:[%s9366_s15 + $0xc4] ss:$8 sps:$4 sm:$0xff]  }
 0x9fa   : > { %v7203_v54 = vld [vmem:[%s9366_s15 + $0xc0] ss:$8 sps:$4 sm:$0xff]   ;;  %v7206_v56 = vld [vmem:[%s9366_s15 + $0xd0] ss:$8 sps:$4 sm:$0xff]  }
 0x9fd   : > { %v4045_v58 = vpop.f32.mrb[32].mxu0 }
 0x9fe   : > { %v4047_v44 = vpop.f32.mrb[33].mxu0  ;;  %v4052_v59 = vpack.c.bf16 %v4045_v58, %v4045_v58  ;;  %v7209_v58 = vld [vmem:[%s9366_s15 + $0xe0] ss:$8 sps:$4 sm:$0xff]  }
 0x9ff   : > { %v4053_v48 = vpack.c.bf16 %v4047_v44, %v4047_v44  ;;  %v4049_v60 = vpop.f32.mrb[34].mxu0  ;;  %v7214_v44 = vld [vmem:[%s9366_s15 + $0xf4] ss:$8 sps:$4 sm:$0xff]  }
 0xa00   : > { %v4050_v62 = vpop.f32.mrb[35].mxu0 }
 0xa01   : > { %4279 = vmatprep.mubr.bf16.mxu0 %v4053_v48  ;;  %v7212_v48 = vld [vmem:[%s9366_s15 + $0xf0] ss:$8 sps:$4 sm:$0xff]  }
 0xa02   : > { %4280 = vmatmul.mubr.bf16.vlgmr.msra.gmra.mrb[36].mxu0 %v4052_v59 }
 0xa03   : > { %4883 = vmatpush1.bf16.msra.mxu0 %v7167_v24  ;;  %v7217_v24 = vld [vmem:[%s9366_s15 + $0x104] ss:$8 sps:$4 sm:$0xff]  }
 0xa04   : > { %4884 = vmatprep.subr.bf16.mxu0 %v7172_v26  ;;  %v6320_v26 = vld [vmem:[%s9365_s14 + $0x2] sm:$0x3] }
 0xa07   : > { %4885 = vmatpush1.bf16.msra.mxu0 %v7170_v27  ;;  %v7220_v27 = vld [vmem:[%s9366_s15 + $0x114] ss:$8 sps:$4 sm:$0xff]  }
 0xa08   : > { %4886 = vmatprep.subr.bf16.mxu0 %v7175_v28  ;;  %v7218_v28 = vld [vmem:[%s9366_s15 + $0x110] ss:$8 sps:$4 sm:$0xff]  }
 0xa0b   : > { %4887 = vmatpush1.bf16.msra.mxu0 %v7173_v29  ;;  %v7223_v29 = vld [vmem:[%s9366_s15 + $0x124] ss:$8 sps:$4 sm:$0xff]  }
 0xa0c   : > { %4888 = vmatprep.subr.bf16.mxu0 %v7178_v30  ;;  %v7221_v30 = vld [vmem:[%s9366_s15 + $0x120] ss:$8 sps:$4 sm:$0xff]  }
 0xa0f   : > { %4889 = vmatpush1.bf16.msra.mxu0 %v7176_v32  ;;  %v7226_v32 = vld [vmem:[%s9366_s15 + $0x134] ss:$8 sps:$4 sm:$0xff]  }
 0xa10   : > { %4890 = vmatprep.subr.bf16.mxu0 %v7181_v33  ;;  %v7224_v33 = vld [vmem:[%s9366_s15 + $0x130] ss:$8 sps:$4 sm:$0xff]  }
 0xa13   : > { %4891 = vmatpush1.bf16.msra.mxu0 %v7179_v36  ;;  %v7229_v36 = vld [vmem:[%s9366_s15 + $0x144] ss:$8 sps:$4 sm:$0xff]  }
 0xa14   : > { %4892 = vmatprep.subr.bf16.mxu0 %v7184_v37  ;;  %v7227_v37 = vld [vmem:[%s9366_s15 + $0x140] ss:$8 sps:$4 sm:$0xff]  }
 0xa17   : > { %4893 = vmatpush1.bf16.msra.mxu0 %v7182_v38  ;;  %v7232_v38 = vld [vmem:[%s9366_s15 + $0x154] ss:$8 sps:$4 sm:$0xff]  }
 0xa18   : > { %4894 = vmatprep.subr.bf16.mxu0 %v7187_v39  ;;  %v7230_v39 = vld [vmem:[%s9366_s15 + $0x150] ss:$8 sps:$4 sm:$0xff]  }
 0xa1b   : > { %4895 = vmatpush1.bf16.msra.mxu0 %v7185_v40  ;;  %v7235_v40 = vld [vmem:[%s9366_s15 + $0x164] ss:$8 sps:$4 sm:$0xff]  }
 0xa1c   : > { %4896 = vmatprep.subr.bf16.mxu0 %v7190_v31  ;;  %v7233_v31 = vld [vmem:[%s9366_s15 + $0x160] ss:$8 sps:$4 sm:$0xff]  }
 0xa1f   : > { %4897 = vmatpush1.bf16.msra.mxu0 %v7188_v35  ;;  %v7238_v35 = vld [vmem:[%s9366_s15 + $0x174] ss:$8 sps:$4 sm:$0xff]  }
 0xa20   : > { %4898 = vmatprep.subr.bf16.mxu0 %v7193_v43  ;;  %v7236_v43 = vld [vmem:[%s9366_s15 + $0x170] ss:$8 sps:$4 sm:$0xff]  }
 0xa23   : > { %4899 = vmatpush1.bf16.msra.mxu0 %v7191_v47  ;;  %v7241_v47 = vld [vmem:[%s9366_s15 + $0x184] ss:$8 sps:$4 sm:$0xff]  }
 0xa24   : > { %4900 = vmatprep.subr.bf16.mxu0 %v7196_v49  ;;  %v7239_v49 = vld [vmem:[%s9366_s15 + $0x180] ss:$8 sps:$4 sm:$0xff]  }
 0xa27   : > { %4901 = vmatpush1.bf16.msra.mxu0 %v7194_v41  ;;  %v7244_v41 = vld [vmem:[%s9366_s15 + $0x194] ss:$8 sps:$4 sm:$0xff]  }
 0xa28   : > { %4902 = vmatprep.subr.bf16.mxu0 %v7199_v45  ;;  %v7242_v45 = vld [vmem:[%s9366_s15 + $0x190] ss:$8 sps:$4 sm:$0xff]  }
 0xa2b   : > { %4903 = vmatpush1.bf16.msra.mxu0 %v7197_v46  ;;  %v7247_v46 = vld [vmem:[%s9366_s15 + $0x1a4] ss:$8 sps:$4 sm:$0xff]  }
 0xa2c   : > { %4904 = vmatprep.subr.bf16.mxu0 %v7202_v50  ;;  %v7245_v50 = vld [vmem:[%s9366_s15 + $0x1a0] ss:$8 sps:$4 sm:$0xff]  }
 0xa2f   : > { %4905 = vmatpush1.bf16.msra.mxu0 %v7200_v52  ;;  %v7250_v52 = vld [vmem:[%s9366_s15 + $0x1b4] ss:$8 sps:$4 sm:$0xff]  }
 0xa30   : > { %4906 = vmatprep.subr.bf16.mxu0 %v7205_v53  ;;  %v7248_v53 = vld [vmem:[%s9366_s15 + $0x1b0] ss:$8 sps:$4 sm:$0xff]  }
 0xa33   : > { %4907 = vmatpush1.bf16.msra.mxu0 %v7203_v54  ;;  %v7253_v54 = vld [vmem:[%s9366_s15 + $0x1c4] ss:$8 sps:$4 sm:$0xff]  }
 0xad5   : > { %v4281_v2 = vpop.f32.mrb[36].mxu0 }
 0xad6   : > { %v4288_v4 = vadd.f32 %v4281_v2, %v4004_v55  ;;  %v4283_v6 = vpop.f32.mrb[37].mxu0  ;;  %v7208_v55 = vld [vmem:[%s9366_s15 + $0xd4] ss:$8 sps:$4 sm:$0xff]  }
 0xad7   : > { %v4289_v7 = vadd.f32 %v4283_v6, %v4005_v57  ;;  %v4285_v9 = vpop.f32.mrb[38].mxu0  ;;  %v7211_v57 = vld [vmem:[%s9366_s15 + $0xe4] ss:$8 sps:$4 sm:$0xff]   ;;  %4908 = vmatprep.subr.bf16.mxu0 %v7208_v55  ;;  %v7251_v55 = vld [vmem:[%s9366_s15 + $0x1c0] ss:$8 sps:$4 sm:$0xff]  }
 0xad8   : > { %v4286_v10 = vpop.f32.mrb[39].mxu0  ;;  %v4302_v5 = vadd.f32 %v4295_v0, %v4288_v4  ;;  %4909 = vmatpush1.bf16.msra.mxu0 %v7206_v56  ;;  %v7256_v56 = vld [vmem:[%s9366_s15 + $0x1d4] ss:$8 sps:$4 sm:$0xff]  }
 0xad9   : > { %v4303_v8 = vadd.f32 %v4299_v3, %v4289_v7  ;;  %4910 = vmatprep.subr.bf16.mxu0 %v7211_v57  ;;  %v4338_v10 = vld [vmem:[%s9363_s12 + $0x8] sm:$0xff]  ;;  %v7254_v57 = vld [vmem:[%s9366_s15 + $0x1d0] ss:$8 sps:$4 sm:$0xff]  }
 0xadb   : > { %v4304_v12 = vadd.f32 %v4303_v8, %v4302_v5 }
 0xadc   : > { %4911 = vmatpush1.bf16.msra.mxu0 %v7209_v58  ;;  %v7259_v58 = vld [vmem:[%s9366_s15 + $0x1e4] ss:$8 sps:$4 sm:$0xff]  }
 0xadd   : > { %4305 = vadd.xlane.f32.xlu1 %v4304_v12  ;;  %4912 = vmatprep.subr.bf16.mxu0 %v7214_v44  ;;  %v7257_v44 = vld [vmem:[%s9366_s15 + $0x1e0] ss:$8 sps:$4 sm:$0xff]  }
 0xae0   : > { %4913 = vmatpush1.bf16.msra.mxu0 %v7212_v48  ;;  %v7262_v48 = vld [vmem:[%s9366_s15 + $0x1f4] ss:$8 sps:$4 sm:$0xff]  }
 0xb6a   : > { %v4306_v13 = vpop.xlane.xlu1 %4305 }
 0xb6b   : > { %v4307_v17 = vrot.slane %v4306_v13, 4 }
 0xb6d   : > { %v4308_v19 = vadd.f32 %v4307_v17, %v4306_v13  ;;  %v4342_v13 = vld [vmem:[%s9364_s13 + $0x8] sm:$0xff]  ;;  %v4341_v17 = vld [vmem:[%s9364_s13] sm:$0xff] }
 0xb6f   : > { %v4309_v11 = vrot.slane %v4308_v19, 2 }
 0xb71   : > { %v4310_v14 = vadd.f32 %v4309_v11, %v4308_v19 }
 0xb73   : > { %v4311_v15 = vrot.slane %v4310_v14, 1 }
 0xb75   : > { %v4312_v61 = vadd.f32 %v4311_v15, %v4310_v14 }
 0xb77   : > { %6596 = vpush %v4312_v61 }
 0xba8   : > { %s6597_s20 = spop %6596 }
 0xba9   : > { %v4314_v20 = vstv %s6597_s20 }
 0xbaa   : > { %v4316_v51 = vmul.f32 0.00048828125, %v4314_v20 }
 0xbac   : > { %v8882_v18 = vsub.f32 %v4302_v5, %v4316_v51  ;;  %v8884_v16 = vsub.f32 %v4303_v8, %v4316_v51  ;;  %v4337_v5 = vld [vmem:[%s9363_s12] sm:$0xff] }
 0xbae   : > { %v4319_v21 = vmul.f32 %v8882_v18, %v8882_v18  ;;  %v4320_v22 = vmul.f32 %v8884_v16, %v8884_v16 }
 0xbb0   : > { %v4321_v23 = vadd.f32 %v4320_v22, %v4319_v21 }
 0xbb2   : > { %4322 = vadd.xlane.f32.xlu1 %v4321_v23  ;;  %v4353_v23 = vld [vmem:[%s9365_s14] sm:$0x3] }
 0xc3f   : > { %v4323_v60 = vpop.xlane.xlu1 %4322 }
 0xc40   : > { %v4324_v59 = vrot.slane %v4323_v60, 4 }
 0xc42   : > { %v4325_v62 = vadd.f32 %v4324_v59, %v4323_v60  ;;  %v7260_v60 = vld [vmem:[%s9366_s15 + $0x1f0] ss:$8 sps:$4 sm:$0xff]  }
 0xc44   : > { %v4326_v63 = vrot.slane %v4325_v62, 2 }
 0xc46   : > { %v4327_v0 = vadd.f32 %v4326_v63, %v4325_v62 }
 0xc48   : > { %v4328_v2 = vrot.slane %v4327_v0, 1 }
 0xc4a   : > { %v4329_v3 = vadd.f32 %v4328_v2, %v4327_v0 }
 0xc4c   : > { %6598 = vpush %v4329_v3 }
 0xc7d   : > { %s6599_s22 = spop %6598 }
 0xc7e   : > { %v4331_v4 = vstv %s6599_s22 }
 0xc7f   : > { %v4332_v6 = vmul.f32 0.00048828125, %v4331_v4  ;;  %v7268_v4 = vld [vmem:[%s9366_s15 + $0x304] ss:$8 sps:$4 sm:$0xff]  }
 0xc81   : > { %v4333_v7 = vadd.f32 1e-05, %v4332_v6 }
 0xc83   : > { %7364 = vrsqrt.f32 %v4333_v7 }
 0xc8d   : > { %v7365_v9 = vpop.eup %7364 }
 0xc8e   : > { %v4335_v8 = vmul.f32 %v7365_v9, %v8882_v18  ;;  %v4336_v12 = vmul.f32 %v7365_v9, %v8884_v16 }
 0xc90   : > { %v4340_v19 = vmul.f32 %v4338_v10, %v4336_v12  ;;  %v4339_v11 = vmul.f32 %v4337_v5, %v4335_v8  ;;  %v6486_v5 = vld [vmem:[%s9365_s14 + $0x6] sm:$0x3] }
 0xc92   : > { %v4344_v14 = vadd.f32 %v4342_v13, %v4340_v19  ;;  %v4343_v15 = vadd.f32 %v4341_v17, %v4339_v11  ;;  %v7265_v13 = vld [vmem:[%s9366_s15 + $0x204] ss:$8 sps:$4 sm:$0xff]   ;;  %v7266_v17 = vld [vmem:[%s9366_s15 + $0x300] ss:$8 sps:$4 sm:$0xff]   ;;  %v7274_v19 = vld [vmem:[%s9366_s15 + $0x314] ss:$8 sps:$4 sm:$0xff]  }
 0xc93   : > { %v7272_v11 = vld [vmem:[%s9366_s15 + $0x310] ss:$8 sps:$4 sm:$0xff]  }
 0xc94   : > { %vm4346_vm15 = vcmp.gt.f32.partialorder %v4344_v14, 0.0  ;;  %v4348_v61 = vmul.f32 0.2, %v4344_v14  ;;  %vm4345_vm0 = vcmp.gt.f32.partialorder %v4343_v15, 0.0  ;;  %v4347_v20 = vmul.f32 0.2, %v4343_v15 }
 0xc96   : > { %v4350_v51 = vsel %vm4346_vm15, %v4344_v14, %v4348_v61  ;;  %v4349_v18 = vsel %vm4345_vm0, %v4343_v15, %v4347_v20  ;;  %v7280_v14 = vld [vmem:[%s9366_s15 + $0x324] ss:$8 sps:$4 sm:$0xff]   ;;  %v7263_v61 = vld [vmem:[%s9366_s15 + $0x200] ss:$8 sps:$4 sm:$0xff]  }
 0xc97   : > { %v9000_v16 = vpack.c.bf16 %v4350_v51, %v4350_v51  ;;  %v4351_v21 = vpack.c.bf16 %v4349_v18, %v4349_v18  ;;  %v6419_v15 = vld [vmem:[%s9365_s14 + $0x4] sm:$0x3]  ;;  %v7278_v20 = vld [vmem:[%s9366_s15 + $0x320] ss:$8 sps:$4 sm:$0xff]   ;;  %v7286_v51 = vld [vmem:[%s9366_s15 + $0x334] ss:$8 sps:$4 sm:$0xff]  }
 0xc98   : > { %v7269_v18 = vld [vmem:[%s9366_s15 + $0x210] ss:$8 sps:$4 sm:$0xff]  }
 0xc99   : > { %6318 = vmatprep.subr.msk.bf16.mxu1 %vm4358_vm1, %v9000_v16  ;;  %6487 = vmatprep.subr.msk.bf16.mxu0 %vm4358_vm1, %v9000_v16  ;;  %v9007_v22 = vsel %vm4358_vm1, %v4351_v21, 0  ;;  %v7284_v21 = vld [vmem:[%s9366_s15 + $0x330] ss:$8 sps:$4 sm:$0xff]  }
 0xc9a   : > { %4366 = vmatpush1.bf16.msra.mxu1 %v9007_v22 }
 0xc9b   : > { %6321 = vmatprep.subr.msk.bf16.mxu1 %vm4358_vm1, %v9000_v16 }
 0xc9d   : > { %6319 = vmatmul.mubr.msk.bf16.vlgmr.msra.gmra.mrb[52].mxu1 %vm4354_vm2, %v4353_v23  ;;  %v7275_v23 = vld [vmem:[%s9366_s15 + $0x220] ss:$8 sps:$4 sm:$0xff]  }
 0xc9e   : > { %4446 = vmatpush1.bf16.msra.mxu1 %v9007_v22  ;;  %4477 = vmatprep.mubr.bf16.mxu1 %v7376_v1 }
 0xc9f   : > { %4681 = vmatprep.subr.bf16.mxu1 %v7217_v24  ;;  %v7283_v24 = vld [vmem:[%s9366_s15 + $0x234] ss:$8 sps:$4 sm:$0xff]  }
 0xca5   : > { %6322 = vmatmul.mubr.msk.bf16.vlgmr.msra.gmra.mrb[56].mxu1 %vm4354_vm2, %v6320_v26  ;;  %v7298_v26 = vld [vmem:[%s9366_s15 + $0x354] ss:$8 sps:$4 sm:$0xff]  }
 0xca6   : > { %4682 = vmatpush1.bf16.msra.mxu1 %v7215_v25  ;;  %v7290_v25 = vld [vmem:[%s9366_s15 + $0x340] ss:$8 sps:$4 sm:$0xff]  }
 0xca7   : > { %4683 = vmatprep.subr.bf16.mxu1 %v7220_v27  ;;  %v7281_v27 = vld [vmem:[%s9366_s15 + $0x230] ss:$8 sps:$4 sm:$0xff]  }
 0xcaa   : > { %4684 = vmatpush1.bf16.msra.mxu1 %v7218_v28  ;;  %v7289_v28 = vld [vmem:[%s9366_s15 + $0x244] ss:$8 sps:$4 sm:$0xff]  }
 0xcab   : > { %4685 = vmatprep.subr.bf16.mxu1 %v7223_v29  ;;  %v7296_v29 = vld [vmem:[%s9366_s15 + $0x350] ss:$8 sps:$4 sm:$0xff]  }
 0xcae   : > { %4686 = vmatpush1.bf16.msra.mxu1 %v7221_v30  ;;  %v7304_v30 = vld [vmem:[%s9366_s15 + $0x364] ss:$8 sps:$4 sm:$0xff]  }
 0xcaf   : > { %4687 = vmatprep.subr.bf16.mxu1 %v7226_v32  ;;  %v7287_v32 = vld [vmem:[%s9366_s15 + $0x240] ss:$8 sps:$4 sm:$0xff]  }
 0xcb2   : > { %4688 = vmatpush1.bf16.msra.mxu1 %v7224_v33  ;;  %v7295_v33 = vld [vmem:[%s9366_s15 + $0x254] ss:$8 sps:$4 sm:$0xff]  }
 0xcb3   : > { %4689 = vmatprep.subr.bf16.mxu1 %v7229_v36  ;;  %v7302_v36 = vld [vmem:[%s9366_s15 + $0x360] ss:$8 sps:$4 sm:$0xff]  }
 0xcb6   : > { %4690 = vmatpush1.bf16.msra.mxu1 %v7227_v37  ;;  %v7310_v37 = vld [vmem:[%s9366_s15 + $0x374] ss:$8 sps:$4 sm:$0xff]  }
 0xcb7   : > { %4691 = vmatprep.subr.bf16.mxu1 %v7232_v38  ;;  %v7293_v38 = vld [vmem:[%s9366_s15 + $0x250] ss:$8 sps:$4 sm:$0xff]  }
 0xcba   : > { %4692 = vmatpush1.bf16.msra.mxu1 %v7230_v39  ;;  %v7301_v39 = vld [vmem:[%s9366_s15 + $0x264] ss:$8 sps:$4 sm:$0xff]  }
 0xcbb   : > { %4693 = vmatprep.subr.bf16.mxu1 %v7235_v40  ;;  %v7308_v40 = vld [vmem:[%s9366_s15 + $0x370] ss:$8 sps:$4 sm:$0xff]  }
 0xcbe   : > { %4694 = vmatpush1.bf16.msra.mxu1 %v7233_v31  ;;  %v7316_v31 = vld [vmem:[%s9366_s15 + $0x384] ss:$8 sps:$4 sm:$0xff]  }
 0xcbf   : > { %4695 = vmatprep.subr.bf16.mxu1 %v7238_v35  ;;  %v7299_v35 = vld [vmem:[%s9366_s15 + $0x260] ss:$8 sps:$4 sm:$0xff]  }
 0xcc2   : > { %4696 = vmatpush1.bf16.msra.mxu1 %v7236_v43  ;;  %v7307_v43 = vld [vmem:[%s9366_s15 + $0x274] ss:$8 sps:$4 sm:$0xff]  }
 0xcc3   : > { %4697 = vmatprep.subr.bf16.mxu1 %v7241_v47  ;;  %v7314_v47 = vld [vmem:[%s9366_s15 + $0x380] ss:$8 sps:$4 sm:$0xff]  }
 0xcc6   : > { %4698 = vmatpush1.bf16.msra.mxu1 %v7239_v49  ;;  %v7322_v49 = vld [vmem:[%s9366_s15 + $0x394] ss:$8 sps:$4 sm:$0xff]  }
 0xcc7   : > { %4699 = vmatprep.subr.bf16.mxu1 %v7244_v41  ;;  %v7305_v41 = vld [vmem:[%s9366_s15 + $0x270] ss:$8 sps:$4 sm:$0xff]  }
 0xcca   : > { %4700 = vmatpush1.bf16.msra.mxu1 %v7242_v45  ;;  %v7313_v45 = vld [vmem:[%s9366_s15 + $0x284] ss:$8 sps:$4 sm:$0xff]  }
 0xccb   : > { %4701 = vmatprep.subr.bf16.mxu1 %v7247_v46  ;;  %v7320_v46 = vld [vmem:[%s9366_s15 + $0x390] ss:$8 sps:$4 sm:$0xff]  }
 0xcce   : > { %4702 = vmatpush1.bf16.msra.mxu1 %v7245_v50  ;;  %v7328_v50 = vld [vmem:[%s9366_s15 + $0x3a4] ss:$8 sps:$4 sm:$0xff]  }
 0xccf   : > { %4703 = vmatprep.subr.bf16.mxu1 %v7250_v52  ;;  %v7311_v52 = vld [vmem:[%s9366_s15 + $0x280] ss:$8 sps:$4 sm:$0xff]  }
 0xcd2   : > { %4704 = vmatpush1.bf16.msra.mxu1 %v7248_v53  ;;  %v7319_v53 = vld [vmem:[%s9366_s15 + $0x294] ss:$8 sps:$4 sm:$0xff]  }
 0xcd3   : > { %4705 = vmatprep.subr.bf16.mxu1 %v7253_v54  ;;  %v7326_v54 = vld [vmem:[%s9366_s15 + $0x3a0] ss:$8 sps:$4 sm:$0xff]  }
 0xcd6   : > { %4706 = vmatpush1.bf16.msra.mxu1 %v7251_v55  ;;  %v7334_v55 = vld [vmem:[%s9366_s15 + $0x3b4] ss:$8 sps:$4 sm:$0xff]  }
 0xcd7   : > { %4707 = vmatprep.subr.bf16.mxu1 %v7256_v56  ;;  %v7317_v56 = vld [vmem:[%s9366_s15 + $0x290] ss:$8 sps:$4 sm:$0xff]  }
 0xcda   : > { %4708 = vmatpush1.bf16.msra.mxu1 %v7254_v57  ;;  %v7325_v57 = vld [vmem:[%s9366_s15 + $0x2a4] ss:$8 sps:$4 sm:$0xff]  }
 0xcdb   : > { %4709 = vmatprep.subr.bf16.mxu1 %v7259_v58  ;;  %v7332_v58 = vld [vmem:[%s9366_s15 + $0x3b0] ss:$8 sps:$4 sm:$0xff]  }
 0xcde   : > { %4710 = vmatpush1.bf16.msra.mxu1 %v7257_v44  ;;  %v7340_v44 = vld [vmem:[%s9366_s15 + $0x3c4] ss:$8 sps:$4 sm:$0xff]  }
 0xcdf   : > { %4711 = vmatprep.subr.bf16.mxu1 %v7262_v48  ;;  %v7323_v48 = vld [vmem:[%s9366_s15 + $0x2a0] ss:$8 sps:$4 sm:$0xff]  }
 0xce2   : > { %4712 = vmatpush1.bf16.msra.mxu1 %v7260_v60  ;;  %v7331_v60 = vld [vmem:[%s9366_s15 + $0x2b4] ss:$8 sps:$4 sm:$0xff]  }
 0xce3   : > { %6420 = vmatprep.subr.msk.bf16.mxu1 %vm4358_vm1, %v9000_v16  ;;  %v7277_v16 = vld [vmem:[%s9366_s15 + $0x224] ss:$8 sps:$4 sm:$0xff]  }
 0xd70   : > { %v4399_v59 = vpop.f32.mrb[52].mxu1 }
 0xd71   : > { %v4401_v62 = vpop.f32.mrb[53].mxu1  ;;  %v4406_v2 = vpack.c.bf16 %v4399_v59, %v4399_v59  ;;  %v7338_v59 = vld [vmem:[%s9366_s15 + $0x3c0] ss:$8 sps:$4 sm:$0xff]  }
 0xd72   : > { %v4407_v63 = vpack.c.bf16 %v4401_v62, %v4401_v62  ;;  %v4403_v0 = vpop.f32.mrb[54].mxu1  ;;  %v7329_v62 = vld [vmem:[%s9366_s15 + $0x2b0] ss:$8 sps:$4 sm:$0xff]  }
 0xd73   : > { %v4404_v3 = vpop.f32.mrb[55].mxu1  ;;  %v7335_v0 = vld [vmem:[%s9366_s15 + $0x2c0] ss:$8 sps:$4 sm:$0xff]  }
 0xd74   : > { %4914 = vmatprep.mubr.bf16.mxu0 %v4407_v63  ;;  %v7337_v63 = vld [vmem:[%s9366_s15 + $0x2c4] ss:$8 sps:$4 sm:$0xff]   ;;  %v7343_v3 = vld [vmem:[%s9366_s15 + $0x2d4] ss:$8 sps:$4 sm:$0xff]  }
 0xd75   : > { %4915 = vmatmul.mubr.bf16.vlgmr.msra.gmra.mrb[40].mxu0 %v4406_v2  ;;  %v7341_v2 = vld [vmem:[%s9366_s15 + $0x2d0] ss:$8 sps:$4 sm:$0xff]  }
 0xd76   : > { %5213 = vmatpush1.bf16.msra.mxu0 %v9007_v22  ;;  %5244 = vmatprep.mubr.bf16.mxu0 %v7376_v1 }
 0xd77   : > { %5448 = vmatprep.subr.bf16.mxu0 %v7268_v4  ;;  %v7346_v4 = vld [vmem:[%s9366_s15 + $0x3d4] ss:$8 sps:$4 sm:$0xff]  }
 0xd78   : > { %v4479_v6 = vpop.f32.mrb[56].mxu1 }
 0xd79   : > { %v4481_v7 = vpop.f32.mrb[57].mxu1  ;;  %v4486_v8 = vpack.c.bf16 %v4479_v6, %v4479_v6  ;;  %v7344_v6 = vld [vmem:[%s9366_s15 + $0x3d0] ss:$8 sps:$4 sm:$0xff]  }
 0xd7a   : > { %v4487_v9 = vpack.c.bf16 %v4481_v7, %v4481_v7  ;;  %v4483_v10 = vpop.f32.mrb[58].mxu1  ;;  %v7352_v7 = vld [vmem:[%s9366_s15 + $0x3e4] ss:$8 sps:$4 sm:$0xff]  }
 0xd7b   : > { %v4484_v12 = vpop.f32.mrb[59].mxu1  ;;  %v7349_v10 = vld [vmem:[%s9366_s15 + $0x2e4] ss:$8 sps:$4 sm:$0xff]  }
 0xd7c   : > { %4713 = vmatprep.mubr.bf16.mxu1 %v4487_v9  ;;  %v7347_v9 = vld [vmem:[%s9366_s15 + $0x2e0] ss:$8 sps:$4 sm:$0xff]   ;;  %v7356_v12 = vld [vmem:[%s9366_s15 + $0x3f0] ss:$8 sps:$4 sm:$0xff]  }
 0xd7d   : > { %4714 = vmatmul.mubr.bf16.vlgmr.msra.gmra.mrb[60].mxu1 %v4486_v8  ;;  %6488 = vmatmul.mubr.msk.bf16.vlgmr.msra.gmra.mrb[44].mxu0 %vm4354_vm2, %v6486_v5  ;;  %v7350_v5 = vld [vmem:[%s9366_s15 + $0x3e0] ss:$8 sps:$4 sm:$0xff]   ;;  %v7358_v8 = vld [vmem:[%s9366_s15 + $0x3f4] ss:$8 sps:$4 sm:$0xff]  }
 0xd7e   : > { %4929 = vmatpush1.bf16.msra.mxu1 %v9007_v22  ;;  %4960 = vmatprep.mubr.bf16.mxu1 %v7376_v1  ;;  %v7271_v1 = vld [vmem:[%s9366_s15 + $0x214] ss:$8 sps:$4 sm:$0xff]   ;;  %v7292_v22 = vld [vmem:[%s9366_s15 + $0x344] ss:$8 sps:$4 sm:$0xff]  }
 0xd7f   : > { %5164 = vmatprep.subr.bf16.mxu1 %v7265_v13  ;;  %5449 = vmatpush1.bf16.msra.mxu0 %v7266_v17  ;;  %v7355_v13 = vld [vmem:[%s9366_s15 + $0x2f4] ss:$8 sps:$4 sm:$0xff]   ;;  %v7353_v17 = vld [vmem:[%s9366_s15 + $0x2f0] ss:$8 sps:$4 sm:$0xff]  }
 0xd80   : > { %5450 = vmatprep.subr.bf16.mxu0 %v7274_v19 }
 0xd83   : > { %5451 = vmatpush1.bf16.msra.mxu0 %v7272_v11 }
 0xd84   : > { %5452 = vmatprep.subr.bf16.mxu0 %v7280_v14 }
 0xd85   : > { %6421 = vmatmul.mubr.msk.bf16.vlgmr.msra.gmra.mrb[64].mxu1 %vm4354_vm2, %v6419_v15 }
 0xd86   : > { %5165 = vmatpush1.bf16.msra.mxu1 %v7263_v61 }
 0xd87   : > { %5166 = vmatprep.subr.bf16.mxu1 %v7271_v1  ;;  %5453 = vmatpush1.bf16.msra.mxu0 %v7278_v20 }
 0xd88   : > { %5454 = vmatprep.subr.bf16.mxu0 %v7286_v51 }
 0xd8a   : > { %5167 = vmatpush1.bf16.msra.mxu1 %v7269_v18 }
 0xd8b   : > { %5168 = vmatprep.subr.bf16.mxu1 %v7277_v16  ;;  %5455 = vmatpush1.bf16.msra.mxu0 %v7284_v21 }
 0xd8c   : > { %5456 = vmatprep.subr.bf16.mxu0 %v7292_v22 }
 0xd8e   : > { %5169 = vmatpush1.bf16.msra.mxu1 %v7275_v23 }
 0xd8f   : > { %5170 = vmatprep.subr.bf16.mxu1 %v7283_v24  ;;  %5457 = vmatpush1.bf16.msra.mxu0 %v7290_v25 }
 0xd90   : > { %5458 = vmatprep.subr.bf16.mxu0 %v7298_v26 }
 0xd92   : > { %5171 = vmatpush1.bf16.msra.mxu1 %v7281_v27 }
 0xd93   : > { %5172 = vmatprep.subr.bf16.mxu1 %v7289_v28  ;;  %5459 = vmatpush1.bf16.msra.mxu0 %v7296_v29 }
 0xd94   : > { %5460 = vmatprep.subr.bf16.mxu0 %v7304_v30 }
 0xd96   : > { %5173 = vmatpush1.bf16.msra.mxu1 %v7287_v32 }
 0xd97   : > { %5174 = vmatprep.subr.bf16.mxu1 %v7295_v33  ;;  %5461 = vmatpush1.bf16.msra.mxu0 %v7302_v36 }
 0xd98   : > { %5462 = vmatprep.subr.bf16.mxu0 %v7310_v37 }
 0xd9a   : > { %5175 = vmatpush1.bf16.msra.mxu1 %v7293_v38 }
 0xd9b   : > { %5176 = vmatprep.subr.bf16.mxu1 %v7301_v39  ;;  %5463 = vmatpush1.bf16.msra.mxu0 %v7308_v40  ;;  %v5491_v40 = vld [vmem:[%s9367_s16] sm:$0x3] }
 0xd9c   : > { %5464 = vmatprep.subr.bf16.mxu0 %v7316_v31 }
 0xd9e   : > { %5177 = vmatpush1.bf16.msra.mxu1 %v7299_v35 }
 0xd9f   : > { %5178 = vmatprep.subr.bf16.mxu1 %v7307_v43  ;;  %5465 = vmatpush1.bf16.msra.mxu0 %v7314_v47  ;;  %v5496_v47 = vrot.slane %v5491_v40, %v7983_v42 }
 0xda0   : > { %5466 = vmatprep.subr.bf16.mxu0 %v7322_v49 }
 0xda2   : > { %5179 = vmatpush1.bf16.msra.mxu1 %v7305_v41  ;;  %v5500_v41 = vrot.slane %v5491_v40, %v7988_v34 }
 0xda3   : > { %5180 = vmatprep.subr.bf16.mxu1 %v7313_v45  ;;  %5467 = vmatpush1.bf16.msra.mxu0 %v7320_v46 }
 0xda4   : > { %5468 = vmatprep.subr.bf16.mxu0 %v7328_v50 }
 0xda6   : > { %5181 = vmatpush1.bf16.msra.mxu1 %v7311_v52 }
 0xda7   : > { %5182 = vmatprep.subr.bf16.mxu1 %v7319_v53  ;;  %5469 = vmatpush1.bf16.msra.mxu0 %v7326_v54 }
 0xda8   : > { %5470 = vmatprep.subr.bf16.mxu0 %v7334_v55 }
 0xdaa   : > { %5183 = vmatpush1.bf16.msra.mxu1 %v7317_v56 }
 0xdab   : > { %5184 = vmatprep.subr.bf16.mxu1 %v7325_v57  ;;  %5471 = vmatpush1.bf16.msra.mxu0 %v7332_v58 }
 0xdac   : > { %5472 = vmatprep.subr.bf16.mxu0 %v7340_v44 }
 0xdae   : > { %5185 = vmatpush1.bf16.msra.mxu1 %v7323_v48 }
 0xdaf   : > { %5186 = vmatprep.subr.bf16.mxu1 %v7331_v60  ;;  %5473 = vmatpush1.bf16.msra.mxu0 %v7338_v59 }
 0xdb0   : > { %5474 = vmatprep.subr.bf16.mxu0 %v7346_v4 }
 0xdb2   : > { %5187 = vmatpush1.bf16.msra.mxu1 %v7329_v62 }
 0xdb3   : > { %5188 = vmatprep.subr.bf16.mxu1 %v7337_v63  ;;  %5475 = vmatpush1.bf16.msra.mxu0 %v7344_v6 }
 0xdb4   : > { %5476 = vmatprep.subr.bf16.mxu0 %v7352_v7 }
 0xdb6   : > { %5189 = vmatpush1.bf16.msra.mxu1 %v7335_v0 }
 0xdb7   : > { %5190 = vmatprep.subr.bf16.mxu1 %v7343_v3  ;;  %5477 = vmatpush1.bf16.msra.mxu0 %v7350_v5 }
 0xdb8   : > { %5478 = vmatprep.subr.bf16.mxu0 %v7358_v8 }
 0xdba   : > { %5191 = vmatpush1.bf16.msra.mxu1 %v7341_v2 }
 0xdbb   : > { %5192 = vmatprep.subr.bf16.mxu1 %v7349_v10  ;;  %5479 = vmatpush1.bf16.msra.mxu0 %v7356_v12 }
 0xdbe   : > { %5193 = vmatpush1.bf16.msra.mxu1 %v7347_v9 }
 0xdbf   : > { %5194 = vmatprep.subr.bf16.mxu1 %v7355_v13 }
 0xdc2   : > { %5195 = vmatpush1.bf16.msra.mxu1 %v7353_v17 }
 0xe48   : > { %v4916_v19 = vpop.f32.mrb[40].mxu0 }
 0xe49   : > { %v4918_v11 = vpop.f32.mrb[41].mxu0 }
 0xe4a   : > { %v4920_v14 = vpop.f32.mrb[42].mxu0 }
 0xe4b   : > { %v4921_v15 = vpop.f32.mrb[43].mxu0 }
 0xe50   : > { %v4715_v61 = vpop.f32.mrb[60].mxu1  ;;  %v5246_v1 = vpop.f32.mrb[44].mxu0 }
 0xe51   : > { %v4917_v20 = vadd.f32 %v4916_v19, %v4715_v61  ;;  %v4717_v51 = vpop.f32.mrb[61].mxu1  ;;  %v5253_v18 = vpack.c.bf16 %v5246_v1, %v5246_v1  ;;  %v5248_v16 = vpop.f32.mrb[45].mxu0  ;;  %v5542_v61 = vld [vmem:[%s9368_s17] sm:$0xff] }
 0xe52   : > { %v4919_v21 = vadd.f32 %v4918_v11, %v4717_v51  ;;  %v4719_v22 = vpop.f32.mrb[62].mxu1  ;;  %v5254_v23 = vpack.c.bf16 %v5248_v16, %v5248_v16  ;;  %v5250_v24 = vpop.f32.mrb[46].mxu0  ;;  %v5548_v1 = vld [vmem:[%s9369_s18] sm:$0xff] }
 0xe53   : > { %v4720_v25 = vpop.f32.mrb[63].mxu1  ;;  %v5251_v26 = vpop.f32.mrb[47].mxu0  ;;  %v5560_v24 = vld [vmem:[%s9370_s19] sm:$0xff] }
 0xe54   : > { %5480 = vmatprep.mubr.bf16.mxu0 %v5254_v23 }
 0xe55   : > { %5481 = vmatmul.mubr.bf16.vlgmr.msra.gmra.mrb[48].mxu0 %v5253_v18 }
 0xe58   : > { %v4962_v27 = vpop.f32.mrb[64].mxu1 }
 0xe59   : > { %v4964_v28 = vpop.f32.mrb[65].mxu1  ;;  %v4969_v32 = vpack.c.bf16 %v4962_v27, %v4962_v27  ;;  %v5562_v27 = vcombine.high %v5560_v24, %v5560_v24 }
 0xe5a   : > { %v4970_v29 = vpack.c.bf16 %v4964_v28, %v4964_v28  ;;  %v4966_v30 = vpop.f32.mrb[66].mxu1 }
 0xe5b   : > { %v4967_v33 = vpop.f32.mrb[67].mxu1 }
 0xe5c   : > { %5196 = vmatprep.mubr.bf16.mxu1 %v4970_v29 }
 0xe5d   : > { %5197 = vmatmul.mubr.bf16.vlgmr.msra.gmra.mrb[68].mxu1 %v4969_v32 }
 0xf28   : > { %v5482_v36 = vpop.f32.mrb[48].mxu0 }
 0xf29   : > { %v5484_v37 = vpop.f32.mrb[49].mxu0 }
 0xf2a   : > { %v5486_v38 = vpop.f32.mrb[50].mxu0 }
 0xf2b   : > { %v5487_v39 = vpop.f32.mrb[51].mxu0 }
 0xf30   : > { %v5198_v31 = vpop.f32.mrb[68].mxu1 }
 0xf31   : > { %v5205_v35 = vadd.f32 %v5198_v31, %v4917_v20  ;;  %v5200_v43 = vpop.f32.mrb[69].mxu1  ;;  %v5544_v20 = vcombine.high %v5542_v61, %v5542_v61 }
 0xf32   : > { %v5206_v49 = vadd.f32 %v5200_v43, %v4919_v21  ;;  %v5202_v45 = vpop.f32.mrb[70].mxu1  ;;  %v5550_v21 = vcombine.high %v5548_v1, %v5548_v1 }
 0xf33   : > { %v5489_v46 = vadd.f32 %v5482_v36, %v5205_v35  ;;  %v5203_v50 = vpop.f32.mrb[71].mxu1  ;;  %v5579_v45 = vld [vmem:[#allocation2] sm:$0x1] }
 0xf34   : > { %v5490_v52 = vadd.f32 %v5484_v37, %v5206_v49 }
 0xf35   : > { %v5503_v53 = vadd.f32 %v5496_v47, %v5489_v46 }
 0xf36   : > { %v5504_v54 = vadd.f32 %v5500_v41, %v5490_v52 }
 0xf37   : > { %v5505_v55 = vsel %vm4358_vm1, %v5503_v53, 0.0 }
 0xf38   : > { %v5506_v56 = vsel %vm4358_vm1, %v5504_v54, 0.0 }
 0xf39   : > { %v5507_v57 = vadd.f32 %v5506_v56, %v5505_v55 }
 0xf3b   : > { %5508 = vadd.xlane.f32.xlu0 %v5507_v57 }
 0xfc8   : > { %v5509_v58 = vpop.xlane.xlu0 %5508 }
 0xfc9   : > { %v5510_v44 = vrot.slane %v5509_v58, 4 }
 0xfcb   : > { %v5511_v48 = vadd.f32 %v5510_v44, %v5509_v58 }
 0xfcd   : > { %v5512_v60 = vrot.slane %v5511_v48, 2 }
 0xfcf   : > { %v5513_v42 = vadd.f32 %v5512_v60, %v5511_v48 }
 0xfd1   : > { %v5514_v59 = vrot.slane %v5513_v42, 1 }
 0xfd3   : > { %v5515_v62 = vadd.f32 %v5514_v59, %v5513_v42 }
 0xfd5   : > { %6600 = vpush %v5515_v62 }
0x1006   : > { %s6601_s23 = spop %6600 }
0x1007   : > { %v5517_v34 = vstv %s6601_s23 }
0x1008   : > { %v5519_v63 = vmul.f32 0.0009765625, %v5517_v34 }
0x100a   : > { %v5520_v0 = vsub.f32 %v5503_v53, %v5519_v63  ;;  %v5521_v2 = vsub.f32 %v5504_v54, %v5519_v63 }
0x100c   : > { %v5522_v3 = vmul.f32 %v5520_v0, %v5520_v0  ;;  %v5523_v4 = vmul.f32 %v5521_v2, %v5521_v2 }
0x100e   : > { %v5524_v6 = vsel %vm4358_vm1, %v5522_v3, 0.0  ;;  %v5525_v7 = vsel %vm4358_vm1, %v5523_v4, 0.0 }
0x100f   : > { %v5526_v9 = vadd.f32 %v5525_v7, %v5524_v6 }
0x1011   : > { %5527 = vadd.xlane.f32.xlu1 %v5526_v9 }
0x109e   : > { %v5528_v10 = vpop.xlane.xlu1 %5527 }
0x109f   : > { %v5529_v5 = vrot.slane %v5528_v10, 4 }
0x10a1   : > { %v5530_v8 = vadd.f32 %v5529_v5, %v5528_v10 }
0x10a3   : > { %v5531_v12 = vrot.slane %v5530_v8, 2 }
0x10a5   : > { %v5532_v13 = vadd.f32 %v5531_v12, %v5530_v8 }
0x10a7   : > { %v5533_v17 = vrot.slane %v5532_v13, 1 }
0x10a9   : > { %v5534_v19 = vadd.f32 %v5533_v17, %v5532_v13 }
0x10ab   : > { %6602 = vpush %v5534_v19 }
0x10dc   : > { %s6603_s24 = spop %6602 }
0x10dd   : > { %v5536_v11 = vstv %s6603_s24  ;;  %s654_s24 = scalar_lea.vmem %s9372_s21, %s9390_s27 }
0x10de   : > { %v5537_v14 = vmul.f32 0.0009765625, %v5536_v11 }
0x10e0   : > { %v5538_v15 = vadd.f32 1e-05, %v5537_v14 }
0x10e2   : > { %7366 = vrsqrt.f32 %v5538_v15 }
0x10ec   : > { %v7367_v51 = vpop.eup %7366 }
0x10ed   : > { %v5540_v18 = vmul.f32 %v7367_v51, %v5520_v0  ;;  %v5541_v16 = vmul.f32 %v7367_v51, %v5521_v2 }
0x10ef   : > { %v5546_v22 = vmul.f32 %v5542_v61, %v5540_v18  ;;  %v5547_v23 = vmul.f32 %v5544_v20, %v5541_v16 }
0x10f1   : > { %v5552_v25 = vadd.f32 %v5548_v1, %v5546_v22  ;;  %v5553_v26 = vadd.f32 %v5550_v21, %v5547_v23 }
0x10f3   : > { %vm5554_vm3 = vcmp.gt.f32.partialorder %v5552_v25, 0.0  ;;  %vm5555_vm4 = vcmp.gt.f32.partialorder %v5553_v26, 0.0  ;;  %v5556_v28 = vmul.f32 0.2, %v5552_v25  ;;  %v5557_v29 = vmul.f32 0.2, %v5553_v26 }
0x10f5   : > { %v5558_v30 = vsel %vm5554_vm3, %v5552_v25, %v5556_v28  ;;  %v5559_v32 = vsel %vm5555_vm4, %v5553_v26, %v5557_v29 }
0x10f6   : > { %v5564_v33 = vmul.f32 %v5560_v24, %v5558_v30  ;;  %v5565_v36 = vmul.f32 %v5562_v27, %v5559_v32 }
0x10f8   : > { %v5566_v37 = vsel %vm4358_vm1, %v5564_v33, 0.0  ;;  %v5567_v38 = vsel %vm4358_vm1, %v5565_v36, 0.0 }
0x10f9   : > { %v5568_v39 = vadd.f32 %v5567_v38, %v5566_v37 }
0x10fb   : > { %5569 = vadd.xlane.f32.xlu0 %v5568_v39 }
0x1188   : > { %v5570_v40 = vpop.xlane.xlu0 %5569 }
0x1189   : > { %v5571_v31 = vrot.slane %v5570_v40, 4 }
0x118b   : > { %v5572_v35 = vadd.f32 %v5571_v31, %v5570_v40 }
0x118d   : > { %v5573_v43 = vrot.slane %v5572_v35, 2 }
0x118f   : > { %v5574_v47 = vadd.f32 %v5573_v43, %v5572_v35 }
0x1191   : > { %v5575_v49 = vrot.slane %v5574_v47, 1 }
0x1193   : > { %v5576_v41 = vadd.f32 %v5575_v49, %v5574_v47 }
0x1195   : > { %6604 = vpush %v5576_v41 }
0x11c6   : > { %s6605_s30 = spop %6604 }
0x11c7   : > { %v5578_v46 = vstv %s6605_s30 }
0x11c8   : > { %v5580_v50 = vadd.f32 %v5579_v45, %v5578_v46 }
0x11ca   : > { %5582 = vst.msk [vmem:[%s654_s24] sm:$0x1] %vm5581_vm5, %v5580_v50 }
0x11cb PF: > { %s33_s26 = sadd.s32 1, %s7374_s26  }
0x11cc   : > { %p30_p4 = scmp.ge.s32.totalorder %s33_s26, 4  }
0x11ce   :  { %32 = sbr.rel (!%p30_p4) target bundleno = 7 (0x7), region = 158 }

</bundles_post_ra>
